<compile_context>
chip_gen: v7x
topology: tpu7x:2x2x1
jax: 0.10.0
libtpu: 0.0.40
codegen_flags: <defaults>
</compile_context>

<pallas_src>
import math
import jax
import jax.numpy as jnp
from jax.experimental import pallas as pl
from jax.experimental.pallas import tpu as pltpu

# ---- scaled-down BERT config (same structure as bert-base-uncased, smaller dims) ----
VOCAB = 100
HIDDEN = 128          # bert-base uses 768; scaled for a small synthetic run
N_LAYERS = 2          # bert-base uses 12
N_HEADS = 4           # bert-base uses 12
HEAD_DIM = HIDDEN // N_HEADS
INTERMEDIATE = 4 * HIDDEN
MAX_POS = 64
TYPE_VOCAB = 2
NUM_LABELS = 3
LN_EPS = 1e-12
BATCH = 2
SEQ = 16


# ----------------------------- in-kernel helpers (f32) -----------------------------
def _ln_f32(x, g, b):
    """LayerNorm over the last dim, statistics in float32 (BERT eps=1e-12)."""
    mu = jnp.mean(x, axis=-1, keepdims=True)
    d = x - mu
    var = jnp.mean(d * d, axis=-1, keepdims=True)
    return d * jax.lax.rsqrt(var + LN_EPS) * g + b


def _gelu(x):
    # TODO(synk): HF BERT uses exact erf-GELU; tanh approximation kept for safe EUP lowering.
    c = math.sqrt(2.0 / math.pi)
    return 0.5 * x * (1.0 + jnp.tanh(c * (x + 0.044715 * x * x * x)))


# ----------------------------- fused forward kernel --------------------------------
def _fused_bert_kernel(emb_ref, m_ref, eg_ref, eb_ref,
                       wqkv_ref, bqkv_ref, wo_ref, bo_ref,
                       ln1g_ref, ln1b_ref, wi_ref, bi_ref,
                       wout_ref, bout_ref, ln2g_ref, ln2b_ref,
                       wp_ref, bp_ref, wc_ref, bc_ref, o_ref):
    """One grid step = one batch element's full forward pass (all in vregs/VMEM)."""
    m = m_ref[...]                                             # (1, S) additive mask bias, f32

    # Embedding LayerNorm.
    h = _ln_f32(emb_ref[...], eg_ref[...], eb_ref[...])        # (S, H) f32

    # Encoder layers, statically unrolled (weights indexed on leading layer axis -> free).
    for l in range(N_LAYERS):
        x_bf = h.astype(jnp.bfloat16)

        # Per-head attention.  Heads are indexed on a leading WEIGHT axis, so no lane
        # slicing of activations; per-head ctx is folded straight into the wo projection.
        attn = None
        for hh in range(N_HEADS):
            q = (jnp.dot(x_bf, wqkv_ref[l, 0, hh],
                         preferred_element_type=jnp.float32) + bqkv_ref[l, 0, hh])
            k = (jnp.dot(x_bf, wqkv_ref[l, 1, hh],
                         preferred_element_type=jnp.float32) + bqkv_ref[l, 1, hh])
            v = (jnp.dot(x_bf, wqkv_ref[l, 2, hh],
                         preferred_element_type=jnp.float32) + bqkv_ref[l, 2, hh])

            # Scores: contract last dims directly (no k.T materialized).
            # 1/sqrt(head_dim) is already folded into the Q weights/bias.
            s = jax.lax.dot_general(q.astype(jnp.bfloat16), k.astype(jnp.bfloat16),
                                    (((1,), (1,)), ((), ())),
                                    preferred_element_type=jnp.float32) + m
            s = s - jnp.max(s, axis=-1, keepdims=True)
            p = jnp.exp(s)
            p = p * pl.reciprocal(jnp.sum(p, axis=-1, keepdims=True), approx=True)

            o_h = jnp.dot(p.astype(jnp.bfloat16), v.astype(jnp.bfloat16),
                          preferred_element_type=jnp.float32)            # (S, dh)
            part = jnp.dot(o_h.astype(jnp.bfloat16), wo_ref[l, hh],
                           preferred_element_type=jnp.float32)           # (S, H)
            attn = part if attn is None else attn + part

        # Attention output bias + residual + LayerNorm (epilogue-fused).
        h1 = _ln_f32(attn + bo_ref[l] + h, ln1g_ref[l], ln1b_ref[l])

        # FFN: GELU matmul, projection back, residual + LayerNorm (epilogue-fused).
        ff = jnp.dot(h1.astype(jnp.bfloat16), wi_ref[l],
                     preferred_element_type=jnp.float32) + bi_ref[l]
        ff = _gelu(ff)
        ff2 = jnp.dot(ff.astype(jnp.bfloat16), wout_ref[l],
                      preferred_element_type=jnp.float32) + bout_ref[l]
        h = _ln_f32(ff2 + h1, ln2g_ref[l], ln2b_ref[l])

    # Pooler on the CLS row, then classifier.  dropout(p=0.1) is identity at inference.
    # TODO(synk): training-mode dropout (random masking before the classifier) not implemented.
    cls = h[0:1, :].astype(jnp.bfloat16)                                  # (1, H)
    pooled = jnp.tanh(jnp.dot(cls, wp_ref[...],
                              preferred_element_type=jnp.float32) + bp_ref[...])
    logits = jnp.dot(pooled.astype(jnp.bfloat16), wc_ref[...],
                     preferred_element_type=jnp.float32) + bc_ref[...]    # (1, NUM_LABELS)
    o_ref[0] = logits


def fused_bert_forward(emb_flat, mask_bias, p):
    """emb_flat: [B*S, H] f32 summed embeddings; mask_bias: [B, 1, S] f32 additive bias."""
    M, H = emb_flat.shape
    B = mask_bias.shape[0]
    S = M // B
    assert M == B * S
    NL = NUM_LABELS

    def full(shape):
        return pl.BlockSpec(shape, lambda b: (0,) * len(shape))

    # TODO(synk): at real bert-base dims (H=768, I=3072, S up to 512) tile the FFN over the
    # intermediate axis with an extra "arbitrary" grid dim, single-buffer the constant-index
    # weight specs (pipeline_mode=pl.Buffered(1)), set vmem_limit_bytes explicitly, and use
    # flash-style query tiling for the (S,S) scores -- v7x's 64 MiB VMEM is the binding limit.
    out = pl.pallas_call(
        _fused_bert_kernel,
        out_shape=jax.ShapeDtypeStruct((B, 1, NL), jnp.float32),
        grid=(B,),
        in_specs=[
            pl.BlockSpec((S, H), lambda b: (b, 0)),              # embedding rows of batch b
            pl.BlockSpec((None, 1, S), lambda b: (b, 0, 0)),     # additive mask of batch b
            full((1, H)), full((1, H)),                          # embedding LN gamma/beta
            full(p["wqkv"].shape), full(p["bqkv"].shape),        # (L,3,nH,H,dh) / (L,3,nH,1,dh)
            full(p["wo"].shape), full(p["bo"].shape),            # (L,nH,dh,H) / (L,1,H)
            full(p["ln1_g"].shape), full(p["ln1_b"].shape),
            full(p["wi"].shape), full(p["bi"].shape),            # (L,H,I) / (L,1,I)
            full(p["wout"].shape), full(p["bout"].shape),        # (L,I,H) / (L,1,H)
            full(p["ln2_g"].shape), full(p["ln2_b"].shape),
            full((H, H)), full((1, H)),                          # pooler
            full((H, NL)), full((1, NL)),                        # classifier
        ],
        out_specs=pl.BlockSpec((1, 1, NL), lambda b: (b, 0, 0)),
        compiler_params=pltpu.CompilerParams(dimension_semantics=("parallel",)),
    )(emb_flat, mask_bias,
      p["emb_ln_g"], p["emb_ln_b"],
      p["wqkv"], p["bqkv"], p["wo"], p["bo"],
      p["ln1_g"], p["ln1_b"], p["wi"], p["bi"],
      p["wout"], p["bout"], p["ln2_g"], p["ln2_b"],
      p["pooler_w"], p["pooler_b"], p["cls_w"], p["cls_b"])
    return out.reshape(B, NL)


# ----------------------------- parameters ------------------------------------------
def init_params(key):
    def w(k, fan_in, fan_out):
        return jax.random.normal(k, (fan_in, fan_out), jnp.float32) * 0.02

    def head_major(m):
        # (H, H) with per-head column blocks -> (nH, H, dh): heads on a leading axis.
        return m.reshape(HIDDEN, N_HEADS, HEAD_DIM).transpose(1, 0, 2)

    keys = jax.random.split(key, 5 + N_LAYERS)
    params = {
        "word_emb": jax.random.normal(keys[0], (VOCAB, HIDDEN), jnp.float32) * 0.02,
        "pos_emb": jax.random.normal(keys[1], (MAX_POS, HIDDEN), jnp.float32) * 0.02,
        "type_emb": jax.random.normal(keys[2], (TYPE_VOCAB, HIDDEN), jnp.float32) * 0.02,
        "emb_ln_g": jnp.ones((1, HIDDEN), jnp.float32),
        "emb_ln_b": jnp.zeros((1, HIDDEN), jnp.float32),
        # Weights stored in bf16 (MXU-native); biases / LN params stay f32.
        "pooler_w": w(keys[3], HIDDEN, HIDDEN).astype(jnp.bfloat16),
        "pooler_b": jnp.zeros((1, HIDDEN), jnp.float32),
        "cls_w": w(keys[4], HIDDEN, NUM_LABELS).astype(jnp.bfloat16),  # nn.Linear(hidden, numOfLabels)
        "cls_b": jnp.zeros((1, NUM_LABELS), jnp.float32),
    }

    scale = 1.0 / math.sqrt(HEAD_DIM)   # folded into the Q projection (weights + bias) at init
    wqkv_l, wo_l, wi_l, wout_l = [], [], [], []
    for l in range(N_LAYERS):
        lk = jax.random.split(keys[5 + l], 6)
        wq = w(lk[0], HIDDEN, HIDDEN) * scale
        wk = w(lk[1], HIDDEN, HIDDEN)
        wv = w(lk[2], HIDDEN, HIDDEN)
        wqkv_l.append(jnp.stack([head_major(wq), head_major(wk), head_major(wv)]))
        wo_l.append(w(lk[3], HIDDEN, HIDDEN).reshape(N_HEADS, HEAD_DIM, HIDDEN))
        wi_l.append(w(lk[4], HIDDEN, INTERMEDIATE))
        wout_l.append(w(lk[5], INTERMEDIATE, HIDDEN))

    params.update({
        "wqkv": jnp.stack(wqkv_l).astype(jnp.bfloat16),                 # (L, 3, nH, H, dh)
        "bqkv": jnp.zeros((N_LAYERS, 3, N_HEADS, 1, HEAD_DIM), jnp.float32),
        "wo": jnp.stack(wo_l).astype(jnp.bfloat16),                     # (L, nH, dh, H)
        "bo": jnp.zeros((N_LAYERS, 1, HIDDEN), jnp.float32),
        "ln1_g": jnp.ones((N_LAYERS, 1, HIDDEN), jnp.float32),
        "ln1_b": jnp.zeros((N_LAYERS, 1, HIDDEN), jnp.float32),
        "wi": jnp.stack(wi_l).astype(jnp.bfloat16),                     # (L, H, I)
        "bi": jnp.zeros((N_LAYERS, 1, INTERMEDIATE), jnp.float32),
        "wout": jnp.stack(wout_l).astype(jnp.bfloat16),                 # (L, I, H)
        "bout": jnp.zeros((N_LAYERS, 1, HIDDEN), jnp.float32),
        "ln2_g": jnp.ones((N_LAYERS, 1, HIDDEN), jnp.float32),
        "ln2_b": jnp.zeros((N_LAYERS, 1, HIDDEN), jnp.float32),
    })
    return params


# ----------------------------- forward ----------------------------------------------
def bert_base_uncased_forward(params, ids, mask, token_type_ids):
    B, S = ids.shape

    # Embeddings: word + position + token-type (gathers are JAX glue).
    positions = jnp.arange(S, dtype=jnp.int32)
    emb = (jnp.take(params["word_emb"], ids, axis=0)
           + jnp.take(params["pos_emb"], positions, axis=0)[None, :, :]
           + jnp.take(params["type_emb"], token_type_ids, axis=0))

    # Additive attention-mask bias (f32, -1e9 on padding), broadcast over heads/queries.
    mask_bias = ((1.0 - mask.astype(jnp.float32)) * -1e9).reshape(B, 1, S)

    # Single fused Pallas kernel: embedding LN -> encoder layers -> pooler -> classifier.
    return fused_bert_forward(emb.reshape(B * S, HIDDEN), mask_bias, params)  # [B, NUM_LABELS]


# ----------------------------- main --------------------------------------------------
if __name__ == "__main__":
    key = jax.random.PRNGKey(0)
    k_par, k_ids = jax.random.split(key)

    params = init_params(k_par)

    ids = jax.random.randint(k_ids, (BATCH, SEQ), 0, VOCAB, dtype=jnp.int32)
    # attention mask: second example has 4 padding tokens at the end
    mask = jnp.ones((BATCH, SEQ), dtype=jnp.int32).at[1, SEQ - 4:].set(0)
    token_type_ids = jnp.concatenate(
        [jnp.zeros((BATCH, SEQ // 2), jnp.int32),
         jnp.ones((BATCH, SEQ // 2), jnp.int32)], axis=1)

    logits = bert_base_uncased_forward(params, ids, mask, token_type_ids)
    logits = jax.block_until_ready(logits)

    assert logits.shape == (BATCH, NUM_LABELS) and logits.dtype == jnp.float32
    assert bool(jnp.all(jnp.isfinite(logits)))
    print("KERNEL_OK")
</pallas_src>

<mosaic_0001>
module attributes {stable_mosaic.version = 11 : i64} {
  func.func @_fused_bert_kernel(%arg0: i32, %arg1: memref<16x128xf32, #tpu.memory_space<vmem>>, %arg2: memref<1x1x16xf32, #tpu.memory_space<vmem>>, %arg3: memref<1x128xf32, #tpu.memory_space<vmem>>, %arg4: memref<1x128xf32, #tpu.memory_space<vmem>>, %arg5: memref<2x3x4x128x32xbf16, #tpu.memory_space<vmem>>, %arg6: memref<2x3x4x1x32xf32, #tpu.memory_space<vmem>>, %arg7: memref<2x4x32x128xbf16, #tpu.memory_space<vmem>>, %arg8: memref<2x1x128xf32, #tpu.memory_space<vmem>>, %arg9: memref<2x1x128xf32, #tpu.memory_space<vmem>>, %arg10: memref<2x1x128xf32, #tpu.memory_space<vmem>>, %arg11: memref<2x128x512xbf16, #tpu.memory_space<vmem>>, %arg12: memref<2x1x512xf32, #tpu.memory_space<vmem>>, %arg13: memref<2x512x128xbf16, #tpu.memory_space<vmem>>, %arg14: memref<2x1x128xf32, #tpu.memory_space<vmem>>, %arg15: memref<2x1x128xf32, #tpu.memory_space<vmem>>, %arg16: memref<2x1x128xf32, #tpu.memory_space<vmem>>, %arg17: memref<128x128xbf16, #tpu.memory_space<vmem>>, %arg18: memref<1x128xf32, #tpu.memory_space<vmem>>, %arg19: memref<128x3xbf16, #tpu.memory_space<vmem>>, %arg20: memref<1x3xf32, #tpu.memory_space<vmem>>, %arg21: memref<1x1x3xf32, #tpu.memory_space<vmem>>) attributes {dimension_semantics = [#tpu.dimension_semantics<parallel>], iteration_bounds = array<i64: 2>, scalar_prefetch = 0 : i64, scratch_operands = 0 : i64, tpu.core_type = #tpu.core_type<tc>, window_params = [{transform_indices = @transform_0, window_bounds = array<i64: 16, 128>}, {transform_indices = @transform_1, window_bounds = array<i64: 1, 1, 16>}, {pipeline_mode = #tpu.pipeline_mode<synchronous>, transform_indices = @transform_2, window_bounds = array<i64: 1, 128>}, {pipeline_mode = #tpu.pipeline_mode<synchronous>, transform_indices = @transform_3, window_bounds = array<i64: 1, 128>}, {pipeline_mode = #tpu.pipeline_mode<synchronous>, transform_indices = @transform_4, window_bounds = array<i64: 2, 3, 4, 128, 32>}, {pipeline_mode = #tpu.pipeline_mode<synchronous>, transform_indices = @transform_5, window_bounds = array<i64: 2, 3, 4, 1, 32>}, {pipeline_mode = #tpu.pipeline_mode<synchronous>, transform_indices = @transform_6, window_bounds = array<i64: 2, 4, 32, 128>}, {pipeline_mode = #tpu.pipeline_mode<synchronous>, transform_indices = @transform_7, window_bounds = array<i64: 2, 1, 128>}, {pipeline_mode = #tpu.pipeline_mode<synchronous>, transform_indices = @transform_8, window_bounds = array<i64: 2, 1, 128>}, {pipeline_mode = #tpu.pipeline_mode<synchronous>, transform_indices = @transform_9, window_bounds = array<i64: 2, 1, 128>}, {pipeline_mode = #tpu.pipeline_mode<synchronous>, transform_indices = @transform_10, window_bounds = array<i64: 2, 128, 512>}, {pipeline_mode = #tpu.pipeline_mode<synchronous>, transform_indices = @transform_11, window_bounds = array<i64: 2, 1, 512>}, {pipeline_mode = #tpu.pipeline_mode<synchronous>, transform_indices = @transform_12, window_bounds = array<i64: 2, 512, 128>}, {pipeline_mode = #tpu.pipeline_mode<synchronous>, transform_indices = @transform_13, window_bounds = array<i64: 2, 1, 128>}, {pipeline_mode = #tpu.pipeline_mode<synchronous>, transform_indices = @transform_14, window_bounds = array<i64: 2, 1, 128>}, {pipeline_mode = #tpu.pipeline_mode<synchronous>, transform_indices = @transform_15, window_bounds = array<i64: 2, 1, 128>}, {pipeline_mode = #tpu.pipeline_mode<synchronous>, transform_indices = @transform_16, window_bounds = array<i64: 128, 128>}, {pipeline_mode = #tpu.pipeline_mode<synchronous>, transform_indices = @transform_17, window_bounds = array<i64: 1, 128>}, {pipeline_mode = #tpu.pipeline_mode<synchronous>, transform_indices = @transform_18, window_bounds = array<i64: 128, 3>}, {pipeline_mode = #tpu.pipeline_mode<synchronous>, transform_indices = @transform_19, window_bounds = array<i64: 1, 3>}, {transform_indices = @transform_20, window_bounds = array<i64: 1, 1, 3>}]} {
    %c0 = arith.constant 0 : index
    %c0_0 = arith.constant 0 : index
    %c0_1 = arith.constant 0 : index
    %0 = vector.load %arg2[%c0, %c0_0, %c0_1] : memref<1x1x16xf32, #tpu.memory_space<vmem>>, vector<1x1x16xf32>
    %1 = vector.shape_cast %0 : vector<1x1x16xf32> to vector<1x16xf32>
    %c0_2 = arith.constant 0 : index
    %c0_3 = arith.constant 0 : index
    %2 = vector.load %arg1[%c0_2, %c0_3] : memref<16x128xf32, #tpu.memory_space<vmem>>, vector<16x128xf32>
    %c0_4 = arith.constant 0 : index
    %c0_5 = arith.constant 0 : index
    %3 = vector.load %arg3[%c0_4, %c0_5] : memref<1x128xf32, #tpu.memory_space<vmem>>, vector<1x128xf32>
    %c0_6 = arith.constant 0 : index
    %c0_7 = arith.constant 0 : index
    %4 = vector.load %arg4[%c0_6, %c0_7] : memref<1x128xf32, #tpu.memory_space<vmem>>, vector<1x128xf32>
    %cst = arith.constant dense<0.000000e+00> : vector<16xf32>
    %5 = vector.multi_reduction <add>, %2, %cst [1] : vector<16x128xf32> to vector<16xf32>
    %6 = vector.shape_cast %5 : vector<16xf32> to vector<16x1xf32>
    %cst_8 = arith.constant 1.280000e+02 : f32
    %7 = vector.broadcast %cst_8 : f32 to vector<16x1xf32>
    %8 = arith.divf %6, %7 : vector<16x1xf32>
    %9 = vector.broadcast %8 : vector<16x1xf32> to vector<16x128xf32>
    %10 = arith.subf %2, %9 : vector<16x128xf32>
    %11 = arith.mulf %10, %10 : vector<16x128xf32>
    %cst_9 = arith.constant dense<0.000000e+00> : vector<16xf32>
    %12 = vector.multi_reduction <add>, %11, %cst_9 [1] : vector<16x128xf32> to vector<16xf32>
    %13 = vector.shape_cast %12 : vector<16xf32> to vector<16x1xf32>
    %cst_10 = arith.constant 1.280000e+02 : f32
    %14 = vector.broadcast %cst_10 : f32 to vector<16x1xf32>
    %15 = arith.divf %13, %14 : vector<16x1xf32>
    %cst_11 = arith.constant 9.99999996E-13 : f32
    %16 = vector.broadcast %cst_11 : f32 to vector<16x1xf32>
    %17 = arith.addf %15, %16 : vector<16x1xf32>
    %18 = math.rsqrt %17 : vector<16x1xf32>
    %19 = vector.broadcast %18 : vector<16x1xf32> to vector<16x128xf32>
    %20 = arith.mulf %10, %19 : vector<16x128xf32>
    %21 = vector.broadcast %3 : vector<1x128xf32> to vector<16x128xf32>
    %22 = arith.mulf %20, %21 : vector<16x128xf32>
    %23 = vector.broadcast %4 : vector<1x128xf32> to vector<16x128xf32>
    %24 = arith.addf %22, %23 : vector<16x128xf32>
    %25 = arith.truncf %24 : vector<16x128xf32> to vector<16x128xbf16>
    %c0_12 = arith.constant 0 : index
    %c0_13 = arith.constant 0 : index
    %c0_14 = arith.constant 0 : index
    %c0_15 = arith.constant 0 : index
    %c0_16 = arith.constant 0 : index
    %26 = vector.load %arg5[%c0_12, %c0_13, %c0_14, %c0_15, %c0_16] : memref<2x3x4x128x32xbf16, #tpu.memory_space<vmem>>, vector<1x1x1x128x32xbf16>
    %27 = vector.shape_cast %26 : vector<1x1x1x128x32xbf16> to vector<128x32xbf16>
    %cst_17 = arith.constant dense<0.000000e+00> : vector<16x32xf32>
    %28 = tpu.matmul %25, %27, %cst_17 {dimension_numbers = #tpu.dot_dimension_numbers<[1], [0], [0], [1], [0, 0, 1, 1], [], []>} : vector<16x128xbf16>, vector<128x32xbf16>, vector<16x32xf32> -> vector<16x32xf32>
    %c0_18 = arith.constant 0 : index
    %c0_19 = arith.constant 0 : index
    %c0_20 = arith.constant 0 : index
    %c0_21 = arith.constant 0 : index
    %c0_22 = arith.constant 0 : index
    %29 = vector.load %arg6[%c0_18, %c0_19, %c0_20, %c0_21, %c0_22] : memref<2x3x4x1x32xf32, #tpu.memory_space<vmem>>, vector<1x1x1x1x32xf32>
    %30 = vector.shape_cast %29 : vector<1x1x1x1x32xf32> to vector<1x32xf32>
    %31 = vector.broadcast %30 : vector<1x32xf32> to vector<16x32xf32>
    %32 = arith.addf %28, %31 : vector<16x32xf32>
    %c0_23 = arith.constant 0 : index
    %c1 = arith.constant 1 : index
    %c0_24 = arith.constant 0 : index
    %c0_25 = arith.constant 0 : index
    %c0_26 = arith.constant 0 : index
    %33 = vector.load %arg5[%c0_23, %c1, %c0_24, %c0_25, %c0_26] : memref<2x3x4x128x32xbf16, #tpu.memory_space<vmem>>, vector<1x1x1x128x32xbf16>
    %34 = vector.shape_cast %33 : vector<1x1x1x128x32xbf16> to vector<128x32xbf16>
    %cst_27 = arith.constant dense<0.000000e+00> : vector<16x32xf32>
    %35 = tpu.matmul %25, %34, %cst_27 {dimension_numbers = #tpu.dot_dimension_numbers<[1], [0], [0], [1], [0, 0, 1, 1], [], []>} : vector<16x128xbf16>, vector<128x32xbf16>, vector<16x32xf32> -> vector<16x32xf32>
    %c0_28 = arith.constant 0 : index
    %c1_29 = arith.constant 1 : index
    %c0_30 = arith.constant 0 : index
    %c0_31 = arith.constant 0 : index
    %c0_32 = arith.constant 0 : index
    %36 = vector.load %arg6[%c0_28, %c1_29, %c0_30, %c0_31, %c0_32] : memref<2x3x4x1x32xf32, #tpu.memory_space<vmem>>, vector<1x1x1x1x32xf32>
    %37 = vector.shape_cast %36 : vector<1x1x1x1x32xf32> to vector<1x32xf32>
    %38 = vector.broadcast %37 : vector<1x32xf32> to vector<16x32xf32>
    %39 = arith.addf %35, %38 : vector<16x32xf32>
    %c0_33 = arith.constant 0 : index
    %c2 = arith.constant 2 : index
    %c0_34 = arith.constant 0 : index
    %c0_35 = arith.constant 0 : index
    %c0_36 = arith.constant 0 : index
    %40 = vector.load %arg5[%c0_33, %c2, %c0_34, %c0_35, %c0_36] : memref<2x3x4x128x32xbf16, #tpu.memory_space<vmem>>, vector<1x1x1x128x32xbf16>
    %41 = vector.shape_cast %40 : vector<1x1x1x128x32xbf16> to vector<128x32xbf16>
    %cst_37 = arith.constant dense<0.000000e+00> : vector<16x32xf32>
    %42 = tpu.matmul %25, %41, %cst_37 {dimension_numbers = #tpu.dot_dimension_numbers<[1], [0], [0], [1], [0, 0, 1, 1], [], []>} : vector<16x128xbf16>, vector<128x32xbf16>, vector<16x32xf32> -> vector<16x32xf32>
    %c0_38 = arith.constant 0 : index
    %c2_39 = arith.constant 2 : index
    %c0_40 = arith.constant 0 : index
    %c0_41 = arith.constant 0 : index
    %c0_42 = arith.constant 0 : index
    %43 = vector.load %arg6[%c0_38, %c2_39, %c0_40, %c0_41, %c0_42] : memref<2x3x4x1x32xf32, #tpu.memory_space<vmem>>, vector<1x1x1x1x32xf32>
    %44 = vector.shape_cast %43 : vector<1x1x1x1x32xf32> to vector<1x32xf32>
    %45 = vector.broadcast %44 : vector<1x32xf32> to vector<16x32xf32>
    %46 = arith.addf %42, %45 : vector<16x32xf32>
    %47 = arith.truncf %32 : vector<16x32xf32> to vector<16x32xbf16>
    %48 = arith.truncf %39 : vector<16x32xf32> to vector<16x32xbf16>
    %cst_43 = arith.constant dense<0.000000e+00> : vector<16x16xf32>
    %49 = tpu.matmul %47, %48, %cst_43 {dimension_numbers = #tpu.dot_dimension_numbers<[1], [1], [0], [0], [0, 0, 1, 0], [], []>} : vector<16x32xbf16>, vector<16x32xbf16>, vector<16x16xf32> -> vector<16x16xf32>
    %50 = vector.broadcast %1 : vector<1x16xf32> to vector<16x16xf32>
    %51 = arith.addf %49, %50 : vector<16x16xf32>
    %cst_44 = arith.constant dense<0xFF800000> : vector<16xf32>
    %52 = vector.multi_reduction <maximumf>, %51, %cst_44 [1] : vector<16x16xf32> to vector<16xf32>
    %53 = vector.shape_cast %52 : vector<16xf32> to vector<16x1xf32>
    %54 = vector.broadcast %53 : vector<16x1xf32> to vector<16x16xf32>
    %55 = arith.subf %51, %54 : vector<16x16xf32>
    %56 = math.exp %55 : vector<16x16xf32>
    %cst_45 = arith.constant dense<0.000000e+00> : vector<16xf32>
    %57 = vector.multi_reduction <add>, %56, %cst_45 [1] : vector<16x16xf32> to vector<16xf32>
    %58 = vector.shape_cast %57 : vector<16xf32> to vector<16x1xf32>
    %59 = tpu.reciprocal %58 {approx = true} : vector<16x1xf32> -> vector<16x1xf32>
    %60 = vector.broadcast %59 : vector<16x1xf32> to vector<16x16xf32>
    %61 = arith.mulf %56, %60 : vector<16x16xf32>
    %62 = arith.truncf %61 : vector<16x16xf32> to vector<16x16xbf16>
    %63 = arith.truncf %46 : vector<16x32xf32> to vector<16x32xbf16>
    %cst_46 = arith.constant dense<0.000000e+00> : vector<16x32xf32>
    %64 = tpu.matmul %62, %63, %cst_46 {dimension_numbers = #tpu.dot_dimension_numbers<[1], [0], [0], [1], [0, 0, 1, 1], [], []>} : vector<16x16xbf16>, vector<16x32xbf16>, vector<16x32xf32> -> vector<16x32xf32>
    %65 = arith.truncf %64 : vector<16x32xf32> to vector<16x32xbf16>
    %c0_47 = arith.constant 0 : index
    %c0_48 = arith.constant 0 : index
    %c0_49 = arith.constant 0 : index
    %c0_50 = arith.constant 0 : index
    %66 = vector.load %arg7[%c0_47, %c0_48, %c0_49, %c0_50] : memref<2x4x32x128xbf16, #tpu.memory_space<vmem>>, vector<1x1x32x128xbf16>
    %67 = vector.shape_cast %66 : vector<1x1x32x128xbf16> to vector<32x128xbf16>
    %cst_51 = arith.constant dense<0.000000e+00> : vector<16x128xf32>
    %68 = tpu.matmul %65, %67, %cst_51 {dimension_numbers = #tpu.dot_dimension_numbers<[1], [0], [0], [1], [0, 0, 1, 1], [], []>} : vector<16x32xbf16>, vector<32x128xbf16>, vector<16x128xf32> -> vector<16x128xf32>
    %c0_52 = arith.constant 0 : index
    %c0_53 = arith.constant 0 : index
    %c1_54 = arith.constant 1 : index
    %c0_55 = arith.constant 0 : index
    %c0_56 = arith.constant 0 : index
    %69 = vector.load %arg5[%c0_52, %c0_53, %c1_54, %c0_55, %c0_56] : memref<2x3x4x128x32xbf16, #tpu.memory_space<vmem>>, vector<1x1x1x128x32xbf16>
    %70 = vector.shape_cast %69 : vector<1x1x1x128x32xbf16> to vector<128x32xbf16>
    %cst_57 = arith.constant dense<0.000000e+00> : vector<16x32xf32>
    %71 = tpu.matmul %25, %70, %cst_57 {dimension_numbers = #tpu.dot_dimension_numbers<[1], [0], [0], [1], [0, 0, 1, 1], [], []>} : vector<16x128xbf16>, vector<128x32xbf16>, vector<16x32xf32> -> vector<16x32xf32>
    %c0_58 = arith.constant 0 : index
    %c0_59 = arith.constant 0 : index
    %c1_60 = arith.constant 1 : index
    %c0_61 = arith.constant 0 : index
    %c0_62 = arith.constant 0 : index
    %72 = vector.load %arg6[%c0_58, %c0_59, %c1_60, %c0_61, %c0_62] : memref<2x3x4x1x32xf32, #tpu.memory_space<vmem>>, vector<1x1x1x1x32xf32>
    %73 = vector.shape_cast %72 : vector<1x1x1x1x32xf32> to vector<1x32xf32>
    %74 = vector.broadcast %73 : vector<1x32xf32> to vector<16x32xf32>
    %75 = arith.addf %71, %74 : vector<16x32xf32>
    %c0_63 = arith.constant 0 : index
    %c1_64 = arith.constant 1 : index
    %c1_65 = arith.constant 1 : index
    %c0_66 = arith.constant 0 : index
    %c0_67 = arith.constant 0 : index
    %76 = vector.load %arg5[%c0_63, %c1_64, %c1_65, %c0_66, %c0_67] : memref<2x3x4x128x32xbf16, #tpu.memory_space<vmem>>, vector<1x1x1x128x32xbf16>
    %77 = vector.shape_cast %76 : vector<1x1x1x128x32xbf16> to vector<128x32xbf16>
    %cst_68 = arith.constant dense<0.000000e+00> : vector<16x32xf32>
    %78 = tpu.matmul %25, %77, %cst_68 {dimension_numbers = #tpu.dot_dimension_numbers<[1], [0], [0], [1], [0, 0, 1, 1], [], []>} : vector<16x128xbf16>, vector<128x32xbf16>, vector<16x32xf32> -> vector<16x32xf32>
    %c0_69 = arith.constant 0 : index
    %c1_70 = arith.constant 1 : index
    %c1_71 = arith.constant 1 : index
    %c0_72 = arith.constant 0 : index
    %c0_73 = arith.constant 0 : index
    %79 = vector.load %arg6[%c0_69, %c1_70, %c1_71, %c0_72, %c0_73] : memref<2x3x4x1x32xf32, #tpu.memory_space<vmem>>, vector<1x1x1x1x32xf32>
    %80 = vector.shape_cast %79 : vector<1x1x1x1x32xf32> to vector<1x32xf32>
    %81 = vector.broadcast %80 : vector<1x32xf32> to vector<16x32xf32>
    %82 = arith.addf %78, %81 : vector<16x32xf32>
    %c0_74 = arith.constant 0 : index
    %c2_75 = arith.constant 2 : index
    %c1_76 = arith.constant 1 : index
    %c0_77 = arith.constant 0 : index
    %c0_78 = arith.constant 0 : index
    %83 = vector.load %arg5[%c0_74, %c2_75, %c1_76, %c0_77, %c0_78] : memref<2x3x4x128x32xbf16, #tpu.memory_space<vmem>>, vector<1x1x1x128x32xbf16>
    %84 = vector.shape_cast %83 : vector<1x1x1x128x32xbf16> to vector<128x32xbf16>
    %cst_79 = arith.constant dense<0.000000e+00> : vector<16x32xf32>
    %85 = tpu.matmul %25, %84, %cst_79 {dimension_numbers = #tpu.dot_dimension_numbers<[1], [0], [0], [1], [0, 0, 1, 1], [], []>} : vector<16x128xbf16>, vector<128x32xbf16>, vector<16x32xf32> -> vector<16x32xf32>
    %c0_80 = arith.constant 0 : index
    %c2_81 = arith.constant 2 : index
    %c1_82 = arith.constant 1 : index
    %c0_83 = arith.constant 0 : index
    %c0_84 = arith.constant 0 : index
    %86 = vector.load %arg6[%c0_80, %c2_81, %c1_82, %c0_83, %c0_84] : memref<2x3x4x1x32xf32, #tpu.memory_space<vmem>>, vector<1x1x1x1x32xf32>
    %87 = vector.shape_cast %86 : vector<1x1x1x1x32xf32> to vector<1x32xf32>
    %88 = vector.broadcast %87 : vector<1x32xf32> to vector<16x32xf32>
    %89 = arith.addf %85, %88 : vector<16x32xf32>
    %90 = arith.truncf %75 : vector<16x32xf32> to vector<16x32xbf16>
    %91 = arith.truncf %82 : vector<16x32xf32> to vector<16x32xbf16>
    %cst_85 = arith.constant dense<0.000000e+00> : vector<16x16xf32>
    %92 = tpu.matmul %90, %91, %cst_85 {dimension_numbers = #tpu.dot_dimension_numbers<[1], [1], [0], [0], [0, 0, 1, 0], [], []>} : vector<16x32xbf16>, vector<16x32xbf16>, vector<16x16xf32> -> vector<16x16xf32>
    %93 = vector.broadcast %1 : vector<1x16xf32> to vector<16x16xf32>
    %94 = arith.addf %92, %93 : vector<16x16xf32>
    %cst_86 = arith.constant dense<0xFF800000> : vector<16xf32>
    %95 = vector.multi_reduction <maximumf>, %94, %cst_86 [1] : vector<16x16xf32> to vector<16xf32>
    %96 = vector.shape_cast %95 : vector<16xf32> to vector<16x1xf32>
    %97 = vector.broadcast %96 : vector<16x1xf32> to vector<16x16xf32>
    %98 = arith.subf %94, %97 : vector<16x16xf32>
    %99 = math.exp %98 : vector<16x16xf32>
    %cst_87 = arith.constant dense<0.000000e+00> : vector<16xf32>
    %100 = vector.multi_reduction <add>, %99, %cst_87 [1] : vector<16x16xf32> to vector<16xf32>
    %101 = vector.shape_cast %100 : vector<16xf32> to vector<16x1xf32>
    %102 = tpu.reciprocal %101 {approx = true} : vector<16x1xf32> -> vector<16x1xf32>
    %103 = vector.broadcast %102 : vector<16x1xf32> to vector<16x16xf32>
    %104 = arith.mulf %99, %103 : vector<16x16xf32>
    %105 = arith.truncf %104 : vector<16x16xf32> to vector<16x16xbf16>
    %106 = arith.truncf %89 : vector<16x32xf32> to vector<16x32xbf16>
    %cst_88 = arith.constant dense<0.000000e+00> : vector<16x32xf32>
    %107 = tpu.matmul %105, %106, %cst_88 {dimension_numbers = #tpu.dot_dimension_numbers<[1], [0], [0], [1], [0, 0, 1, 1], [], []>} : vector<16x16xbf16>, vector<16x32xbf16>, vector<16x32xf32> -> vector<16x32xf32>
    %108 = arith.truncf %107 : vector<16x32xf32> to vector<16x32xbf16>
    %c0_89 = arith.constant 0 : index
    %c1_90 = arith.constant 1 : index
    %c0_91 = arith.constant 0 : index
    %c0_92 = arith.constant 0 : index
    %109 = vector.load %arg7[%c0_89, %c1_90, %c0_91, %c0_92] : memref<2x4x32x128xbf16, #tpu.memory_space<vmem>>, vector<1x1x32x128xbf16>
    %110 = vector.shape_cast %109 : vector<1x1x32x128xbf16> to vector<32x128xbf16>
    %cst_93 = arith.constant dense<0.000000e+00> : vector<16x128xf32>
    %111 = tpu.matmul %108, %110, %cst_93 {dimension_numbers = #tpu.dot_dimension_numbers<[1], [0], [0], [1], [0, 0, 1, 1], [], []>} : vector<16x32xbf16>, vector<32x128xbf16>, vector<16x128xf32> -> vector<16x128xf32>
    %112 = arith.addf %68, %111 : vector<16x128xf32>
    %c0_94 = arith.constant 0 : index
    %c0_95 = arith.constant 0 : index
    %c2_96 = arith.constant 2 : index
    %c0_97 = arith.constant 0 : index
    %c0_98 = arith.constant 0 : index
    %113 = vector.load %arg5[%c0_94, %c0_95, %c2_96, %c0_97, %c0_98] : memref<2x3x4x128x32xbf16, #tpu.memory_space<vmem>>, vector<1x1x1x128x32xbf16>
    %114 = vector.shape_cast %113 : vector<1x1x1x128x32xbf16> to vector<128x32xbf16>
    %cst_99 = arith.constant dense<0.000000e+00> : vector<16x32xf32>
    %115 = tpu.matmul %25, %114, %cst_99 {dimension_numbers = #tpu.dot_dimension_numbers<[1], [0], [0], [1], [0, 0, 1, 1], [], []>} : vector<16x128xbf16>, vector<128x32xbf16>, vector<16x32xf32> -> vector<16x32xf32>
    %c0_100 = arith.constant 0 : index
    %c0_101 = arith.constant 0 : index
    %c2_102 = arith.constant 2 : index
    %c0_103 = arith.constant 0 : index
    %c0_104 = arith.constant 0 : index
    %116 = vector.load %arg6[%c0_100, %c0_101, %c2_102, %c0_103, %c0_104] : memref<2x3x4x1x32xf32, #tpu.memory_space<vmem>>, vector<1x1x1x1x32xf32>
    %117 = vector.shape_cast %116 : vector<1x1x1x1x32xf32> to vector<1x32xf32>
    %118 = vector.broadcast %117 : vector<1x32xf32> to vector<16x32xf32>
    %119 = arith.addf %115, %118 : vector<16x32xf32>
    %c0_105 = arith.constant 0 : index
    %c1_106 = arith.constant 1 : index
    %c2_107 = arith.constant 2 : index
    %c0_108 = arith.constant 0 : index
    %c0_109 = arith.constant 0 : index
    %120 = vector.load %arg5[%c0_105, %c1_106, %c2_107, %c0_108, %c0_109] : memref<2x3x4x128x32xbf16, #tpu.memory_space<vmem>>, vector<1x1x1x128x32xbf16>
    %121 = vector.shape_cast %120 : vector<1x1x1x128x32xbf16> to vector<128x32xbf16>
    %cst_110 = arith.constant dense<0.000000e+00> : vector<16x32xf32>
    %122 = tpu.matmul %25, %121, %cst_110 {dimension_numbers = #tpu.dot_dimension_numbers<[1], [0], [0], [1], [0, 0, 1, 1], [], []>} : vector<16x128xbf16>, vector<128x32xbf16>, vector<16x32xf32> -> vector<16x32xf32>
    %c0_111 = arith.constant 0 : index
    %c1_112 = arith.constant 1 : index
    %c2_113 = arith.constant 2 : index
    %c0_114 = arith.constant 0 : index
    %c0_115 = arith.constant 0 : index
    %123 = vector.load %arg6[%c0_111, %c1_112, %c2_113, %c0_114, %c0_115] : memref<2x3x4x1x32xf32, #tpu.memory_space<vmem>>, vector<1x1x1x1x32xf32>
    %124 = vector.shape_cast %123 : vector<1x1x1x1x32xf32> to vector<1x32xf32>
    %125 = vector.broadcast %124 : vector<1x32xf32> to vector<16x32xf32>
    %126 = arith.addf %122, %125 : vector<16x32xf32>
    %c0_116 = arith.constant 0 : index
    %c2_117 = arith.constant 2 : index
    %c2_118 = arith.constant 2 : index
    %c0_119 = arith.constant 0 : index
    %c0_120 = arith.constant 0 : index
    %127 = vector.load %arg5[%c0_116, %c2_117, %c2_118, %c0_119, %c0_120] : memref<2x3x4x128x32xbf16, #tpu.memory_space<vmem>>, vector<1x1x1x128x32xbf16>
    %128 = vector.shape_cast %127 : vector<1x1x1x128x32xbf16> to vector<128x32xbf16>
    %cst_121 = arith.constant dense<0.000000e+00> : vector<16x32xf32>
    %129 = tpu.matmul %25, %128, %cst_121 {dimension_numbers = #tpu.dot_dimension_numbers<[1], [0], [0], [1], [0, 0, 1, 1], [], []>} : vector<16x128xbf16>, vector<128x32xbf16>, vector<16x32xf32> -> vector<16x32xf32>
    %c0_122 = arith.constant 0 : index
    %c2_123 = arith.constant 2 : index
    %c2_124 = arith.constant 2 : index
    %c0_125 = arith.constant 0 : index
    %c0_126 = arith.constant 0 : index
    %130 = vector.load %arg6[%c0_122, %c2_123, %c2_124, %c0_125, %c0_126] : memref<2x3x4x1x32xf32, #tpu.memory_space<vmem>>, vector<1x1x1x1x32xf32>
    %131 = vector.shape_cast %130 : vector<1x1x1x1x32xf32> to vector<1x32xf32>
    %132 = vector.broadcast %131 : vector<1x32xf32> to vector<16x32xf32>
    %133 = arith.addf %129, %132 : vector<16x32xf32>
    %134 = arith.truncf %119 : vector<16x32xf32> to vector<16x32xbf16>
    %135 = arith.truncf %126 : vector<16x32xf32> to vector<16x32xbf16>
    %cst_127 = arith.constant dense<0.000000e+00> : vector<16x16xf32>
    %136 = tpu.matmul %134, %135, %cst_127 {dimension_numbers = #tpu.dot_dimension_numbers<[1], [1], [0], [0], [0, 0, 1, 0], [], []>} : vector<16x32xbf16>, vector<16x32xbf16>, vector<16x16xf32> -> vector<16x16xf32>
    %137 = vector.broadcast %1 : vector<1x16xf32> to vector<16x16xf32>
    %138 = arith.addf %136, %137 : vector<16x16xf32>
    %cst_128 = arith.constant dense<0xFF800000> : vector<16xf32>
    %139 = vector.multi_reduction <maximumf>, %138, %cst_128 [1] : vector<16x16xf32> to vector<16xf32>
    %140 = vector.shape_cast %139 : vector<16xf32> to vector<16x1xf32>
    %141 = vector.broadcast %140 : vector<16x1xf32> to vector<16x16xf32>
    %142 = arith.subf %138, %141 : vector<16x16xf32>
    %143 = math.exp %142 : vector<16x16xf32>
    %cst_129 = arith.constant dense<0.000000e+00> : vector<16xf32>
    %144 = vector.multi_reduction <add>, %143, %cst_129 [1] : vector<16x16xf32> to vector<16xf32>
    %145 = vector.shape_cast %144 : vector<16xf32> to vector<16x1xf32>
    %146 = tpu.reciprocal %145 {approx = true} : vector<16x1xf32> -> vector<16x1xf32>
    %147 = vector.broadcast %146 : vector<16x1xf32> to vector<16x16xf32>
    %148 = arith.mulf %143, %147 : vector<16x16xf32>
    %149 = arith.truncf %148 : vector<16x16xf32> to vector<16x16xbf16>
    %150 = arith.truncf %133 : vector<16x32xf32> to vector<16x32xbf16>
    %cst_130 = arith.constant dense<0.000000e+00> : vector<16x32xf32>
    %151 = tpu.matmul %149, %150, %cst_130 {dimension_numbers = #tpu.dot_dimension_numbers<[1], [0], [0], [1], [0, 0, 1, 1], [], []>} : vector<16x16xbf16>, vector<16x32xbf16>, vector<16x32xf32> -> vector<16x32xf32>
    %152 = arith.truncf %151 : vector<16x32xf32> to vector<16x32xbf16>
    %c0_131 = arith.constant 0 : index
    %c2_132 = arith.constant 2 : index
    %c0_133 = arith.constant 0 : index
    %c0_134 = arith.constant 0 : index
    %153 = vector.load %arg7[%c0_131, %c2_132, %c0_133, %c0_134] : memref<2x4x32x128xbf16, #tpu.memory_space<vmem>>, vector<1x1x32x128xbf16>
    %154 = vector.shape_cast %153 : vector<1x1x32x128xbf16> to vector<32x128xbf16>
    %cst_135 = arith.constant dense<0.000000e+00> : vector<16x128xf32>
    %155 = tpu.matmul %152, %154, %cst_135 {dimension_numbers = #tpu.dot_dimension_numbers<[1], [0], [0], [1], [0, 0, 1, 1], [], []>} : vector<16x32xbf16>, vector<32x128xbf16>, vector<16x128xf32> -> vector<16x128xf32>
    %156 = arith.addf %112, %155 : vector<16x128xf32>
    %c0_136 = arith.constant 0 : index
    %c0_137 = arith.constant 0 : index
    %c3 = arith.constant 3 : index
    %c0_138 = arith.constant 0 : index
    %c0_139 = arith.constant 0 : index
    %157 = vector.load %arg5[%c0_136, %c0_137, %c3, %c0_138, %c0_139] : memref<2x3x4x128x32xbf16, #tpu.memory_space<vmem>>, vector<1x1x1x128x32xbf16>
    %158 = vector.shape_cast %157 : vector<1x1x1x128x32xbf16> to vector<128x32xbf16>
    %cst_140 = arith.constant dense<0.000000e+00> : vector<16x32xf32>
    %159 = tpu.matmul %25, %158, %cst_140 {dimension_numbers = #tpu.dot_dimension_numbers<[1], [0], [0], [1], [0, 0, 1, 1], [], []>} : vector<16x128xbf16>, vector<128x32xbf16>, vector<16x32xf32> -> vector<16x32xf32>
    %c0_141 = arith.constant 0 : index
    %c0_142 = arith.constant 0 : index
    %c3_143 = arith.constant 3 : index
    %c0_144 = arith.constant 0 : index
    %c0_145 = arith.constant 0 : index
    %160 = vector.load %arg6[%c0_141, %c0_142, %c3_143, %c0_144, %c0_145] : memref<2x3x4x1x32xf32, #tpu.memory_space<vmem>>, vector<1x1x1x1x32xf32>
    %161 = vector.shape_cast %160 : vector<1x1x1x1x32xf32> to vector<1x32xf32>
    %162 = vector.broadcast %161 : vector<1x32xf32> to vector<16x32xf32>
    %163 = arith.addf %159, %162 : vector<16x32xf32>
    %c0_146 = arith.constant 0 : index
    %c1_147 = arith.constant 1 : index
    %c3_148 = arith.constant 3 : index
    %c0_149 = arith.constant 0 : index
    %c0_150 = arith.constant 0 : index
    %164 = vector.load %arg5[%c0_146, %c1_147, %c3_148, %c0_149, %c0_150] : memref<2x3x4x128x32xbf16, #tpu.memory_space<vmem>>, vector<1x1x1x128x32xbf16>
    %165 = vector.shape_cast %164 : vector<1x1x1x128x32xbf16> to vector<128x32xbf16>
    %cst_151 = arith.constant dense<0.000000e+00> : vector<16x32xf32>
    %166 = tpu.matmul %25, %165, %cst_151 {dimension_numbers = #tpu.dot_dimension_numbers<[1], [0], [0], [1], [0, 0, 1, 1], [], []>} : vector<16x128xbf16>, vector<128x32xbf16>, vector<16x32xf32> -> vector<16x32xf32>
    %c0_152 = arith.constant 0 : index
    %c1_153 = arith.constant 1 : index
    %c3_154 = arith.constant 3 : index
    %c0_155 = arith.constant 0 : index
    %c0_156 = arith.constant 0 : index
    %167 = vector.load %arg6[%c0_152, %c1_153, %c3_154, %c0_155, %c0_156] : memref<2x3x4x1x32xf32, #tpu.memory_space<vmem>>, vector<1x1x1x1x32xf32>
    %168 = vector.shape_cast %167 : vector<1x1x1x1x32xf32> to vector<1x32xf32>
    %169 = vector.broadcast %168 : vector<1x32xf32> to vector<16x32xf32>
    %170 = arith.addf %166, %169 : vector<16x32xf32>
    %c0_157 = arith.constant 0 : index
    %c2_158 = arith.constant 2 : index
    %c3_159 = arith.constant 3 : index
    %c0_160 = arith.constant 0 : index
    %c0_161 = arith.constant 0 : index
    %171 = vector.load %arg5[%c0_157, %c2_158, %c3_159, %c0_160, %c0_161] : memref<2x3x4x128x32xbf16, #tpu.memory_space<vmem>>, vector<1x1x1x128x32xbf16>
    %172 = vector.shape_cast %171 : vector<1x1x1x128x32xbf16> to vector<128x32xbf16>
    %cst_162 = arith.constant dense<0.000000e+00> : vector<16x32xf32>
    %173 = tpu.matmul %25, %172, %cst_162 {dimension_numbers = #tpu.dot_dimension_numbers<[1], [0], [0], [1], [0, 0, 1, 1], [], []>} : vector<16x128xbf16>, vector<128x32xbf16>, vector<16x32xf32> -> vector<16x32xf32>
    %c0_163 = arith.constant 0 : index
    %c2_164 = arith.constant 2 : index
    %c3_165 = arith.constant 3 : index
    %c0_166 = arith.constant 0 : index
    %c0_167 = arith.constant 0 : index
    %174 = vector.load %arg6[%c0_163, %c2_164, %c3_165, %c0_166, %c0_167] : memref<2x3x4x1x32xf32, #tpu.memory_space<vmem>>, vector<1x1x1x1x32xf32>
    %175 = vector.shape_cast %174 : vector<1x1x1x1x32xf32> to vector<1x32xf32>
    %176 = vector.broadcast %175 : vector<1x32xf32> to vector<16x32xf32>
    %177 = arith.addf %173, %176 : vector<16x32xf32>
    %178 = arith.truncf %163 : vector<16x32xf32> to vector<16x32xbf16>
    %179 = arith.truncf %170 : vector<16x32xf32> to vector<16x32xbf16>
    %cst_168 = arith.constant dense<0.000000e+00> : vector<16x16xf32>
    %180 = tpu.matmul %178, %179, %cst_168 {dimension_numbers = #tpu.dot_dimension_numbers<[1], [1], [0], [0], [0, 0, 1, 0], [], []>} : vector<16x32xbf16>, vector<16x32xbf16>, vector<16x16xf32> -> vector<16x16xf32>
    %181 = vector.broadcast %1 : vector<1x16xf32> to vector<16x16xf32>
    %182 = arith.addf %180, %181 : vector<16x16xf32>
    %cst_169 = arith.constant dense<0xFF800000> : vector<16xf32>
    %183 = vector.multi_reduction <maximumf>, %182, %cst_169 [1] : vector<16x16xf32> to vector<16xf32>
    %184 = vector.shape_cast %183 : vector<16xf32> to vector<16x1xf32>
    %185 = vector.broadcast %184 : vector<16x1xf32> to vector<16x16xf32>
    %186 = arith.subf %182, %185 : vector<16x16xf32>
    %187 = math.exp %186 : vector<16x16xf32>
    %cst_170 = arith.constant dense<0.000000e+00> : vector<16xf32>
    %188 = vector.multi_reduction <add>, %187, %cst_170 [1] : vector<16x16xf32> to vector<16xf32>
    %189 = vector.shape_cast %188 : vector<16xf32> to vector<16x1xf32>
    %190 = tpu.reciprocal %189 {approx = true} : vector<16x1xf32> -> vector<16x1xf32>
    %191 = vector.broadcast %190 : vector<16x1xf32> to vector<16x16xf32>
    %192 = arith.mulf %187, %191 : vector<16x16xf32>
    %193 = arith.truncf %192 : vector<16x16xf32> to vector<16x16xbf16>
    %194 = arith.truncf %177 : vector<16x32xf32> to vector<16x32xbf16>
    %cst_171 = arith.constant dense<0.000000e+00> : vector<16x32xf32>
    %195 = tpu.matmul %193, %194, %cst_171 {dimension_numbers = #tpu.dot_dimension_numbers<[1], [0], [0], [1], [0, 0, 1, 1], [], []>} : vector<16x16xbf16>, vector<16x32xbf16>, vector<16x32xf32> -> vector<16x32xf32>
    %196 = arith.truncf %195 : vector<16x32xf32> to vector<16x32xbf16>
    %c0_172 = arith.constant 0 : index
    %c3_173 = arith.constant 3 : index
    %c0_174 = arith.constant 0 : index
    %c0_175 = arith.constant 0 : index
    %197 = vector.load %arg7[%c0_172, %c3_173, %c0_174, %c0_175] : memref<2x4x32x128xbf16, #tpu.memory_space<vmem>>, vector<1x1x32x128xbf16>
    %198 = vector.shape_cast %197 : vector<1x1x32x128xbf16> to vector<32x128xbf16>
    %cst_176 = arith.constant dense<0.000000e+00> : vector<16x128xf32>
    %199 = tpu.matmul %196, %198, %cst_176 {dimension_numbers = #tpu.dot_dimension_numbers<[1], [0], [0], [1], [0, 0, 1, 1], [], []>} : vector<16x32xbf16>, vector<32x128xbf16>, vector<16x128xf32> -> vector<16x128xf32>
    %200 = arith.addf %156, %199 : vector<16x128xf32>
    %c0_177 = arith.constant 0 : index
    %c0_178 = arith.constant 0 : index
    %c0_179 = arith.constant 0 : index
    %201 = vector.load %arg8[%c0_177, %c0_178, %c0_179] : memref<2x1x128xf32, #tpu.memory_space<vmem>>, vector<1x1x128xf32>
    %202 = vector.shape_cast %201 : vector<1x1x128xf32> to vector<1x128xf32>
    %203 = vector.broadcast %202 : vector<1x128xf32> to vector<16x128xf32>
    %204 = arith.addf %200, %203 : vector<16x128xf32>
    %205 = arith.addf %204, %24 : vector<16x128xf32>
    %c0_180 = arith.constant 0 : index
    %c0_181 = arith.constant 0 : index
    %c0_182 = arith.constant 0 : index
    %206 = vector.load %arg9[%c0_180, %c0_181, %c0_182] : memref<2x1x128xf32, #tpu.memory_space<vmem>>, vector<1x1x128xf32>
    %207 = vector.shape_cast %206 : vector<1x1x128xf32> to vector<1x128xf32>
    %c0_183 = arith.constant 0 : index
    %c0_184 = arith.constant 0 : index
    %c0_185 = arith.constant 0 : index
    %208 = vector.load %arg10[%c0_183, %c0_184, %c0_185] : memref<2x1x128xf32, #tpu.memory_space<vmem>>, vector<1x1x128xf32>
    %209 = vector.shape_cast %208 : vector<1x1x128xf32> to vector<1x128xf32>
    %cst_186 = arith.constant dense<0.000000e+00> : vector<16xf32>
    %210 = vector.multi_reduction <add>, %205, %cst_186 [1] : vector<16x128xf32> to vector<16xf32>
    %211 = vector.shape_cast %210 : vector<16xf32> to vector<16x1xf32>
    %cst_187 = arith.constant 1.280000e+02 : f32
    %212 = vector.broadcast %cst_187 : f32 to vector<16x1xf32>
    %213 = arith.divf %211, %212 : vector<16x1xf32>
    %214 = vector.broadcast %213 : vector<16x1xf32> to vector<16x128xf32>
    %215 = arith.subf %205, %214 : vector<16x128xf32>
    %216 = arith.mulf %215, %215 : vector<16x128xf32>
    %cst_188 = arith.constant dense<0.000000e+00> : vector<16xf32>
    %217 = vector.multi_reduction <add>, %216, %cst_188 [1] : vector<16x128xf32> to vector<16xf32>
    %218 = vector.shape_cast %217 : vector<16xf32> to vector<16x1xf32>
    %cst_189 = arith.constant 1.280000e+02 : f32
    %219 = vector.broadcast %cst_189 : f32 to vector<16x1xf32>
    %220 = arith.divf %218, %219 : vector<16x1xf32>
    %cst_190 = arith.constant 9.99999996E-13 : f32
    %221 = vector.broadcast %cst_190 : f32 to vector<16x1xf32>
    %222 = arith.addf %220, %221 : vector<16x1xf32>
    %223 = math.rsqrt %222 : vector<16x1xf32>
    %224 = vector.broadcast %223 : vector<16x1xf32> to vector<16x128xf32>
    %225 = arith.mulf %215, %224 : vector<16x128xf32>
    %226 = vector.broadcast %207 : vector<1x128xf32> to vector<16x128xf32>
    %227 = arith.mulf %225, %226 : vector<16x128xf32>
    %228 = vector.broadcast %209 : vector<1x128xf32> to vector<16x128xf32>
    %229 = arith.addf %227, %228 : vector<16x128xf32>
    %230 = arith.truncf %229 : vector<16x128xf32> to vector<16x128xbf16>
    %c0_191 = arith.constant 0 : index
    %c0_192 = arith.constant 0 : index
    %c0_193 = arith.constant 0 : index
    %231 = vector.load %arg11[%c0_191, %c0_192, %c0_193] : memref<2x128x512xbf16, #tpu.memory_space<vmem>>, vector<1x128x512xbf16>
    %232 = vector.shape_cast %231 : vector<1x128x512xbf16> to vector<128x512xbf16>
    %cst_194 = arith.constant dense<0.000000e+00> : vector<16x512xf32>
    %233 = tpu.matmul %230, %232, %cst_194 {dimension_numbers = #tpu.dot_dimension_numbers<[1], [0], [0], [1], [0, 0, 1, 1], [], []>} : vector<16x128xbf16>, vector<128x512xbf16>, vector<16x512xf32> -> vector<16x512xf32>
    %c0_195 = arith.constant 0 : index
    %c0_196 = arith.constant 0 : index
    %c0_197 = arith.constant 0 : index
    %234 = vector.load %arg12[%c0_195, %c0_196, %c0_197] : memref<2x1x512xf32, #tpu.memory_space<vmem>>, vector<1x1x512xf32>
    %235 = vector.shape_cast %234 : vector<1x1x512xf32> to vector<1x512xf32>
    %236 = vector.broadcast %235 : vector<1x512xf32> to vector<16x512xf32>
    %237 = arith.addf %233, %236 : vector<16x512xf32>
    %cst_198 = arith.constant 5.000000e-01 : f32
    %238 = vector.broadcast %cst_198 : f32 to vector<16x512xf32>
    %239 = arith.mulf %238, %237 : vector<16x512xf32>
    %cst_199 = arith.constant 4.471500e-02 : f32
    %240 = vector.broadcast %cst_199 : f32 to vector<16x512xf32>
    %241 = arith.mulf %240, %237 : vector<16x512xf32>
    %242 = arith.mulf %241, %237 : vector<16x512xf32>
    %243 = arith.mulf %242, %237 : vector<16x512xf32>
    %244 = arith.addf %237, %243 : vector<16x512xf32>
    %cst_200 = arith.constant 0.797884583 : f32
    %245 = vector.broadcast %cst_200 : f32 to vector<16x512xf32>
    %246 = arith.mulf %245, %244 : vector<16x512xf32>
    %247 = math.tanh %246 : vector<16x512xf32>
    %cst_201 = arith.constant 1.000000e+00 : f32
    %248 = vector.broadcast %cst_201 : f32 to vector<16x512xf32>
    %249 = arith.addf %248, %247 : vector<16x512xf32>
    %250 = arith.mulf %239, %249 : vector<16x512xf32>
    %251 = arith.truncf %250 : vector<16x512xf32> to vector<16x512xbf16>
    %c0_202 = arith.constant 0 : index
    %c0_203 = arith.constant 0 : index
    %c0_204 = arith.constant 0 : index
    %252 = vector.load %arg13[%c0_202, %c0_203, %c0_204] : memref<2x512x128xbf16, #tpu.memory_space<vmem>>, vector<1x512x128xbf16>
    %253 = vector.shape_cast %252 : vector<1x512x128xbf16> to vector<512x128xbf16>
    %cst_205 = arith.constant dense<0.000000e+00> : vector<16x128xf32>
    %254 = tpu.matmul %251, %253, %cst_205 {dimension_numbers = #tpu.dot_dimension_numbers<[1], [0], [0], [1], [0, 0, 1, 1], [], []>} : vector<16x512xbf16>, vector<512x128xbf16>, vector<16x128xf32> -> vector<16x128xf32>
    %c0_206 = arith.constant 0 : index
    %c0_207 = arith.constant 0 : index
    %c0_208 = arith.constant 0 : index
    %255 = vector.load %arg14[%c0_206, %c0_207, %c0_208] : memref<2x1x128xf32, #tpu.memory_space<vmem>>, vector<1x1x128xf32>
    %256 = vector.shape_cast %255 : vector<1x1x128xf32> to vector<1x128xf32>
    %257 = vector.broadcast %256 : vector<1x128xf32> to vector<16x128xf32>
    %258 = arith.addf %254, %257 : vector<16x128xf32>
    %259 = arith.addf %258, %229 : vector<16x128xf32>
    %c0_209 = arith.constant 0 : index
    %c0_210 = arith.constant 0 : index
    %c0_211 = arith.constant 0 : index
    %260 = vector.load %arg15[%c0_209, %c0_210, %c0_211] : memref<2x1x128xf32, #tpu.memory_space<vmem>>, vector<1x1x128xf32>
    %261 = vector.shape_cast %260 : vector<1x1x128xf32> to vector<1x128xf32>
    %c0_212 = arith.constant 0 : index
    %c0_213 = arith.constant 0 : index
    %c0_214 = arith.constant 0 : index
    %262 = vector.load %arg16[%c0_212, %c0_213, %c0_214] : memref<2x1x128xf32, #tpu.memory_space<vmem>>, vector<1x1x128xf32>
    %263 = vector.shape_cast %262 : vector<1x1x128xf32> to vector<1x128xf32>
    %cst_215 = arith.constant dense<0.000000e+00> : vector<16xf32>
    %264 = vector.multi_reduction <add>, %259, %cst_215 [1] : vector<16x128xf32> to vector<16xf32>
    %265 = vector.shape_cast %264 : vector<16xf32> to vector<16x1xf32>
    %cst_216 = arith.constant 1.280000e+02 : f32
    %266 = vector.broadcast %cst_216 : f32 to vector<16x1xf32>
    %267 = arith.divf %265, %266 : vector<16x1xf32>
    %268 = vector.broadcast %267 : vector<16x1xf32> to vector<16x128xf32>
    %269 = arith.subf %259, %268 : vector<16x128xf32>
    %270 = arith.mulf %269, %269 : vector<16x128xf32>
    %cst_217 = arith.constant dense<0.000000e+00> : vector<16xf32>
    %271 = vector.multi_reduction <add>, %270, %cst_217 [1] : vector<16x128xf32> to vector<16xf32>
    %272 = vector.shape_cast %271 : vector<16xf32> to vector<16x1xf32>
    %cst_218 = arith.constant 1.280000e+02 : f32
    %273 = vector.broadcast %cst_218 : f32 to vector<16x1xf32>
    %274 = arith.divf %272, %273 : vector<16x1xf32>
    %cst_219 = arith.constant 9.99999996E-13 : f32
    %275 = vector.broadcast %cst_219 : f32 to vector<16x1xf32>
    %276 = arith.addf %274, %275 : vector<16x1xf32>
    %277 = math.rsqrt %276 : vector<16x1xf32>
    %278 = vector.broadcast %277 : vector<16x1xf32> to vector<16x128xf32>
    %279 = arith.mulf %269, %278 : vector<16x128xf32>
    %280 = vector.broadcast %261 : vector<1x128xf32> to vector<16x128xf32>
    %281 = arith.mulf %279, %280 : vector<16x128xf32>
    %282 = vector.broadcast %263 : vector<1x128xf32> to vector<16x128xf32>
    %283 = arith.addf %281, %282 : vector<16x128xf32>
    %284 = arith.truncf %283 : vector<16x128xf32> to vector<16x128xbf16>
    %c1_220 = arith.constant 1 : index
    %c0_221 = arith.constant 0 : index
    %c0_222 = arith.constant 0 : index
    %c0_223 = arith.constant 0 : index
    %c0_224 = arith.constant 0 : index
    %285 = vector.load %arg5[%c1_220, %c0_221, %c0_222, %c0_223, %c0_224] : memref<2x3x4x128x32xbf16, #tpu.memory_space<vmem>>, vector<1x1x1x128x32xbf16>
    %286 = vector.shape_cast %285 : vector<1x1x1x128x32xbf16> to vector<128x32xbf16>
    %cst_225 = arith.constant dense<0.000000e+00> : vector<16x32xf32>
    %287 = tpu.matmul %284, %286, %cst_225 {dimension_numbers = #tpu.dot_dimension_numbers<[1], [0], [0], [1], [0, 0, 1, 1], [], []>} : vector<16x128xbf16>, vector<128x32xbf16>, vector<16x32xf32> -> vector<16x32xf32>
    %c1_226 = arith.constant 1 : index
    %c0_227 = arith.constant 0 : index
    %c0_228 = arith.constant 0 : index
    %c0_229 = arith.constant 0 : index
    %c0_230 = arith.constant 0 : index
    %288 = vector.load %arg6[%c1_226, %c0_227, %c0_228, %c0_229, %c0_230] : memref<2x3x4x1x32xf32, #tpu.memory_space<vmem>>, vector<1x1x1x1x32xf32>
    %289 = vector.shape_cast %288 : vector<1x1x1x1x32xf32> to vector<1x32xf32>
    %290 = vector.broadcast %289 : vector<1x32xf32> to vector<16x32xf32>
    %291 = arith.addf %287, %290 : vector<16x32xf32>
    %c1_231 = arith.constant 1 : index
    %c1_232 = arith.constant 1 : index
    %c0_233 = arith.constant 0 : index
    %c0_234 = arith.constant 0 : index
    %c0_235 = arith.constant 0 : index
    %292 = vector.load %arg5[%c1_231, %c1_232, %c0_233, %c0_234, %c0_235] : memref<2x3x4x128x32xbf16, #tpu.memory_space<vmem>>, vector<1x1x1x128x32xbf16>
    %293 = vector.shape_cast %292 : vector<1x1x1x128x32xbf16> to vector<128x32xbf16>
    %cst_236 = arith.constant dense<0.000000e+00> : vector<16x32xf32>
    %294 = tpu.matmul %284, %293, %cst_236 {dimension_numbers = #tpu.dot_dimension_numbers<[1], [0], [0], [1], [0, 0, 1, 1], [], []>} : vector<16x128xbf16>, vector<128x32xbf16>, vector<16x32xf32> -> vector<16x32xf32>
    %c1_237 = arith.constant 1 : index
    %c1_238 = arith.constant 1 : index
    %c0_239 = arith.constant 0 : index
    %c0_240 = arith.constant 0 : index
    %c0_241 = arith.constant 0 : index
    %295 = vector.load %arg6[%c1_237, %c1_238, %c0_239, %c0_240, %c0_241] : memref<2x3x4x1x32xf32, #tpu.memory_space<vmem>>, vector<1x1x1x1x32xf32>
    %296 = vector.shape_cast %295 : vector<1x1x1x1x32xf32> to vector<1x32xf32>
    %297 = vector.broadcast %296 : vector<1x32xf32> to vector<16x32xf32>
    %298 = arith.addf %294, %297 : vector<16x32xf32>
    %c1_242 = arith.constant 1 : index
    %c2_243 = arith.constant 2 : index
    %c0_244 = arith.constant 0 : index
    %c0_245 = arith.constant 0 : index
    %c0_246 = arith.constant 0 : index
    %299 = vector.load %arg5[%c1_242, %c2_243, %c0_244, %c0_245, %c0_246] : memref<2x3x4x128x32xbf16, #tpu.memory_space<vmem>>, vector<1x1x1x128x32xbf16>
    %300 = vector.shape_cast %299 : vector<1x1x1x128x32xbf16> to vector<128x32xbf16>
    %cst_247 = arith.constant dense<0.000000e+00> : vector<16x32xf32>
    %301 = tpu.matmul %284, %300, %cst_247 {dimension_numbers = #tpu.dot_dimension_numbers<[1], [0], [0], [1], [0, 0, 1, 1], [], []>} : vector<16x128xbf16>, vector<128x32xbf16>, vector<16x32xf32> -> vector<16x32xf32>
    %c1_248 = arith.constant 1 : index
    %c2_249 = arith.constant 2 : index
    %c0_250 = arith.constant 0 : index
    %c0_251 = arith.constant 0 : index
    %c0_252 = arith.constant 0 : index
    %302 = vector.load %arg6[%c1_248, %c2_249, %c0_250, %c0_251, %c0_252] : memref<2x3x4x1x32xf32, #tpu.memory_space<vmem>>, vector<1x1x1x1x32xf32>
    %303 = vector.shape_cast %302 : vector<1x1x1x1x32xf32> to vector<1x32xf32>
    %304 = vector.broadcast %303 : vector<1x32xf32> to vector<16x32xf32>
    %305 = arith.addf %301, %304 : vector<16x32xf32>
    %306 = arith.truncf %291 : vector<16x32xf32> to vector<16x32xbf16>
    %307 = arith.truncf %298 : vector<16x32xf32> to vector<16x32xbf16>
    %cst_253 = arith.constant dense<0.000000e+00> : vector<16x16xf32>
    %308 = tpu.matmul %306, %307, %cst_253 {dimension_numbers = #tpu.dot_dimension_numbers<[1], [1], [0], [0], [0, 0, 1, 0], [], []>} : vector<16x32xbf16>, vector<16x32xbf16>, vector<16x16xf32> -> vector<16x16xf32>
    %309 = vector.broadcast %1 : vector<1x16xf32> to vector<16x16xf32>
    %310 = arith.addf %308, %309 : vector<16x16xf32>
    %cst_254 = arith.constant dense<0xFF800000> : vector<16xf32>
    %311 = vector.multi_reduction <maximumf>, %310, %cst_254 [1] : vector<16x16xf32> to vector<16xf32>
    %312 = vector.shape_cast %311 : vector<16xf32> to vector<16x1xf32>
    %313 = vector.broadcast %312 : vector<16x1xf32> to vector<16x16xf32>
    %314 = arith.subf %310, %313 : vector<16x16xf32>
    %315 = math.exp %314 : vector<16x16xf32>
    %cst_255 = arith.constant dense<0.000000e+00> : vector<16xf32>
    %316 = vector.multi_reduction <add>, %315, %cst_255 [1] : vector<16x16xf32> to vector<16xf32>
    %317 = vector.shape_cast %316 : vector<16xf32> to vector<16x1xf32>
    %318 = tpu.reciprocal %317 {approx = true} : vector<16x1xf32> -> vector<16x1xf32>
    %319 = vector.broadcast %318 : vector<16x1xf32> to vector<16x16xf32>
    %320 = arith.mulf %315, %319 : vector<16x16xf32>
    %321 = arith.truncf %320 : vector<16x16xf32> to vector<16x16xbf16>
    %322 = arith.truncf %305 : vector<16x32xf32> to vector<16x32xbf16>
    %cst_256 = arith.constant dense<0.000000e+00> : vector<16x32xf32>
    %323 = tpu.matmul %321, %322, %cst_256 {dimension_numbers = #tpu.dot_dimension_numbers<[1], [0], [0], [1], [0, 0, 1, 1], [], []>} : vector<16x16xbf16>, vector<16x32xbf16>, vector<16x32xf32> -> vector<16x32xf32>
    %324 = arith.truncf %323 : vector<16x32xf32> to vector<16x32xbf16>
    %c1_257 = arith.constant 1 : index
    %c0_258 = arith.constant 0 : index
    %c0_259 = arith.constant 0 : index
    %c0_260 = arith.constant 0 : index
    %325 = vector.load %arg7[%c1_257, %c0_258, %c0_259, %c0_260] : memref<2x4x32x128xbf16, #tpu.memory_space<vmem>>, vector<1x1x32x128xbf16>
    %326 = vector.shape_cast %325 : vector<1x1x32x128xbf16> to vector<32x128xbf16>
    %cst_261 = arith.constant dense<0.000000e+00> : vector<16x128xf32>
    %327 = tpu.matmul %324, %326, %cst_261 {dimension_numbers = #tpu.dot_dimension_numbers<[1], [0], [0], [1], [0, 0, 1, 1], [], []>} : vector<16x32xbf16>, vector<32x128xbf16>, vector<16x128xf32> -> vector<16x128xf32>
    %c1_262 = arith.constant 1 : index
    %c0_263 = arith.constant 0 : index
    %c1_264 = arith.constant 1 : index
    %c0_265 = arith.constant 0 : index
    %c0_266 = arith.constant 0 : index
    %328 = vector.load %arg5[%c1_262, %c0_263, %c1_264, %c0_265, %c0_266] : memref<2x3x4x128x32xbf16, #tpu.memory_space<vmem>>, vector<1x1x1x128x32xbf16>
    %329 = vector.shape_cast %328 : vector<1x1x1x128x32xbf16> to vector<128x32xbf16>
    %cst_267 = arith.constant dense<0.000000e+00> : vector<16x32xf32>
    %330 = tpu.matmul %284, %329, %cst_267 {dimension_numbers = #tpu.dot_dimension_numbers<[1], [0], [0], [1], [0, 0, 1, 1], [], []>} : vector<16x128xbf16>, vector<128x32xbf16>, vector<16x32xf32> -> vector<16x32xf32>
    %c1_268 = arith.constant 1 : index
    %c0_269 = arith.constant 0 : index
    %c1_270 = arith.constant 1 : index
    %c0_271 = arith.constant 0 : index
    %c0_272 = arith.constant 0 : index
    %331 = vector.load %arg6[%c1_268, %c0_269, %c1_270, %c0_271, %c0_272] : memref<2x3x4x1x32xf32, #tpu.memory_space<vmem>>, vector<1x1x1x1x32xf32>
    %332 = vector.shape_cast %331 : vector<1x1x1x1x32xf32> to vector<1x32xf32>
    %333 = vector.broadcast %332 : vector<1x32xf32> to vector<16x32xf32>
    %334 = arith.addf %330, %333 : vector<16x32xf32>
    %c1_273 = arith.constant 1 : index
    %c1_274 = arith.constant 1 : index
    %c1_275 = arith.constant 1 : index
    %c0_276 = arith.constant 0 : index
    %c0_277 = arith.constant 0 : index
    %335 = vector.load %arg5[%c1_273, %c1_274, %c1_275, %c0_276, %c0_277] : memref<2x3x4x128x32xbf16, #tpu.memory_space<vmem>>, vector<1x1x1x128x32xbf16>
    %336 = vector.shape_cast %335 : vector<1x1x1x128x32xbf16> to vector<128x32xbf16>
    %cst_278 = arith.constant dense<0.000000e+00> : vector<16x32xf32>
    %337 = tpu.matmul %284, %336, %cst_278 {dimension_numbers = #tpu.dot_dimension_numbers<[1], [0], [0], [1], [0, 0, 1, 1], [], []>} : vector<16x128xbf16>, vector<128x32xbf16>, vector<16x32xf32> -> vector<16x32xf32>
    %c1_279 = arith.constant 1 : index
    %c1_280 = arith.constant 1 : index
    %c1_281 = arith.constant 1 : index
    %c0_282 = arith.constant 0 : index
    %c0_283 = arith.constant 0 : index
    %338 = vector.load %arg6[%c1_279, %c1_280, %c1_281, %c0_282, %c0_283] : memref<2x3x4x1x32xf32, #tpu.memory_space<vmem>>, vector<1x1x1x1x32xf32>
    %339 = vector.shape_cast %338 : vector<1x1x1x1x32xf32> to vector<1x32xf32>
    %340 = vector.broadcast %339 : vector<1x32xf32> to vector<16x32xf32>
    %341 = arith.addf %337, %340 : vector<16x32xf32>
    %c1_284 = arith.constant 1 : index
    %c2_285 = arith.constant 2 : index
    %c1_286 = arith.constant 1 : index
    %c0_287 = arith.constant 0 : index
    %c0_288 = arith.constant 0 : index
    %342 = vector.load %arg5[%c1_284, %c2_285, %c1_286, %c0_287, %c0_288] : memref<2x3x4x128x32xbf16, #tpu.memory_space<vmem>>, vector<1x1x1x128x32xbf16>
    %343 = vector.shape_cast %342 : vector<1x1x1x128x32xbf16> to vector<128x32xbf16>
    %cst_289 = arith.constant dense<0.000000e+00> : vector<16x32xf32>
    %344 = tpu.matmul %284, %343, %cst_289 {dimension_numbers = #tpu.dot_dimension_numbers<[1], [0], [0], [1], [0, 0, 1, 1], [], []>} : vector<16x128xbf16>, vector<128x32xbf16>, vector<16x32xf32> -> vector<16x32xf32>
    %c1_290 = arith.constant 1 : index
    %c2_291 = arith.constant 2 : index
    %c1_292 = arith.constant 1 : index
    %c0_293 = arith.constant 0 : index
    %c0_294 = arith.constant 0 : index
    %345 = vector.load %arg6[%c1_290, %c2_291, %c1_292, %c0_293, %c0_294] : memref<2x3x4x1x32xf32, #tpu.memory_space<vmem>>, vector<1x1x1x1x32xf32>
    %346 = vector.shape_cast %345 : vector<1x1x1x1x32xf32> to vector<1x32xf32>
    %347 = vector.broadcast %346 : vector<1x32xf32> to vector<16x32xf32>
    %348 = arith.addf %344, %347 : vector<16x32xf32>
    %349 = arith.truncf %334 : vector<16x32xf32> to vector<16x32xbf16>
    %350 = arith.truncf %341 : vector<16x32xf32> to vector<16x32xbf16>
    %cst_295 = arith.constant dense<0.000000e+00> : vector<16x16xf32>
    %351 = tpu.matmul %349, %350, %cst_295 {dimension_numbers = #tpu.dot_dimension_numbers<[1], [1], [0], [0], [0, 0, 1, 0], [], []>} : vector<16x32xbf16>, vector<16x32xbf16>, vector<16x16xf32> -> vector<16x16xf32>
    %352 = vector.broadcast %1 : vector<1x16xf32> to vector<16x16xf32>
    %353 = arith.addf %351, %352 : vector<16x16xf32>
    %cst_296 = arith.constant dense<0xFF800000> : vector<16xf32>
    %354 = vector.multi_reduction <maximumf>, %353, %cst_296 [1] : vector<16x16xf32> to vector<16xf32>
    %355 = vector.shape_cast %354 : vector<16xf32> to vector<16x1xf32>
    %356 = vector.broadcast %355 : vector<16x1xf32> to vector<16x16xf32>
    %357 = arith.subf %353, %356 : vector<16x16xf32>
    %358 = math.exp %357 : vector<16x16xf32>
    %cst_297 = arith.constant dense<0.000000e+00> : vector<16xf32>
    %359 = vector.multi_reduction <add>, %358, %cst_297 [1] : vector<16x16xf32> to vector<16xf32>
    %360 = vector.shape_cast %359 : vector<16xf32> to vector<16x1xf32>
    %361 = tpu.reciprocal %360 {approx = true} : vector<16x1xf32> -> vector<16x1xf32>
    %362 = vector.broadcast %361 : vector<16x1xf32> to vector<16x16xf32>
    %363 = arith.mulf %358, %362 : vector<16x16xf32>
    %364 = arith.truncf %363 : vector<16x16xf32> to vector<16x16xbf16>
    %365 = arith.truncf %348 : vector<16x32xf32> to vector<16x32xbf16>
    %cst_298 = arith.constant dense<0.000000e+00> : vector<16x32xf32>
    %366 = tpu.matmul %364, %365, %cst_298 {dimension_numbers = #tpu.dot_dimension_numbers<[1], [0], [0], [1], [0, 0, 1, 1], [], []>} : vector<16x16xbf16>, vector<16x32xbf16>, vector<16x32xf32> -> vector<16x32xf32>
    %367 = arith.truncf %366 : vector<16x32xf32> to vector<16x32xbf16>
    %c1_299 = arith.constant 1 : index
    %c1_300 = arith.constant 1 : index
    %c0_301 = arith.constant 0 : index
    %c0_302 = arith.constant 0 : index
    %368 = vector.load %arg7[%c1_299, %c1_300, %c0_301, %c0_302] : memref<2x4x32x128xbf16, #tpu.memory_space<vmem>>, vector<1x1x32x128xbf16>
    %369 = vector.shape_cast %368 : vector<1x1x32x128xbf16> to vector<32x128xbf16>
    %cst_303 = arith.constant dense<0.000000e+00> : vector<16x128xf32>
    %370 = tpu.matmul %367, %369, %cst_303 {dimension_numbers = #tpu.dot_dimension_numbers<[1], [0], [0], [1], [0, 0, 1, 1], [], []>} : vector<16x32xbf16>, vector<32x128xbf16>, vector<16x128xf32> -> vector<16x128xf32>
    %371 = arith.addf %327, %370 : vector<16x128xf32>
    %c1_304 = arith.constant 1 : index
    %c0_305 = arith.constant 0 : index
    %c2_306 = arith.constant 2 : index
    %c0_307 = arith.constant 0 : index
    %c0_308 = arith.constant 0 : index
    %372 = vector.load %arg5[%c1_304, %c0_305, %c2_306, %c0_307, %c0_308] : memref<2x3x4x128x32xbf16, #tpu.memory_space<vmem>>, vector<1x1x1x128x32xbf16>
    %373 = vector.shape_cast %372 : vector<1x1x1x128x32xbf16> to vector<128x32xbf16>
    %cst_309 = arith.constant dense<0.000000e+00> : vector<16x32xf32>
    %374 = tpu.matmul %284, %373, %cst_309 {dimension_numbers = #tpu.dot_dimension_numbers<[1], [0], [0], [1], [0, 0, 1, 1], [], []>} : vector<16x128xbf16>, vector<128x32xbf16>, vector<16x32xf32> -> vector<16x32xf32>
    %c1_310 = arith.constant 1 : index
    %c0_311 = arith.constant 0 : index
    %c2_312 = arith.constant 2 : index
    %c0_313 = arith.constant 0 : index
    %c0_314 = arith.constant 0 : index
    %375 = vector.load %arg6[%c1_310, %c0_311, %c2_312, %c0_313, %c0_314] : memref<2x3x4x1x32xf32, #tpu.memory_space<vmem>>, vector<1x1x1x1x32xf32>
    %376 = vector.shape_cast %375 : vector<1x1x1x1x32xf32> to vector<1x32xf32>
    %377 = vector.broadcast %376 : vector<1x32xf32> to vector<16x32xf32>
    %378 = arith.addf %374, %377 : vector<16x32xf32>
    %c1_315 = arith.constant 1 : index
    %c1_316 = arith.constant 1 : index
    %c2_317 = arith.constant 2 : index
    %c0_318 = arith.constant 0 : index
    %c0_319 = arith.constant 0 : index
    %379 = vector.load %arg5[%c1_315, %c1_316, %c2_317, %c0_318, %c0_319] : memref<2x3x4x128x32xbf16, #tpu.memory_space<vmem>>, vector<1x1x1x128x32xbf16>
    %380 = vector.shape_cast %379 : vector<1x1x1x128x32xbf16> to vector<128x32xbf16>
    %cst_320 = arith.constant dense<0.000000e+00> : vector<16x32xf32>
    %381 = tpu.matmul %284, %380, %cst_320 {dimension_numbers = #tpu.dot_dimension_numbers<[1], [0], [0], [1], [0, 0, 1, 1], [], []>} : vector<16x128xbf16>, vector<128x32xbf16>, vector<16x32xf32> -> vector<16x32xf32>
    %c1_321 = arith.constant 1 : index
    %c1_322 = arith.constant 1 : index
    %c2_323 = arith.constant 2 : index
    %c0_324 = arith.constant 0 : index
    %c0_325 = arith.constant 0 : index
    %382 = vector.load %arg6[%c1_321, %c1_322, %c2_323, %c0_324, %c0_325] : memref<2x3x4x1x32xf32, #tpu.memory_space<vmem>>, vector<1x1x1x1x32xf32>
    %383 = vector.shape_cast %382 : vector<1x1x1x1x32xf32> to vector<1x32xf32>
    %384 = vector.broadcast %383 : vector<1x32xf32> to vector<16x32xf32>
    %385 = arith.addf %381, %384 : vector<16x32xf32>
    %c1_326 = arith.constant 1 : index
    %c2_327 = arith.constant 2 : index
    %c2_328 = arith.constant 2 : index
    %c0_329 = arith.constant 0 : index
    %c0_330 = arith.constant 0 : index
    %386 = vector.load %arg5[%c1_326, %c2_327, %c2_328, %c0_329, %c0_330] : memref<2x3x4x128x32xbf16, #tpu.memory_space<vmem>>, vector<1x1x1x128x32xbf16>
    %387 = vector.shape_cast %386 : vector<1x1x1x128x32xbf16> to vector<128x32xbf16>
    %cst_331 = arith.constant dense<0.000000e+00> : vector<16x32xf32>
    %388 = tpu.matmul %284, %387, %cst_331 {dimension_numbers = #tpu.dot_dimension_numbers<[1], [0], [0], [1], [0, 0, 1, 1], [], []>} : vector<16x128xbf16>, vector<128x32xbf16>, vector<16x32xf32> -> vector<16x32xf32>
    %c1_332 = arith.constant 1 : index
    %c2_333 = arith.constant 2 : index
    %c2_334 = arith.constant 2 : index
    %c0_335 = arith.constant 0 : index
    %c0_336 = arith.constant 0 : index
    %389 = vector.load %arg6[%c1_332, %c2_333, %c2_334, %c0_335, %c0_336] : memref<2x3x4x1x32xf32, #tpu.memory_space<vmem>>, vector<1x1x1x1x32xf32>
    %390 = vector.shape_cast %389 : vector<1x1x1x1x32xf32> to vector<1x32xf32>
    %391 = vector.broadcast %390 : vector<1x32xf32> to vector<16x32xf32>
    %392 = arith.addf %388, %391 : vector<16x32xf32>
    %393 = arith.truncf %378 : vector<16x32xf32> to vector<16x32xbf16>
    %394 = arith.truncf %385 : vector<16x32xf32> to vector<16x32xbf16>
    %cst_337 = arith.constant dense<0.000000e+00> : vector<16x16xf32>
    %395 = tpu.matmul %393, %394, %cst_337 {dimension_numbers = #tpu.dot_dimension_numbers<[1], [1], [0], [0], [0, 0, 1, 0], [], []>} : vector<16x32xbf16>, vector<16x32xbf16>, vector<16x16xf32> -> vector<16x16xf32>
    %396 = vector.broadcast %1 : vector<1x16xf32> to vector<16x16xf32>
    %397 = arith.addf %395, %396 : vector<16x16xf32>
    %cst_338 = arith.constant dense<0xFF800000> : vector<16xf32>
    %398 = vector.multi_reduction <maximumf>, %397, %cst_338 [1] : vector<16x16xf32> to vector<16xf32>
    %399 = vector.shape_cast %398 : vector<16xf32> to vector<16x1xf32>
    %400 = vector.broadcast %399 : vector<16x1xf32> to vector<16x16xf32>
    %401 = arith.subf %397, %400 : vector<16x16xf32>
    %402 = math.exp %401 : vector<16x16xf32>
    %cst_339 = arith.constant dense<0.000000e+00> : vector<16xf32>
    %403 = vector.multi_reduction <add>, %402, %cst_339 [1] : vector<16x16xf32> to vector<16xf32>
    %404 = vector.shape_cast %403 : vector<16xf32> to vector<16x1xf32>
    %405 = tpu.reciprocal %404 {approx = true} : vector<16x1xf32> -> vector<16x1xf32>
    %406 = vector.broadcast %405 : vector<16x1xf32> to vector<16x16xf32>
    %407 = arith.mulf %402, %406 : vector<16x16xf32>
    %408 = arith.truncf %407 : vector<16x16xf32> to vector<16x16xbf16>
    %409 = arith.truncf %392 : vector<16x32xf32> to vector<16x32xbf16>
    %cst_340 = arith.constant dense<0.000000e+00> : vector<16x32xf32>
    %410 = tpu.matmul %408, %409, %cst_340 {dimension_numbers = #tpu.dot_dimension_numbers<[1], [0], [0], [1], [0, 0, 1, 1], [], []>} : vector<16x16xbf16>, vector<16x32xbf16>, vector<16x32xf32> -> vector<16x32xf32>
    %411 = arith.truncf %410 : vector<16x32xf32> to vector<16x32xbf16>
    %c1_341 = arith.constant 1 : index
    %c2_342 = arith.constant 2 : index
    %c0_343 = arith.constant 0 : index
    %c0_344 = arith.constant 0 : index
    %412 = vector.load %arg7[%c1_341, %c2_342, %c0_343, %c0_344] : memref<2x4x32x128xbf16, #tpu.memory_space<vmem>>, vector<1x1x32x128xbf16>
    %413 = vector.shape_cast %412 : vector<1x1x32x128xbf16> to vector<32x128xbf16>
    %cst_345 = arith.constant dense<0.000000e+00> : vector<16x128xf32>
    %414 = tpu.matmul %411, %413, %cst_345 {dimension_numbers = #tpu.dot_dimension_numbers<[1], [0], [0], [1], [0, 0, 1, 1], [], []>} : vector<16x32xbf16>, vector<32x128xbf16>, vector<16x128xf32> -> vector<16x128xf32>
    %415 = arith.addf %371, %414 : vector<16x128xf32>
    %c1_346 = arith.constant 1 : index
    %c0_347 = arith.constant 0 : index
    %c3_348 = arith.constant 3 : index
    %c0_349 = arith.constant 0 : index
    %c0_350 = arith.constant 0 : index
    %416 = vector.load %arg5[%c1_346, %c0_347, %c3_348, %c0_349, %c0_350] : memref<2x3x4x128x32xbf16, #tpu.memory_space<vmem>>, vector<1x1x1x128x32xbf16>
    %417 = vector.shape_cast %416 : vector<1x1x1x128x32xbf16> to vector<128x32xbf16>
    %cst_351 = arith.constant dense<0.000000e+00> : vector<16x32xf32>
    %418 = tpu.matmul %284, %417, %cst_351 {dimension_numbers = #tpu.dot_dimension_numbers<[1], [0], [0], [1], [0, 0, 1, 1], [], []>} : vector<16x128xbf16>, vector<128x32xbf16>, vector<16x32xf32> -> vector<16x32xf32>
    %c1_352 = arith.constant 1 : index
    %c0_353 = arith.constant 0 : index
    %c3_354 = arith.constant 3 : index
    %c0_355 = arith.constant 0 : index
    %c0_356 = arith.constant 0 : index
    %419 = vector.load %arg6[%c1_352, %c0_353, %c3_354, %c0_355, %c0_356] : memref<2x3x4x1x32xf32, #tpu.memory_space<vmem>>, vector<1x1x1x1x32xf32>
    %420 = vector.shape_cast %419 : vector<1x1x1x1x32xf32> to vector<1x32xf32>
    %421 = vector.broadcast %420 : vector<1x32xf32> to vector<16x32xf32>
    %422 = arith.addf %418, %421 : vector<16x32xf32>
    %c1_357 = arith.constant 1 : index
    %c1_358 = arith.constant 1 : index
    %c3_359 = arith.constant 3 : index
    %c0_360 = arith.constant 0 : index
    %c0_361 = arith.constant 0 : index
    %423 = vector.load %arg5[%c1_357, %c1_358, %c3_359, %c0_360, %c0_361] : memref<2x3x4x128x32xbf16, #tpu.memory_space<vmem>>, vector<1x1x1x128x32xbf16>
    %424 = vector.shape_cast %423 : vector<1x1x1x128x32xbf16> to vector<128x32xbf16>
    %cst_362 = arith.constant dense<0.000000e+00> : vector<16x32xf32>
    %425 = tpu.matmul %284, %424, %cst_362 {dimension_numbers = #tpu.dot_dimension_numbers<[1], [0], [0], [1], [0, 0, 1, 1], [], []>} : vector<16x128xbf16>, vector<128x32xbf16>, vector<16x32xf32> -> vector<16x32xf32>
    %c1_363 = arith.constant 1 : index
    %c1_364 = arith.constant 1 : index
    %c3_365 = arith.constant 3 : index
    %c0_366 = arith.constant 0 : index
    %c0_367 = arith.constant 0 : index
    %426 = vector.load %arg6[%c1_363, %c1_364, %c3_365, %c0_366, %c0_367] : memref<2x3x4x1x32xf32, #tpu.memory_space<vmem>>, vector<1x1x1x1x32xf32>
    %427 = vector.shape_cast %426 : vector<1x1x1x1x32xf32> to vector<1x32xf32>
    %428 = vector.broadcast %427 : vector<1x32xf32> to vector<16x32xf32>
    %429 = arith.addf %425, %428 : vector<16x32xf32>
    %c1_368 = arith.constant 1 : index
    %c2_369 = arith.constant 2 : index
    %c3_370 = arith.constant 3 : index
    %c0_371 = arith.constant 0 : index
    %c0_372 = arith.constant 0 : index
    %430 = vector.load %arg5[%c1_368, %c2_369, %c3_370, %c0_371, %c0_372] : memref<2x3x4x128x32xbf16, #tpu.memory_space<vmem>>, vector<1x1x1x128x32xbf16>
    %431 = vector.shape_cast %430 : vector<1x1x1x128x32xbf16> to vector<128x32xbf16>
    %cst_373 = arith.constant dense<0.000000e+00> : vector<16x32xf32>
    %432 = tpu.matmul %284, %431, %cst_373 {dimension_numbers = #tpu.dot_dimension_numbers<[1], [0], [0], [1], [0, 0, 1, 1], [], []>} : vector<16x128xbf16>, vector<128x32xbf16>, vector<16x32xf32> -> vector<16x32xf32>
    %c1_374 = arith.constant 1 : index
    %c2_375 = arith.constant 2 : index
    %c3_376 = arith.constant 3 : index
    %c0_377 = arith.constant 0 : index
    %c0_378 = arith.constant 0 : index
    %433 = vector.load %arg6[%c1_374, %c2_375, %c3_376, %c0_377, %c0_378] : memref<2x3x4x1x32xf32, #tpu.memory_space<vmem>>, vector<1x1x1x1x32xf32>
    %434 = vector.shape_cast %433 : vector<1x1x1x1x32xf32> to vector<1x32xf32>
    %435 = vector.broadcast %434 : vector<1x32xf32> to vector<16x32xf32>
    %436 = arith.addf %432, %435 : vector<16x32xf32>
    %437 = arith.truncf %422 : vector<16x32xf32> to vector<16x32xbf16>
    %438 = arith.truncf %429 : vector<16x32xf32> to vector<16x32xbf16>
    %cst_379 = arith.constant dense<0.000000e+00> : vector<16x16xf32>
    %439 = tpu.matmul %437, %438, %cst_379 {dimension_numbers = #tpu.dot_dimension_numbers<[1], [1], [0], [0], [0, 0, 1, 0], [], []>} : vector<16x32xbf16>, vector<16x32xbf16>, vector<16x16xf32> -> vector<16x16xf32>
    %440 = vector.broadcast %1 : vector<1x16xf32> to vector<16x16xf32>
    %441 = arith.addf %439, %440 : vector<16x16xf32>
    %cst_380 = arith.constant dense<0xFF800000> : vector<16xf32>
    %442 = vector.multi_reduction <maximumf>, %441, %cst_380 [1] : vector<16x16xf32> to vector<16xf32>
    %443 = vector.shape_cast %442 : vector<16xf32> to vector<16x1xf32>
    %444 = vector.broadcast %443 : vector<16x1xf32> to vector<16x16xf32>
    %445 = arith.subf %441, %444 : vector<16x16xf32>
    %446 = math.exp %445 : vector<16x16xf32>
    %cst_381 = arith.constant dense<0.000000e+00> : vector<16xf32>
    %447 = vector.multi_reduction <add>, %446, %cst_381 [1] : vector<16x16xf32> to vector<16xf32>
    %448 = vector.shape_cast %447 : vector<16xf32> to vector<16x1xf32>
    %449 = tpu.reciprocal %448 {approx = true} : vector<16x1xf32> -> vector<16x1xf32>
    %450 = vector.broadcast %449 : vector<16x1xf32> to vector<16x16xf32>
    %451 = arith.mulf %446, %450 : vector<16x16xf32>
    %452 = arith.truncf %451 : vector<16x16xf32> to vector<16x16xbf16>
    %453 = arith.truncf %436 : vector<16x32xf32> to vector<16x32xbf16>
    %cst_382 = arith.constant dense<0.000000e+00> : vector<16x32xf32>
    %454 = tpu.matmul %452, %453, %cst_382 {dimension_numbers = #tpu.dot_dimension_numbers<[1], [0], [0], [1], [0, 0, 1, 1], [], []>} : vector<16x16xbf16>, vector<16x32xbf16>, vector<16x32xf32> -> vector<16x32xf32>
    %455 = arith.truncf %454 : vector<16x32xf32> to vector<16x32xbf16>
    %c1_383 = arith.constant 1 : index
    %c3_384 = arith.constant 3 : index
    %c0_385 = arith.constant 0 : index
    %c0_386 = arith.constant 0 : index
    %456 = vector.load %arg7[%c1_383, %c3_384, %c0_385, %c0_386] : memref<2x4x32x128xbf16, #tpu.memory_space<vmem>>, vector<1x1x32x128xbf16>
    %457 = vector.shape_cast %456 : vector<1x1x32x128xbf16> to vector<32x128xbf16>
    %cst_387 = arith.constant dense<0.000000e+00> : vector<16x128xf32>
    %458 = tpu.matmul %455, %457, %cst_387 {dimension_numbers = #tpu.dot_dimension_numbers<[1], [0], [0], [1], [0, 0, 1, 1], [], []>} : vector<16x32xbf16>, vector<32x128xbf16>, vector<16x128xf32> -> vector<16x128xf32>
    %459 = arith.addf %415, %458 : vector<16x128xf32>
    %c1_388 = arith.constant 1 : index
    %c0_389 = arith.constant 0 : index
    %c0_390 = arith.constant 0 : index
    %460 = vector.load %arg8[%c1_388, %c0_389, %c0_390] : memref<2x1x128xf32, #tpu.memory_space<vmem>>, vector<1x1x128xf32>
    %461 = vector.shape_cast %460 : vector<1x1x128xf32> to vector<1x128xf32>
    %462 = vector.broadcast %461 : vector<1x128xf32> to vector<16x128xf32>
    %463 = arith.addf %459, %462 : vector<16x128xf32>
    %464 = arith.addf %463, %283 : vector<16x128xf32>
    %c1_391 = arith.constant 1 : index
    %c0_392 = arith.constant 0 : index
    %c0_393 = arith.constant 0 : index
    %465 = vector.load %arg9[%c1_391, %c0_392, %c0_393] : memref<2x1x128xf32, #tpu.memory_space<vmem>>, vector<1x1x128xf32>
    %466 = vector.shape_cast %465 : vector<1x1x128xf32> to vector<1x128xf32>
    %c1_394 = arith.constant 1 : index
    %c0_395 = arith.constant 0 : index
    %c0_396 = arith.constant 0 : index
    %467 = vector.load %arg10[%c1_394, %c0_395, %c0_396] : memref<2x1x128xf32, #tpu.memory_space<vmem>>, vector<1x1x128xf32>
    %468 = vector.shape_cast %467 : vector<1x1x128xf32> to vector<1x128xf32>
    %cst_397 = arith.constant dense<0.000000e+00> : vector<16xf32>
    %469 = vector.multi_reduction <add>, %464, %cst_397 [1] : vector<16x128xf32> to vector<16xf32>
    %470 = vector.shape_cast %469 : vector<16xf32> to vector<16x1xf32>
    %cst_398 = arith.constant 1.280000e+02 : f32
    %471 = vector.broadcast %cst_398 : f32 to vector<16x1xf32>
    %472 = arith.divf %470, %471 : vector<16x1xf32>
    %473 = vector.broadcast %472 : vector<16x1xf32> to vector<16x128xf32>
    %474 = arith.subf %464, %473 : vector<16x128xf32>
    %475 = arith.mulf %474, %474 : vector<16x128xf32>
    %cst_399 = arith.constant dense<0.000000e+00> : vector<16xf32>
    %476 = vector.multi_reduction <add>, %475, %cst_399 [1] : vector<16x128xf32> to vector<16xf32>
    %477 = vector.shape_cast %476 : vector<16xf32> to vector<16x1xf32>
    %cst_400 = arith.constant 1.280000e+02 : f32
    %478 = vector.broadcast %cst_400 : f32 to vector<16x1xf32>
    %479 = arith.divf %477, %478 : vector<16x1xf32>
    %cst_401 = arith.constant 9.99999996E-13 : f32
    %480 = vector.broadcast %cst_401 : f32 to vector<16x1xf32>
    %481 = arith.addf %479, %480 : vector<16x1xf32>
    %482 = math.rsqrt %481 : vector<16x1xf32>
    %483 = vector.broadcast %482 : vector<16x1xf32> to vector<16x128xf32>
    %484 = arith.mulf %474, %483 : vector<16x128xf32>
    %485 = vector.broadcast %466 : vector<1x128xf32> to vector<16x128xf32>
    %486 = arith.mulf %484, %485 : vector<16x128xf32>
    %487 = vector.broadcast %468 : vector<1x128xf32> to vector<16x128xf32>
    %488 = arith.addf %486, %487 : vector<16x128xf32>
    %489 = arith.truncf %488 : vector<16x128xf32> to vector<16x128xbf16>
    %c1_402 = arith.constant 1 : index
    %c0_403 = arith.constant 0 : index
    %c0_404 = arith.constant 0 : index
    %490 = vector.load %arg11[%c1_402, %c0_403, %c0_404] : memref<2x128x512xbf16, #tpu.memory_space<vmem>>, vector<1x128x512xbf16>
    %491 = vector.shape_cast %490 : vector<1x128x512xbf16> to vector<128x512xbf16>
    %cst_405 = arith.constant dense<0.000000e+00> : vector<16x512xf32>
    %492 = tpu.matmul %489, %491, %cst_405 {dimension_numbers = #tpu.dot_dimension_numbers<[1], [0], [0], [1], [0, 0, 1, 1], [], []>} : vector<16x128xbf16>, vector<128x512xbf16>, vector<16x512xf32> -> vector<16x512xf32>
    %c1_406 = arith.constant 1 : index
    %c0_407 = arith.constant 0 : index
    %c0_408 = arith.constant 0 : index
    %493 = vector.load %arg12[%c1_406, %c0_407, %c0_408] : memref<2x1x512xf32, #tpu.memory_space<vmem>>, vector<1x1x512xf32>
    %494 = vector.shape_cast %493 : vector<1x1x512xf32> to vector<1x512xf32>
    %495 = vector.broadcast %494 : vector<1x512xf32> to vector<16x512xf32>
    %496 = arith.addf %492, %495 : vector<16x512xf32>
    %cst_409 = arith.constant 5.000000e-01 : f32
    %497 = vector.broadcast %cst_409 : f32 to vector<16x512xf32>
    %498 = arith.mulf %497, %496 : vector<16x512xf32>
    %cst_410 = arith.constant 4.471500e-02 : f32
    %499 = vector.broadcast %cst_410 : f32 to vector<16x512xf32>
    %500 = arith.mulf %499, %496 : vector<16x512xf32>
    %501 = arith.mulf %500, %496 : vector<16x512xf32>
    %502 = arith.mulf %501, %496 : vector<16x512xf32>
    %503 = arith.addf %496, %502 : vector<16x512xf32>
    %cst_411 = arith.constant 0.797884583 : f32
    %504 = vector.broadcast %cst_411 : f32 to vector<16x512xf32>
    %505 = arith.mulf %504, %503 : vector<16x512xf32>
    %506 = math.tanh %505 : vector<16x512xf32>
    %cst_412 = arith.constant 1.000000e+00 : f32
    %507 = vector.broadcast %cst_412 : f32 to vector<16x512xf32>
    %508 = arith.addf %507, %506 : vector<16x512xf32>
    %509 = arith.mulf %498, %508 : vector<16x512xf32>
    %510 = arith.truncf %509 : vector<16x512xf32> to vector<16x512xbf16>
    %c1_413 = arith.constant 1 : index
    %c0_414 = arith.constant 0 : index
    %c0_415 = arith.constant 0 : index
    %511 = vector.load %arg13[%c1_413, %c0_414, %c0_415] : memref<2x512x128xbf16, #tpu.memory_space<vmem>>, vector<1x512x128xbf16>
    %512 = vector.shape_cast %511 : vector<1x512x128xbf16> to vector<512x128xbf16>
    %cst_416 = arith.constant dense<0.000000e+00> : vector<16x128xf32>
    %513 = tpu.matmul %510, %512, %cst_416 {dimension_numbers = #tpu.dot_dimension_numbers<[1], [0], [0], [1], [0, 0, 1, 1], [], []>} : vector<16x512xbf16>, vector<512x128xbf16>, vector<16x128xf32> -> vector<16x128xf32>
    %c1_417 = arith.constant 1 : index
    %c0_418 = arith.constant 0 : index
    %c0_419 = arith.constant 0 : index
    %514 = vector.load %arg14[%c1_417, %c0_418, %c0_419] : memref<2x1x128xf32, #tpu.memory_space<vmem>>, vector<1x1x128xf32>
    %515 = vector.shape_cast %514 : vector<1x1x128xf32> to vector<1x128xf32>
    %516 = vector.broadcast %515 : vector<1x128xf32> to vector<16x128xf32>
    %517 = arith.addf %513, %516 : vector<16x128xf32>
    %518 = arith.addf %517, %488 : vector<16x128xf32>
    %c1_420 = arith.constant 1 : index
    %c0_421 = arith.constant 0 : index
    %c0_422 = arith.constant 0 : index
    %519 = vector.load %arg15[%c1_420, %c0_421, %c0_422] : memref<2x1x128xf32, #tpu.memory_space<vmem>>, vector<1x1x128xf32>
    %520 = vector.shape_cast %519 : vector<1x1x128xf32> to vector<1x128xf32>
    %c1_423 = arith.constant 1 : index
    %c0_424 = arith.constant 0 : index
    %c0_425 = arith.constant 0 : index
    %521 = vector.load %arg16[%c1_423, %c0_424, %c0_425] : memref<2x1x128xf32, #tpu.memory_space<vmem>>, vector<1x1x128xf32>
    %522 = vector.shape_cast %521 : vector<1x1x128xf32> to vector<1x128xf32>
    %cst_426 = arith.constant dense<0.000000e+00> : vector<16xf32>
    %523 = vector.multi_reduction <add>, %518, %cst_426 [1] : vector<16x128xf32> to vector<16xf32>
    %524 = vector.shape_cast %523 : vector<16xf32> to vector<16x1xf32>
    %cst_427 = arith.constant 1.280000e+02 : f32
    %525 = vector.broadcast %cst_427 : f32 to vector<16x1xf32>
    %526 = arith.divf %524, %525 : vector<16x1xf32>
    %527 = vector.broadcast %526 : vector<16x1xf32> to vector<16x128xf32>
    %528 = arith.subf %518, %527 : vector<16x128xf32>
    %529 = arith.mulf %528, %528 : vector<16x128xf32>
    %cst_428 = arith.constant dense<0.000000e+00> : vector<16xf32>
    %530 = vector.multi_reduction <add>, %529, %cst_428 [1] : vector<16x128xf32> to vector<16xf32>
    %531 = vector.shape_cast %530 : vector<16xf32> to vector<16x1xf32>
    %cst_429 = arith.constant 1.280000e+02 : f32
    %532 = vector.broadcast %cst_429 : f32 to vector<16x1xf32>
    %533 = arith.divf %531, %532 : vector<16x1xf32>
    %cst_430 = arith.constant 9.99999996E-13 : f32
    %534 = vector.broadcast %cst_430 : f32 to vector<16x1xf32>
    %535 = arith.addf %533, %534 : vector<16x1xf32>
    %536 = math.rsqrt %535 : vector<16x1xf32>
    %537 = vector.broadcast %536 : vector<16x1xf32> to vector<16x128xf32>
    %538 = arith.mulf %528, %537 : vector<16x128xf32>
    %539 = vector.broadcast %520 : vector<1x128xf32> to vector<16x128xf32>
    %540 = arith.mulf %538, %539 : vector<16x128xf32>
    %541 = vector.broadcast %522 : vector<1x128xf32> to vector<16x128xf32>
    %542 = arith.addf %540, %541 : vector<16x128xf32>
    %543 = vector.extract_strided_slice %542 {offsets = [0, 0], sizes = [1, 128], strides = [1, 1]} : vector<16x128xf32> to vector<1x128xf32>
    %544 = arith.truncf %543 : vector<1x128xf32> to vector<1x128xbf16>
    %c0_431 = arith.constant 0 : index
    %c0_432 = arith.constant 0 : index
    %545 = vector.load %arg17[%c0_431, %c0_432] : memref<128x128xbf16, #tpu.memory_space<vmem>>, vector<128x128xbf16>
    %cst_433 = arith.constant dense<0.000000e+00> : vector<1x128xf32>
    %546 = tpu.matmul %544, %545, %cst_433 {dimension_numbers = #tpu.dot_dimension_numbers<[1], [0], [0], [1], [0, 0, 1, 1], [], []>} : vector<1x128xbf16>, vector<128x128xbf16>, vector<1x128xf32> -> vector<1x128xf32>
    %c0_434 = arith.constant 0 : index
    %c0_435 = arith.constant 0 : index
    %547 = vector.load %arg18[%c0_434, %c0_435] : memref<1x128xf32, #tpu.memory_space<vmem>>, vector<1x128xf32>
    %548 = arith.addf %546, %547 : vector<1x128xf32>
    %549 = math.tanh %548 : vector<1x128xf32>
    %550 = arith.truncf %549 : vector<1x128xf32> to vector<1x128xbf16>
    %c0_436 = arith.constant 0 : index
    %c0_437 = arith.constant 0 : index
    %551 = vector.load %arg19[%c0_436, %c0_437] : memref<128x3xbf16, #tpu.memory_space<vmem>>, vector<128x3xbf16>
    %cst_438 = arith.constant dense<0.000000e+00> : vector<1x3xf32>
    %552 = tpu.matmul %550, %551, %cst_438 {dimension_numbers = #tpu.dot_dimension_numbers<[1], [0], [0], [1], [0, 0, 1, 1], [], []>} : vector<1x128xbf16>, vector<128x3xbf16>, vector<1x3xf32> -> vector<1x3xf32>
    %c0_439 = arith.constant 0 : index
    %c0_440 = arith.constant 0 : index
    %553 = vector.load %arg20[%c0_439, %c0_440] : memref<1x3xf32, #tpu.memory_space<vmem>>, vector<1x3xf32>
    %554 = arith.addf %552, %553 : vector<1x3xf32>
    %c0_441 = arith.constant 0 : index
    %c0_442 = arith.constant 0 : index
    %c0_443 = arith.constant 0 : index
    %555 = vector.load %arg21[%c0_441, %c0_442, %c0_443] : memref<1x1x3xf32, #tpu.memory_space<vmem>>, vector<1x1x3xf32>
    %556 = vector.shape_cast %555 : vector<1x1x3xf32> to vector<1x3xf32>
    %557 = vector.shape_cast %554 : vector<1x3xf32> to vector<1x1x3xf32>
    tpu.vector_store %arg21[%c0_441, %c0_442, %c0_443], %557 {strides = array<i32>} : memref<1x1x3xf32, #tpu.memory_space<vmem>>, vector<1x1x3xf32>,
    return
  }
  func.func @transform_0(%arg0: i32) -> (i32, i32) {
    %c0_i32 = arith.constant 0 : i32
    %c0_i32_0 = arith.constant 0 : i32
    return %arg0, %c0_i32 : i32, i32
  }
  func.func @transform_1(%arg0: i32) -> (i32, i32, i32) {
    %c0_i32 = arith.constant 0 : i32
    %c0_i32_0 = arith.constant 0 : i32
    %c0_i32_1 = arith.constant 0 : i32
    return %arg0, %c0_i32, %c0_i32_0 : i32, i32, i32
  }
  func.func @transform_2(%arg0: i32) -> (i32, i32) {
    %c0_i32 = arith.constant 0 : i32
    %c0_i32_0 = arith.constant 0 : i32
    %c0_i32_1 = arith.constant 0 : i32
    return %c0_i32, %c0_i32_0 : i32, i32
  }
  func.func @transform_3(%arg0: i32) -> (i32, i32) {
    %c0_i32 = arith.constant 0 : i32
    %c0_i32_0 = arith.constant 0 : i32
    %c0_i32_1 = arith.constant 0 : i32
    return %c0_i32, %c0_i32_0 : i32, i32
  }
  func.func @transform_4(%arg0: i32) -> (i32, i32, i32, i32, i32) {
    %c0_i32 = arith.constant 0 : i32
    %c0_i32_0 = arith.constant 0 : i32
    %c0_i32_1 = arith.constant 0 : i32
    %c0_i32_2 = arith.constant 0 : i32
    %c0_i32_3 = arith.constant 0 : i32
    %c0_i32_4 = arith.constant 0 : i32
    return %c0_i32, %c0_i32_0, %c0_i32_1, %c0_i32_2, %c0_i32_3 : i32, i32, i32, i32, i32
  }
  func.func @transform_5(%arg0: i32) -> (i32, i32, i32, i32, i32) {
    %c0_i32 = arith.constant 0 : i32
    %c0_i32_0 = arith.constant 0 : i32
    %c0_i32_1 = arith.constant 0 : i32
    %c0_i32_2 = arith.constant 0 : i32
    %c0_i32_3 = arith.constant 0 : i32
    %c0_i32_4 = arith.constant 0 : i32
    return %c0_i32, %c0_i32_0, %c0_i32_1, %c0_i32_2, %c0_i32_3 : i32, i32, i32, i32, i32
  }
  func.func @transform_6(%arg0: i32) -> (i32, i32, i32, i32) {
    %c0_i32 = arith.constant 0 : i32
    %c0_i32_0 = arith.constant 0 : i32
    %c0_i32_1 = arith.constant 0 : i32
    %c0_i32_2 = arith.constant 0 : i32
    %c0_i32_3 = arith.constant 0 : i32
    return %c0_i32, %c0_i32_0, %c0_i32_1, %c0_i32_2 : i32, i32, i32, i32
  }
  func.func @transform_7(%arg0: i32) -> (i32, i32, i32) {
    %c0_i32 = arith.constant 0 : i32
    %c0_i32_0 = arith.constant 0 : i32
    %c0_i32_1 = arith.constant 0 : i32
    %c0_i32_2 = arith.constant 0 : i32
    return %c0_i32, %c0_i32_0, %c0_i32_1 : i32, i32, i32
  }
  func.func @transform_8(%arg0: i32) -> (i32, i32, i32) {
    %c0_i32 = arith.constant 0 : i32
    %c0_i32_0 = arith.constant 0 : i32
    %c0_i32_1 = arith.constant 0 : i32
    %c0_i32_2 = arith.constant 0 : i32
    return %c0_i32, %c0_i32_0, %c0_i32_1 : i32, i32, i32
  }
  func.func @transform_9(%arg0: i32) -> (i32, i32, i32) {
    %c0_i32 = arith.constant 0 : i32
    %c0_i32_0 = arith.constant 0 : i32
    %c0_i32_1 = arith.constant 0 : i32
    %c0_i32_2 = arith.constant 0 : i32
    return %c0_i32, %c0_i32_0, %c0_i32_1 : i32, i32, i32
  }
  func.func @transform_10(%arg0: i32) -> (i32, i32, i32) {
    %c0_i32 = arith.constant 0 : i32
    %c0_i32_0 = arith.constant 0 : i32
    %c0_i32_1 = arith.constant 0 : i32
    %c0_i32_2 = arith.constant 0 : i32
    return %c0_i32, %c0_i32_0, %c0_i32_1 : i32, i32, i32
  }
  func.func @transform_11(%arg0: i32) -> (i32, i32, i32) {
    %c0_i32 = arith.constant 0 : i32
    %c0_i32_0 = arith.constant 0 : i32
    %c0_i32_1 = arith.constant 0 : i32
    %c0_i32_2 = arith.constant 0 : i32
    return %c0_i32, %c0_i32_0, %c0_i32_1 : i32, i32, i32
  }
  func.func @transform_12(%arg0: i32) -> (i32, i32, i32) {
    %c0_i32 = arith.constant 0 : i32
    %c0_i32_0 = arith.constant 0 : i32
    %c0_i32_1 = arith.constant 0 : i32
    %c0_i32_2 = arith.constant 0 : i32
    return %c0_i32, %c0_i32_0, %c0_i32_1 : i32, i32, i32
  }
  func.func @transform_13(%arg0: i32) -> (i32, i32, i32) {
    %c0_i32 = arith.constant 0 : i32
    %c0_i32_0 = arith.constant 0 : i32
    %c0_i32_1 = arith.constant 0 : i32
    %c0_i32_2 = arith.constant 0 : i32
    return %c0_i32, %c0_i32_0, %c0_i32_1 : i32, i32, i32
  }
  func.func @transform_14(%arg0: i32) -> (i32, i32, i32) {
    %c0_i32 = arith.constant 0 : i32
    %c0_i32_0 = arith.constant 0 : i32
    %c0_i32_1 = arith.constant 0 : i32
    %c0_i32_2 = arith.constant 0 : i32
    return %c0_i32, %c0_i32_0, %c0_i32_1 : i32, i32, i32
  }
  func.func @transform_15(%arg0: i32) -> (i32, i32, i32) {
    %c0_i32 = arith.constant 0 : i32
    %c0_i32_0 = arith.constant 0 : i32
    %c0_i32_1 = arith.constant 0 : i32
    %c0_i32_2 = arith.constant 0 : i32
    return %c0_i32, %c0_i32_0, %c0_i32_1 : i32, i32, i32
  }
  func.func @transform_16(%arg0: i32) -> (i32, i32) {
    %c0_i32 = arith.constant 0 : i32
    %c0_i32_0 = arith.constant 0 : i32
    %c0_i32_1 = arith.constant 0 : i32
    return %c0_i32, %c0_i32_0 : i32, i32
  }
  func.func @transform_17(%arg0: i32) -> (i32, i32) {
    %c0_i32 = arith.constant 0 : i32
    %c0_i32_0 = arith.constant 0 : i32
    %c0_i32_1 = arith.constant 0 : i32
    return %c0_i32, %c0_i32_0 : i32, i32
  }
  func.func @transform_18(%arg0: i32) -> (i32, i32) {
    %c0_i32 = arith.constant 0 : i32
    %c0_i32_0 = arith.constant 0 : i32
    %c0_i32_1 = arith.constant 0 : i32
    return %c0_i32, %c0_i32_0 : i32, i32
  }
  func.func @transform_19(%arg0: i32) -> (i32, i32) {
    %c0_i32 = arith.constant 0 : i32
    %c0_i32_0 = arith.constant 0 : i32
    %c0_i32_1 = arith.constant 0 : i32
    return %c0_i32, %c0_i32_0 : i32, i32
  }
  func.func @transform_20(%arg0: i32) -> (i32, i32, i32) {
    %c0_i32 = arith.constant 0 : i32
    %c0_i32_0 = arith.constant 0 : i32
    %c0_i32_1 = arith.constant 0 : i32
    return %arg0, %c0_i32, %c0_i32_0 : i32, i32, i32
  }
}

</mosaic_0001>

<bundles_post_ra>
// kernel: tpu_custom_call.1
= control target key start
LH: loop header
LB: loop body
LE: loop exit
PB: predicated region body
PF: predicated region fallthrough
CT: control target
= control target key end

     0   :  { %s11442_s0 = inlined_call_operand.vmem [shape: f32[32,128], index: 0, kind: input, shape index: {}]   ;;  %s11443_s1 = inlined_call_operand.vmem [shape: f32[2,1,16], index: 1, kind: input, shape index: {}]   ;;  %s11444_s2 = inlined_call_operand.vmem [shape: f32[1,128], index: 2, kind: input, shape index: {}]   ;;  %s11445_s3 = inlined_call_operand.vmem [shape: f32[1,128], index: 3, kind: input, shape index: {}]   ;;  %s11446_s4 = inlined_call_operand.vmem [shape: bf16[2,3,4,128,32], index: 4, kind: input, shape index: {}]   ;;  %s11447_s5 = inlined_call_operand.vmem [shape: f32[2,3,4,1,32], index: 5, kind: input, shape index: {}]   ;;  %s11448_s6 = inlined_call_operand.vmem [shape: bf16[2,4,32,128], index: 6, kind: input, shape index: {}]   ;;  %s11449_s7 = inlined_call_operand.vmem [shape: f32[2,1,128], index: 7, kind: input, shape index: {}]   ;;  %s11450_s8 = inlined_call_operand.vmem [shape: f32[2,1,128], index: 8, kind: input, shape index: {}]   ;;  %s11451_s9 = inlined_call_operand.vmem [shape: f32[2,1,128], index: 9, kind: input, shape index: {}]   ;;  %s11452_s10 = inlined_call_operand.vmem [shape: bf16[2,128,512], index: 10, kind: input, shape index: {}]   ;;  %s11453_s11 = inlined_call_operand.vmem [shape: f32[2,1,512], index: 11, kind: input, shape index: {}]   ;;  %s11454_s12 = inlined_call_operand.vmem [shape: bf16[2,512,128], index: 12, kind: input, shape index: {}]   ;;  %s11455_s13 = inlined_call_operand.vmem [shape: f32[2,1,128], index: 13, kind: input, shape index: {}]   ;;  %s11456_s14 = inlined_call_operand.vmem [shape: f32[2,1,128], index: 14, kind: input, shape index: {}]   ;;  %s11457_s15 = inlined_call_operand.vmem [shape: f32[2,1,128], index: 15, kind: input, shape index: {}]   ;;  %s11458_s16 = inlined_call_operand.vmem [shape: bf16[128,128], index: 16, kind: input, shape index: {}]   ;;  %s11459_s17 = inlined_call_operand.vmem [shape: f32[1,128], index: 17, kind: input, shape index: {}]   ;;  %s11460_s18 = inlined_call_operand.vmem [shape: bf16[128,3], index: 18, kind: input, shape index: {}]   ;;  %s11461_s19 = inlined_call_operand.vmem [shape: f32[1,3], index: 19, kind: input, shape index: {}]   ;;  %s11462_s20 = inlined_call_operand.hbm [shape: f32[2,1,3], index: 20, kind: output, shape index: {}]  }
   0x1   :  { %11473 = sst [smem:[#allocation12_spill]] %s11442_s0 }
   0x2   :  { %11474 = sst [smem:[#allocation13_spill]] %s11443_s1 }
   0x3   :  { %11475 = sst [smem:[#allocation14_spill]] %s11444_s2 }
   0x4   :  { %11476 = sst [smem:[#allocation15_spill]] %s11445_s3 }
   0x5   :  { %11477 = sst [smem:[#allocation16_spill]] %s11446_s4 }
   0x6   :  { %11478 = sst [smem:[#allocation17_spill]] %s11462_s20 }
   0x7   :  { %25 = vsyncpa [#allocation3], 0 }
   0x8   :  { %27 = vsyncpa [#allocation3 + $0x1], 0  ;;  %s9506_s1 = smov 0   ;;  %s9508_s22 = smov 0  }
   0x9   :  { %s9510_s23 = smov 0   ;;  %s9512_s24 = smov 0  }
   0xa LB: > { %11479 = sst [smem:[#allocation5_spill]] %s9383_s1  ;;  %s9527_s2 = sadd.s32 4294967295, %s9395_s24   ;;  %s9395_s24 = sphi %s9512_s24, %s11498_s24   ;;  %s9391_s23 = sphi %s9510_s23, %s11500_s23   ;;  %s9387_s22 = sphi %s9508_s22, %s11502_s22   ;;  %s9383_s1 = sphi %s9506_s1, %s11501_s1  }
   0xb   : > { %11480 = sst [smem:[#allocation6_spill]] %s9391_s23  ;;  %s6786_s25 = sadd.s32 4294967294, %s9395_s24  }
   0xc   : > { %11481 = sst [smem:[#allocation7_spill]] %s9395_s24  ;;  %s9531_s3 = sadd.s32 1, %s9395_s24  }
   0xd   : > { %11482 = sst [smem:[#allocation8_spill]] %s9531_s3  ;;  %s470_s26 = sadd.s32 1, %s9391_s23 }
   0xe   : > { %s467_s27 = ssub.s32 %s9395_s24, %s9531_s3  ;;  %p480_p0 = scmp.ne.s32.totalorder %s9391_s23, %s9387_s22 }
   0xf   : > { %p468_p1 = scmp.eq.s32.totalorder %s467_s27, 0  ;;  %p481_p2 = scmp.eq.s32.totalorder %s9527_s2, 1 }
  0x10   : > { %p486_p3 = scmp.ne.s32.totalorder %s9387_s22, %s9383_s1  ;;  %p487_p4 = scmp.eq.s32.totalorder %s6786_s25, 1 }
  0x11   : > { %s9542_s28 = scalar_select %p468_p1, %s9391_s23, %s470_s26  }
  0x12   : > { %p9544_p5 = por %p481_p2, %p480_p0  ;;  %p9548_p6 = por %p487_p4, %p486_p3 }
  0x13   : > { %11483 = sst [smem:[#allocation9_spill]] %s9542_s28  ;;  %p6789_p7 = scmp.ge.s32.totalorder %s9395_s24, 1 }
  0x14   : > { %s11484_s4 = scalar_select %p9544_p5, 1, 0 }
  0x15   : > { %s11486_s29 = scalar_select %p9548_p6, 1, 0 }
  0x16   : > { %11485 = sst [smem:[#allocation10_spill]] %s11484_s4  ;;  %p574_p8 = scmp.lt.s32.totalorder %s9395_s24, 3 }
  0x17   : > { %11487 = sst [smem:[#allocation11_spill]] %s11486_s29 }
  0x18   : > { %p575_p9 = pnand %p6789_p7, %p574_p8 }
  0x19   : > { %s6790_s30 = sshll.u32 (!%p575_p9), %s9527_s2, 1  ;;  %s11488_s26 = sld [smem:[#allocation12_spill]] (!%p575_p9)  ;;  %v9397_v4 = vmov (!%p575_p9), 0.0   ;;  %vm9398_vm0 = vmmov (!%p575_p9), 0   ;;  %v6794_v60 = vld [vmem:[%s11447_s5] ss:$0 sm:$0xff] (!%p575_p9) }
  0x1a   : > { %578 = sbr.rel (%p575_p9) target bundleno = 10943 (0x2abf), region = 100  ;;  %p635_p10 = scmp.lt.s32.totalorder (!%p575_p9), %s6790_s30, 3  ;;  %8110 = vmatprep.subr.bf16.mxu0 (!%p575_p9), %v9397_v4  ;;  %8130 = vmatprep.subr.bf16.mxu1 (!%p575_p9), %v9397_v4  ;;  %v6820_v62 = vld [vmem:[%s11447_s5 + $0x4] ss:$0 sm:$0xff] (!%p575_p9)  ;;  %vm1037_vm1 = vcmask (!%p575_p9), 261120   ;;  %vm1085_vm2 = vcmask (!%p575_p9), 130048  }
  0x1b   : > { %s11489_s3 = sld [smem:[#allocation16_spill]] (!%p575_p9)  ;;  %8126 = vmatprep.mubr.msk.bf16.mxu0 (!%p575_p9), %vm9398_vm0, %v9397_v4  ;;  %8146 = vmatprep.mubr.msk.bf16.mxu1 (!%p575_p9), %vm9398_vm0, %v9397_v4  ;;  %s11491_s23 = sld [smem:[#allocation15_spill]] (!%p575_p9)  ;;  %vm6707_vm3 = vcmask (!%p575_p9), 16384  }
  0x1c   : > { %p640_p11 = scmp.lt.s32.totalorder (!%p575_p9), %s9527_s2, 1  ;;  %s11492_s25 = sld [smem:[#allocation13_spill]] (!%p575_p9) }
  0x1d   : > { %s632_s1 = sand.u32 (!%p575_p9), 1, %s9387_s22   ;;  %s7729_s24 = sshll.u32 (!%p575_p9), %s9527_s2, 4 }
  0x1e   : > { %s633_s4 = scalar_lea.vmem (!%p575_p9), [#allocation2], %s632_s1  ;;  %s9400_s21 = smov (!%p575_p9), [#allocation2]  }
  0x21   : > { %s11504_s30 = smov (!%p635_p10, %s6790_s30), 3  ;;  %v8832_v2 = vld [vmem:[%s11489_s3] sm:$0xff]   ;;  %v8834_v5 = vld [vmem:[%s11489_s3 + $0x8] sm:$0xff]   ;;  %v8836_v15 = vld [vmem:[%s11489_s3 + $0x10] sm:$0xff]  }
  0x22   : > { %s6791_s0 = sshll.u32 %s11504_s30, 3  ;;  %v8833_v3 = vld [vmem:[%s11489_s3 + $0x100] sm:$0xff]   ;;  %8111 = vmatpush3.bf16.msra.mxu0 %v8832_v2  ;;  %v8835_v14 = vld [vmem:[%s11489_s3 + $0x108] sm:$0xff]   ;;  %v8837_v16 = vld [vmem:[%s11489_s3 + $0x110] sm:$0xff]   ;;  %s11490_s30 = sld [smem:[#allocation14_spill]] }
  0x23   : > { %s638_s27 = scalar_lea.vmem %s11488_s26, %s6791_s0  ;;  %8131 = vmatpush3.bf16.msra.mxu1 %v8833_v3  ;;  %8112 = vmatprep.subr.bf16.mxu0 %v9397_v4  ;;  %v8838_v17 = vld [vmem:[%s11489_s3 + $0x18] sm:$0xff]   ;;  %v8840_v19 = vld [vmem:[%s11489_s3 + $0x20] sm:$0xff]   ;;  %v8842_v21 = vld [vmem:[%s11489_s3 + $0x28] sm:$0xff]  }
  0x24   : > { %v645_v0 = vld [vmem:[%s638_s27] sm:$0xff]  ;;  %v646_v1 = vld [vmem:[%s638_s27 + $0x8] sm:$0xff]  ;;  %8132 = vmatprep.subr.bf16.mxu1 %v9397_v4  ;;  %v8839_v18 = vld [vmem:[%s11489_s3 + $0x118] sm:$0xff]   ;;  %s641_s28 = scalar_select %p640_p11, %s9527_s2, 1 }
  0x25   : > { %649 = vadd.xlane.f32.xlu0 %v645_v0  ;;  %v8841_v20 = vld [vmem:[%s11489_s3 + $0x120] sm:$0xff]   ;;  %v8843_v22 = vld [vmem:[%s11489_s3 + $0x128] sm:$0xff]   ;;  %v8844_v23 = vld [vmem:[%s11489_s3 + $0x30] sm:$0xff]   ;;  %s6710_s2 = scalar_lea.sflag [#allocation3], %s632_s1 }
  0x26   : > { %8113 = vmatpush3.bf16.msra.mxu0 %v8834_v5  ;;  %v8845_v24 = vld [vmem:[%s11489_s3 + $0x130] sm:$0xff]   ;;  %v8846_v25 = vld [vmem:[%s11489_s3 + $0x38] sm:$0xff]   ;;  %v6793_v39 = vld [vmem:[%s11491_s23] ss:$0 sm:$0xff]  ;;  %s9743_s26 = scalar_lea.vmem %s11492_s25, %s641_s28  ;;  %s6722_s28 = sshll.u32 %s633_s4, 4  ;;  %s11402_s28 = int_to_ptr.vmem [resolvable:$true] %s6722_s28 }
  0x27   : > { %8114 = vmatprep.subr.bf16.mxu0 %v9397_v4  ;;  %8133 = vmatpush3.bf16.msra.mxu1 %v8835_v14  ;;  %v8847_v26 = vld [vmem:[%s11489_s3 + $0x138] sm:$0xff]   ;;  %v8848_v43 = vld [vmem:[%s11489_s3 + $0x200] sm:$0xff]   ;;  %v8849_v45 = vld [vmem:[%s11489_s3 + $0x208] sm:$0xff]   ;;  %s11494_s25 = sld [smem:[#allocation17_spill]]  ;;  %s9337_s23 = sshll.u32 %s9400_s21, 4  ;;  %s9338_s23 = int_to_ptr.vmem [resolvable:$false] %s9337_s23 }
  0x28   : > { %8134 = vmatprep.subr.bf16.mxu1 %v9397_v4  ;;  %v6792_v35 = vld [vmem:[%s11490_s30] ss:$0 sm:$0xff]  ;;  %v8850_v46 = vld [vmem:[%s11489_s3 + $0x210] sm:$0xff]   ;;  %v8851_v47 = vld [vmem:[%s11489_s3 + $0x218] sm:$0xff]   ;;  %s9333_s30 = scalar_lea.vmem %s11402_s28, 16  ;;  %p9340_p1 = scmp.lt.s32.totalorder %s11402_s28, %s9338_s23 }
  0x29   : > { %651 = vadd.xlane.f32.xlu0 %v646_v1  ;;  %v8852_v48 = vld [vmem:[%s11489_s3 + $0x220] sm:$0xff]   ;;  %v8853_v49 = vld [vmem:[%s11489_s3 + $0x228] sm:$0xff]   ;;  %v8854_v50 = vld [vmem:[%s11489_s3 + $0x230] sm:$0xff]   ;;  %p9334_p12 = scmp.ne.s32.totalorder %s11402_s28, %s9333_s30 }
  0x2a   : > { %8115 = vmatpush3.bf16.msra.mxu0 %v8836_v15  ;;  %v8855_v51 = vld [vmem:[%s11489_s3 + $0x238] sm:$0xff]   ;;  %v8856_v52 = vld [vmem:[%s11489_s3 + $0x140] sm:$0xff]   ;;  %v8857_v53 = vld [vmem:[%s11489_s3 + $0x148] sm:$0xff]  }
  0x2b   : > { %8135 = vmatpush3.bf16.msra.mxu1 %v8837_v16  ;;  %8116 = vmatprep.subr.bf16.mxu0 %v9397_v4  ;;  %v8858_v54 = vld [vmem:[%s11489_s3 + $0x150] sm:$0xff]   ;;  %v8859_v55 = vld [vmem:[%s11489_s3 + $0x158] sm:$0xff]   ;;  %v8860_v56 = vld [vmem:[%s11489_s3 + $0x160] sm:$0xff]   ;;  %p9335_p13 = pnand %p9334_p12, %p9544_p5 }
  0x2c   : > { %8136 = vmatprep.subr.bf16.mxu1 %v9397_v4  ;;  %v8861_v57 = vld [vmem:[%s11489_s3 + $0x168] sm:$0xff]   ;;  %v8862_v58 = vld [vmem:[%s11489_s3 + $0x170] sm:$0xff]   ;;  %v8863_v59 = vld [vmem:[%s11489_s3 + $0x178] sm:$0xff]  }
  0x2d   : > { %v6846_v14 = vld [vmem:[%s11447_s5 + $0x8] ss:$0 sm:$0xff]  ;;  %s11400_s27 = scalar_lea.hbm %s11494_s25, %s7729_s24  ;;  %p9336_p0 = pneg %p9335_p13 }
  0x2e   : > { %8117 = vmatpush3.bf16.msra.mxu0 %v8838_v17 }
  0x2f   : > { %8137 = vmatpush3.bf16.msra.mxu1 %v8839_v18  ;;  %8118 = vmatprep.subr.bf16.mxu0 %v9397_v4 }
  0x30   : > { %8138 = vmatprep.subr.bf16.mxu1 %v9397_v4 }
  0x32   : > { %8119 = vmatpush3.bf16.msra.mxu0 %v8840_v19 }
  0x33   : > { %8139 = vmatpush3.bf16.msra.mxu1 %v8841_v20  ;;  %8120 = vmatprep.subr.bf16.mxu0 %v9397_v4 }
  0x34   : > { %8140 = vmatprep.subr.bf16.mxu1 %v9397_v4 }
  0x36   : > { %8121 = vmatpush3.bf16.msra.mxu0 %v8842_v21 }
  0x37   : > { %8141 = vmatpush3.bf16.msra.mxu1 %v8843_v22  ;;  %8122 = vmatprep.subr.bf16.mxu0 %v9397_v4  ;;  %v6901_v22 = vld [vmem:[%s11447_s5 + $0x5] ss:$0 sm:$0xff] }
  0x38   : > { %8142 = vmatprep.subr.bf16.mxu1 %v9397_v4 }
  0x3a   : > { %8123 = vmatpush3.bf16.msra.mxu0 %v8844_v23 }
  0x3b   : > { %8143 = vmatpush3.bf16.msra.mxu1 %v8845_v24  ;;  %8124 = vmatprep.subr.bf16.mxu0 %v9397_v4 }
  0x3c   : > { %8144 = vmatprep.subr.bf16.mxu1 %v9397_v4 }
  0x3e   : > { %8125 = vmatpush3.bf16.msra.mxu0 %v8846_v25 }
  0x3f   : > { %8145 = vmatpush3.bf16.msra.mxu1 %v8847_v26  ;;  %8150 = vmatprep.subr.bf16.mxu0 %v9397_v4 }
  0x40   : > { %8170 = vmatprep.subr.bf16.mxu1 %v9397_v4 }
  0xb2   : > { %v650_v6 = vpop.xlane.xlu0 %649 }
  0xb3   : > { %v654_v7 = vmul.f32 0.0078125, %v650_v6 }
  0xb5   : > { %v656_v8 = vsub.f32 %v645_v0, %v654_v7 }
  0xb6   : > { %v652_v9 = vpop.xlane.xlu0 %651 }
  0xb7   : > { %v655_v10 = vmul.f32 0.0078125, %v652_v9  ;;  %v658_v11 = vmul.f32 %v656_v8, %v656_v8 }
  0xb9   : > { %v657_v12 = vsub.f32 %v646_v1, %v655_v10  ;;  %660 = vadd.xlane.f32.xlu1 %v658_v11 }
  0xbb   : > { %v659_v13 = vmul.f32 %v657_v12, %v657_v12 }
  0xbd   : > { %662 = vadd.xlane.f32.xlu1 %v659_v13 }
 0x146   : > { %v661_v27 = vpop.xlane.xlu1 %660 }
 0x147   : > { %v664_v28 = vmul.f32 0.0078125, %v661_v27 }
 0x149   : > { %v666_v29 = vadd.f32 1e-12, %v664_v28 }
 0x14a   : > { %v663_v30 = vpop.xlane.xlu1 %662 }
 0x14b   : > { %9216 = vrsqrt.f32 %v666_v29  ;;  %v665_v31 = vmul.f32 0.0078125, %v663_v30 }
 0x14d   : > { %v667_v32 = vadd.f32 1e-12, %v665_v31  ;;  %v9746_v31 = vld [vmem:[%s9743_s26] ss:$0 sm:$0xff] }
 0x14f   : > { %9218 = vrsqrt.f32 %v667_v32 }
 0x155   : > { %v9217_v33 = vpop.eup %9216 }
 0x156   : > { %v670_v34 = vmul.f32 %v9217_v33, %v656_v8 }
 0x158   : > { %v678_v37 = vmul.f32 %v6792_v35, %v670_v34 }
 0x159   : > { %v9219_v36 = vpop.eup %9218 }
 0x15a   : > { %v671_v38 = vmul.f32 %v9219_v36, %v657_v12  ;;  %v9634_v41 = vadd.f32 %v6793_v39, %v678_v37 }
 0x15c   : > { %v679_v40 = vmul.f32 %v6792_v35, %v671_v38 }
 0x15e   : > { %v9636_v42 = vadd.f32 %v6793_v39, %v679_v40 }
 0x160   : > { %v9643_v44 = vpack.c.bf16 %v9636_v42, %v9634_v41 }
 0x162   : > { %8127 = vmatmul.mubr.bf16.vlgmr.msra.gmra.mrb[0].mxu0 %v9643_v44  ;;  %8147 = vmatmul.mubr.bf16.vlgmr.msra.gmra.mrb[0].mxu1 %v9643_v44 }
 0x163   : > { %8151 = vmatpush3.bf16.msra.mxu0 %v8848_v43  ;;  %8166 = vmatprep.mubr.msk.bf16.mxu0 %vm9398_vm0, %v9397_v4 }
 0x164   : > { %8152 = vmatprep.subr.bf16.mxu0 %v9397_v4  ;;  %8172 = vmatprep.mubr.msk.bf16.mxu1 %vm9398_vm0, %v9397_v4 }
 0x167   : > { %8153 = vmatpush3.bf16.msra.mxu0 %v8849_v45 }
 0x168   : > { %8154 = vmatprep.subr.bf16.mxu0 %v9397_v4 }
 0x16b   : > { %8155 = vmatpush3.bf16.msra.mxu0 %v8850_v46 }
 0x16c   : > { %8156 = vmatprep.subr.bf16.mxu0 %v9397_v4 }
 0x16f   : > { %8157 = vmatpush3.bf16.msra.mxu0 %v8851_v47 }
 0x170   : > { %8158 = vmatprep.subr.bf16.mxu0 %v9397_v4 }
 0x173   : > { %8159 = vmatpush3.bf16.msra.mxu0 %v8852_v48 }
 0x174   : > { %8160 = vmatprep.subr.bf16.mxu0 %v9397_v4 }
 0x177   : > { %8161 = vmatpush3.bf16.msra.mxu0 %v8853_v49 }
 0x178   : > { %8162 = vmatprep.subr.bf16.mxu0 %v9397_v4 }
 0x17b   : > { %8163 = vmatpush3.bf16.msra.mxu0 %v8854_v50 }
 0x17c   : > { %8164 = vmatprep.subr.bf16.mxu0 %v9397_v4 }
 0x17f   : > { %8165 = vmatpush3.bf16.msra.mxu0 %v8855_v51 }
 0x180   : > { %8202 = vmatprep.subr.bf16.mxu0 %v9397_v4 }
 0x182   : > { %8167 = vmatmul.mubr.bf16.vlgmr.msra.gmra.mrb[4].mxu0 %v9643_v44 }
 0x183   : > { %8203 = vmatpush3.bf16.msra.mxu0 %v8856_v52  ;;  %8218 = vmatprep.mubr.msk.bf16.mxu0 %vm9398_vm0, %v9397_v4 }
 0x184   : > { %8204 = vmatprep.subr.bf16.mxu0 %v9397_v4 }
 0x187   : > { %8205 = vmatpush3.bf16.msra.mxu0 %v8857_v53 }
 0x188   : > { %8206 = vmatprep.subr.bf16.mxu0 %v9397_v4 }
 0x18b   : > { %8207 = vmatpush3.bf16.msra.mxu0 %v8858_v54 }
 0x18c   : > { %8208 = vmatprep.subr.bf16.mxu0 %v9397_v4 }
 0x18f   : > { %8209 = vmatpush3.bf16.msra.mxu0 %v8859_v55 }
 0x190   : > { %8210 = vmatprep.subr.bf16.mxu0 %v9397_v4 }
 0x193   : > { %8211 = vmatpush3.bf16.msra.mxu0 %v8860_v56 }
 0x194   : > { %8212 = vmatprep.subr.bf16.mxu0 %v9397_v4 }
 0x197   : > { %8213 = vmatpush3.bf16.msra.mxu0 %v8861_v57 }
 0x198   : > { %8214 = vmatprep.subr.bf16.mxu0 %v9397_v4 }
 0x19b   : > { %8215 = vmatpush3.bf16.msra.mxu0 %v8862_v58 }
 0x19c   : > { %8216 = vmatprep.subr.bf16.mxu0 %v9397_v4 }
 0x19f   : > { %8217 = vmatpush3.bf16.msra.mxu0 %v8863_v59  ;;  %v8864_v59 = vld [vmem:[%s11489_s3 + $0x40] sm:$0xff]  }
 0x1a0   : > { %8242 = vmatprep.subr.bf16.mxu0 %v9397_v4 }
 0x1a2   : > { %8219 = vmatmul.mubr.bf16.vlgmr.msra.gmra.mrb[8].mxu0 %v9643_v44 }
 0x1a3   : > { %8244 = vmatprep.mubr.msk.bf16.mxu0 %vm9398_vm0, %v9397_v4 }
 0x235   : > { %v794_v61 = vpop.f32.mrb[0].mxu0  ;;  %v908_v63 = vpop.f32.mrb[0].mxu1 }
 0x236   : > { %v8128_v0 = vpop.f32.mrb[1].mxu0  ;;  %v8148_v1 = vpop.f32.mrb[1].mxu1  ;;  %v795_v5 = vadd.f32 %v6794_v60, %v794_v61  ;;  %v909_v6 = vadd.f32 %v6820_v62, %v908_v63  ;;  %v8865_v61 = vld [vmem:[%s11489_s3 + $0x48] sm:$0xff]   ;;  %v8867_v63 = vld [vmem:[%s11489_s3 + $0x58] sm:$0xff]  }
 0x237   : > { %v797_v2 = vpop.f32.mrb[2].mxu0  ;;  %v911_v3 = vpop.f32.mrb[2].mxu1  ;;  %v8868_v0 = vld [vmem:[%s11489_s3 + $0x60] sm:$0xff]   ;;  %v8869_v1 = vld [vmem:[%s11489_s3 + $0x68] sm:$0xff]  }
 0x238   : > { %v798_v7 = vadd.f32 %v6794_v60, %v797_v2  ;;  %v912_v8 = vadd.f32 %v6820_v62, %v911_v3  ;;  %v8129_v9 = vpop.f32.mrb[3].mxu0  ;;  %v8149_v10 = vpop.f32.mrb[3].mxu1  ;;  %v8866_v62 = vld [vmem:[%s11489_s3 + $0x50] sm:$0xff]   ;;  %v8871_v3 = vld [vmem:[%s11489_s3 + $0x78] sm:$0xff]  }
 0x239   : > { %v8870_v2 = vld [vmem:[%s11489_s3 + $0x70] sm:$0xff]   ;;  %v8876_v9 = vld [vmem:[%s11489_s3 + $0x260] sm:$0xff]   ;;  %v8877_v10 = vld [vmem:[%s11489_s3 + $0x268] sm:$0xff]  }
 0x23a   : > { %v1029_v11 = vpack.c.bf16 %v798_v7, %v795_v5  ;;  %v1030_v12 = vpack.c.bf16 %v912_v8, %v909_v6  ;;  %v8872_v5 = vld [vmem:[%s11489_s3 + $0x240] sm:$0xff]   ;;  %v8873_v6 = vld [vmem:[%s11489_s3 + $0x248] sm:$0xff]   ;;  %v8874_v7 = vld [vmem:[%s11489_s3 + $0x250] sm:$0xff]  }
 0x23b   : > { %v8875_v8 = vld [vmem:[%s11489_s3 + $0x258] sm:$0xff]  }
 0x23c   : > { %v1042_v13 = vsel %vm1037_vm1, %v1030_v12, 0  ;;  %v8879_v12 = vld [vmem:[%s11489_s3 + $0x278] sm:$0xff]  }
 0x23d   : > { %8171 = vmatpush3.bf16.xpose.msra.mxu1 %v1042_v13  ;;  %v8880_v13 = vld [vmem:[%s11448_s6] sm:$0xff]  }
 0x23e   : > { %8176 = vmatprep.subr.bf16.mxu1 %v9397_v4 }
 0x244   : > { %8173 = vmatmul.mubr.msk.bf16.vlgmr.msra.gmra.mrb[4].mxu1 %vm1037_vm1, %v1029_v11  ;;  %v8878_v11 = vld [vmem:[%s11489_s3 + $0x270] sm:$0xff]  }
 0x245   : > { %8178 = vmatprep.mubr.msk.bf16.mxu1 %vm9398_vm0, %v9397_v4 }
 0x255   : > { %v1022_v15 = vpop.f32.mrb[4].mxu0 }
 0x256   : > { %v8168_v16 = vpop.f32.mrb[5].mxu0  ;;  %v1023_v18 = vadd.f32 %v6846_v14, %v1022_v15 }
 0x257   : > { %v1025_v17 = vpop.f32.mrb[6].mxu0 }
 0x258   : > { %v1026_v19 = vadd.f32 %v6846_v14, %v1025_v17  ;;  %v8169_v20 = vpop.f32.mrb[7].mxu0  ;;  %v8881_v14 = vld [vmem:[%s11448_s6 + $0x8] sm:$0xff]  }
 0x25a   : > { %v1109_v21 = vpack.c.bf16 %v1026_v19, %v1023_v18  ;;  %v8882_v18 = vld [vmem:[%s11489_s3 + $0x180] sm:$0xff]  }
 0x25c   : > { %8177 = vmatpush3.bf16.msra.mxu1 %v1109_v21  ;;  %v8883_v21 = vld [vmem:[%s11489_s3 + $0x188] sm:$0xff]  }
 0x25d   : > { %8182 = vmatprep.subr.bf16.mxu1 %v9397_v4 }
 0x275   : > { %v1380_v23 = vpop.f32.mrb[8].mxu0 }
 0x276   : > { %v8220_v24 = vpop.f32.mrb[9].mxu0  ;;  %v1381_v26 = vadd.f32 %v6901_v22, %v1380_v23  ;;  %v8885_v23 = vld [vmem:[%s11489_s3 + $0x198] sm:$0xff]  }
 0x277   : > { %v1383_v25 = vpop.f32.mrb[10].mxu0  ;;  %v8886_v24 = vld [vmem:[%s11489_s3 + $0x1a0] sm:$0xff]  }
 0x278   : > { %v1384_v27 = vadd.f32 %v6901_v22, %v1383_v25  ;;  %v8221_v28 = vpop.f32.mrb[11].mxu0  ;;  %v8884_v22 = vld [vmem:[%s11489_s3 + $0x190] sm:$0xff]   ;;  %v8887_v25 = vld [vmem:[%s11489_s3 + $0x1a8] sm:$0xff]  }
 0x279   : > { %v6875_v28 = vld [vmem:[%s11447_s5 + $0x1] ss:$0 sm:$0xff] }
 0x27a   : > { %v1502_v29 = vpack.c.bf16 %v1384_v27, %v1381_v26  ;;  %v8888_v26 = vld [vmem:[%s11489_s3 + $0x1b0] sm:$0xff]   ;;  %v8889_v27 = vld [vmem:[%s11489_s3 + $0x1b8] sm:$0xff]  }
 0x27c   : > { %v1507_v30 = vsel %vm1037_vm1, %v1502_v29, 0 }
 0x27d   : > { %8243 = vmatpush3.bf16.xpose.msra.mxu0 %v1507_v30 }
 0x27e   : > { %8248 = vmatprep.subr.bf16.mxu0 %v9397_v4 }
 0x317   : > { %v1078_v32 = vpop.f32.mrb[4].mxu1 }
 0x318   : > { %v1079_v33 = vadd.f32 %v9746_v31, %v1078_v32  ;;  %v8174_v34 = vpop.f32.mrb[5].mxu1 }
 0x319   : > { %v1081_v35 = vpop.f32.mrb[6].mxu1 }
 0x31a   : > { %v1082_v36 = vadd.f32 %v9746_v31, %v1081_v35  ;;  %v8175_v37 = vpop.f32.mrb[7].mxu1  ;;  %v1086_v38 = vsel %vm1085_vm2, %v1079_v33, -inf }
 0x31b   : > { %1087 = vmax.xlane.f32.xlu0 %v1086_v38  ;;  %v6927_v37 = vld [vmem:[%s11447_s5 + $0x9] ss:$0 sm:$0xff] }
 0x31c   : > { %v1089_v39 = vsel %vm1085_vm2, %v1082_v36, -inf }
 0x31d   : > { %1090 = vmax.xlane.f32.xlu1 %v1089_v39 }
 0x3a8   : > { %v1088_v40 = vpop.xlane.xlu0 %1087 }
 0x3a9   : > { %v1092_v43 = vsub.f32 %v1079_v33, %v1088_v40 }
 0x3aa   : > { %v1091_v45 = vpop.xlane.xlu1 %1090 }
 0x3ab   : > { %v1094_v46 = vmul.f32 1.442695, %v1092_v43  ;;  %v1093_v47 = vsub.f32 %v1082_v36, %v1091_v45 }
 0x3ad   : > { %9220 = vpow2.f32 %v1094_v46  ;;  %v1096_v48 = vmul.f32 1.442695, %v1093_v47 }
 0x3af   : > { %9222 = vpow2.f32 %v1096_v48 }
 0x3b7   : > { %v9221_v49 = vpop.eup %9220 }
 0x3b8   : > { %v1098_v50 = vsel %vm1085_vm2, %v9221_v49, 0.0 }
 0x3b9   : > { %v9223_v51 = vpop.eup %9222  ;;  %1099 = vadd.xlane.f32.xlu0 %v1098_v50 }
 0x3ba   : > { %v1101_v52 = vsel %vm1085_vm2, %v9223_v51, 0.0 }
 0x3bb   : > { %1102 = vadd.xlane.f32.xlu1 %v1101_v52  ;;  %v6991_v52 = vld [vmem:[%s11447_s5 + $0x6] ss:$0 sm:$0xff] }
 0x446   : > { %v1100_v53 = vpop.xlane.xlu0 %1099 }
 0x447   : > { %9224 = vrcp.f32 %v1100_v53 }
 0x448   : > { %v1103_v54 = vpop.xlane.xlu1 %1102 }
 0x449   : > { %9226 = vrcp.f32 %v1103_v54 }
 0x451   : > { %v9225_v55 = vpop.eup %9224 }
 0x452   : > { %v1106_v57 = vmul.f32 %v9225_v55, %v9221_v49 }
 0x453   : > { %v9227_v56 = vpop.eup %9226 }
 0x454   : > { %v1107_v58 = vmul.f32 %v9227_v56, %v9223_v51 }
 0x456   : > { %v1108_v60 = vpack.c.bf16 %v1107_v58, %v1106_v57 }
 0x458   : > { %8179 = vmatmul.mubr.msk.bf16.vlgmr.msra.gmra.mrb[8].mxu1 %vm1085_vm2, %v1108_v60 }
 0x459   : > { %8183 = vmatpush3.bf16.msra.mxu1 %v8864_v59  ;;  %8198 = vmatprep.mubr.msk.bf16.mxu1 %vm9398_vm0, %v9397_v4 }
 0x45a   : > { %8184 = vmatprep.subr.bf16.mxu1 %v9397_v4 }
 0x45d   : > { %8185 = vmatpush3.bf16.msra.mxu1 %v8865_v61 }
 0x45e   : > { %8186 = vmatprep.subr.bf16.mxu1 %v9397_v4 }
 0x461   : > { %8187 = vmatpush3.bf16.msra.mxu1 %v8866_v62 }
 0x462   : > { %8188 = vmatprep.subr.bf16.mxu1 %v9397_v4 }
 0x465   : > { %8189 = vmatpush3.bf16.msra.mxu1 %v8867_v63 }
 0x466   : > { %8190 = vmatprep.subr.bf16.mxu1 %v9397_v4 }
 0x469   : > { %8191 = vmatpush3.bf16.msra.mxu1 %v8868_v0 }
 0x46a   : > { %8192 = vmatprep.subr.bf16.mxu1 %v9397_v4 }
 0x46d   : > { %8193 = vmatpush3.bf16.msra.mxu1 %v8869_v1 }
 0x46e   : > { %8194 = vmatprep.subr.bf16.mxu1 %v9397_v4 }
 0x471   : > { %8195 = vmatpush3.bf16.msra.mxu1 %v8870_v2 }
 0x472   : > { %8196 = vmatprep.subr.bf16.mxu1 %v9397_v4 }
 0x475   : > { %8197 = vmatpush3.bf16.msra.mxu1 %v8871_v3 }
 0x476   : > { %8222 = vmatprep.subr.bf16.mxu1 %v9397_v4 }
 0x478   : > { %8199 = vmatmul.mubr.bf16.vlgmr.msra.gmra.mrb[12].mxu1 %v9643_v44 }
 0x479   : > { %8223 = vmatpush3.bf16.msra.mxu1 %v8872_v5  ;;  %8238 = vmatprep.mubr.msk.bf16.mxu1 %vm9398_vm0, %v9397_v4 }
 0x47a   : > { %8224 = vmatprep.subr.bf16.mxu1 %v9397_v4 }
 0x47d   : > { %8225 = vmatpush3.bf16.msra.mxu1 %v8873_v6 }
 0x47e   : > { %8226 = vmatprep.subr.bf16.mxu1 %v9397_v4 }
 0x481   : > { %8227 = vmatpush3.bf16.msra.mxu1 %v8874_v7 }
 0x482   : > { %8228 = vmatprep.subr.bf16.mxu1 %v9397_v4 }
 0x485   : > { %8229 = vmatpush3.bf16.msra.mxu1 %v8875_v8 }
 0x486   : > { %8230 = vmatprep.subr.bf16.mxu1 %v9397_v4 }
 0x489   : > { %8231 = vmatpush3.bf16.msra.mxu1 %v8876_v9 }
 0x48a   : > { %8232 = vmatprep.subr.bf16.mxu1 %v9397_v4 }
 0x48d   : > { %8233 = vmatpush3.bf16.msra.mxu1 %v8877_v10 }
 0x48e   : > { %8234 = vmatprep.subr.bf16.mxu1 %v9397_v4 }
 0x491   : > { %8235 = vmatpush3.bf16.msra.mxu1 %v8878_v11 }
 0x492   : > { %8236 = vmatprep.subr.bf16.mxu1 %v9397_v4 }
 0x495   : > { %8237 = vmatpush3.bf16.msra.mxu1 %v8879_v12 }
 0x496   : > { %8262 = vmatprep.subr.bf16.mxu1 %v9397_v4 }
 0x498   : > { %8239 = vmatmul.mubr.bf16.vlgmr.msra.gmra.mrb[16].mxu1 %v9643_v44 }
 0x499   : > { %8263 = vmatpush3.bf16.msra.mxu1 %v8880_v13  ;;  %8266 = vmatprep.mubr.msk.bf16.mxu1 %vm9398_vm0, %v9397_v4 }
 0x49a   : > { %8264 = vmatprep.subr.bf16.mxu1 %v9397_v4 }
 0x49d   : > { %8265 = vmatpush3.bf16.msra.mxu1 %v8881_v14 }
 0x49e   : > { %8290 = vmatprep.subr.bf16.mxu1 %v9397_v4 }
 0x52b   : > { %v1147_v15 = vpop.f32.mrb[8].mxu1 }
 0x52c   : > { %v8180_v16 = vpop.f32.mrb[9].mxu1 }
 0x52d   : > { %v1150_v17 = vpop.f32.mrb[10].mxu1 }
 0x52e   : > { %v1154_v19 = vpack.c.bf16 %v1150_v17, %v1147_v15  ;;  %v8181_v20 = vpop.f32.mrb[11].mxu1 }
 0x530   : > { %8267 = vmatmul.mubr.msk.bf16.vlgmr.msra.gmra.mrb[20].mxu1 %vm1037_vm1, %v1154_v19 }
 0x531   : > { %8291 = vmatpush3.bf16.msra.mxu1 %v8882_v18  ;;  %8306 = vmatprep.mubr.msk.bf16.mxu1 %vm9398_vm0, %v9397_v4 }
 0x532   : > { %8292 = vmatprep.subr.bf16.mxu1 %v9397_v4 }
 0x535   : > { %8293 = vmatpush3.bf16.msra.mxu1 %v8883_v21 }
 0x536   : > { %8294 = vmatprep.subr.bf16.mxu1 %v9397_v4 }
 0x539   : > { %8295 = vmatpush3.bf16.msra.mxu1 %v8884_v22  ;;  %v8890_v22 = vld [vmem:[%s11448_s6 + $0x10] sm:$0xff]  }
 0x53a   : > { %8296 = vmatprep.subr.bf16.mxu1 %v9397_v4 }
 0x53d   : > { %8297 = vmatpush3.bf16.msra.mxu1 %v8885_v23 }
 0x53e   : > { %8298 = vmatprep.subr.bf16.mxu1 %v9397_v4 }
 0x541   : > { %8299 = vmatpush3.bf16.msra.mxu1 %v8886_v24  ;;  %v8891_v24 = vld [vmem:[%s11448_s6 + $0x18] sm:$0xff]  }
 0x542   : > { %8300 = vmatprep.subr.bf16.mxu1 %v9397_v4 }
 0x545   : > { %8301 = vmatpush3.bf16.msra.mxu1 %v8887_v25 }
 0x546   : > { %8302 = vmatprep.subr.bf16.mxu1 %v9397_v4 }
 0x549   : > { %8303 = vmatpush3.bf16.msra.mxu1 %v8888_v26 }
 0x54a   : > { %8304 = vmatprep.subr.bf16.mxu1 %v9397_v4 }
 0x54b   : > { %v1266_v29 = vpop.f32.mrb[12].mxu1 }
 0x54c   : > { %v8200_v30 = vpop.f32.mrb[13].mxu1  ;;  %v1267_v33 = vadd.f32 %v6875_v28, %v1266_v29 }
 0x54d   : > { %v1269_v32 = vpop.f32.mrb[14].mxu1  ;;  %8305 = vmatpush3.bf16.msra.mxu1 %v8889_v27 }
 0x54e   : > { %v1270_v34 = vadd.f32 %v6875_v28, %v1269_v32  ;;  %v8201_v35 = vpop.f32.mrb[15].mxu1  ;;  %8330 = vmatprep.subr.bf16.mxu1 %v9397_v4  ;;  %v8892_v28 = vld [vmem:[%s11489_s3 + $0x80] sm:$0xff]   ;;  %v8893_v32 = vld [vmem:[%s11489_s3 + $0x88] sm:$0xff]  }
 0x54f   : > { %v8896_v35 = vld [vmem:[%s11489_s3 + $0xa0] sm:$0xff]  }
 0x550   : > { %v1501_v36 = vpack.c.bf16 %v1270_v34, %v1267_v33  ;;  %8307 = vmatmul.mubr.bf16.vlgmr.msra.gmra.mrb[24].mxu1 %v9643_v44  ;;  %v8894_v33 = vld [vmem:[%s11489_s3 + $0x90] sm:$0xff]   ;;  %v8895_v34 = vld [vmem:[%s11489_s3 + $0x98] sm:$0xff]  }
 0x551   : > { %8332 = vmatprep.mubr.msk.bf16.mxu1 %vm9398_vm0, %v9397_v4 }
 0x552   : > { %8245 = vmatmul.mubr.msk.bf16.vlgmr.msra.gmra.mrb[12].mxu0 %vm1037_vm1, %v1501_v36  ;;  %v8897_v36 = vld [vmem:[%s11489_s3 + $0xa8] sm:$0xff]  }
 0x553   : > { %8250 = vmatprep.mubr.msk.bf16.mxu0 %vm9398_vm0, %v9397_v4 }
 0x56b   : > { %v1494_v38 = vpop.f32.mrb[16].mxu1 }
 0x56c   : > { %v8240_v39 = vpop.f32.mrb[17].mxu1  ;;  %v1495_v43 = vadd.f32 %v6927_v37, %v1494_v38  ;;  %v8899_v38 = vld [vmem:[%s11489_s3 + $0xb8] sm:$0xff]  }
 0x56d   : > { %v1497_v40 = vpop.f32.mrb[18].mxu1  ;;  %v8900_v39 = vld [vmem:[%s11489_s3 + $0x280] sm:$0xff]  }
 0x56e   : > { %v1498_v45 = vadd.f32 %v6927_v37, %v1497_v40  ;;  %v8241_v46 = vpop.f32.mrb[19].mxu1  ;;  %v8898_v37 = vld [vmem:[%s11489_s3 + $0xb0] sm:$0xff]   ;;  %v8901_v40 = vld [vmem:[%s11489_s3 + $0x288] sm:$0xff]  }
 0x56f   : > { %v8904_v46 = vld [vmem:[%s11489_s3 + $0x2a0] sm:$0xff]  }
 0x570   : > { %v1573_v47 = vpack.c.bf16 %v1498_v45, %v1495_v43  ;;  %v8902_v43 = vld [vmem:[%s11489_s3 + $0x290] sm:$0xff]   ;;  %v8903_v45 = vld [vmem:[%s11489_s3 + $0x298] sm:$0xff]  }
 0x572   : > { %8249 = vmatpush3.bf16.msra.mxu0 %v1573_v47  ;;  %v8905_v47 = vld [vmem:[%s11489_s3 + $0x2a8] sm:$0xff]  }
 0x573   : > { %8254 = vmatprep.subr.bf16.mxu0 %v9397_v4 }
 0x603   : > { %v9883_v48 = vpop.f32.mrb[20].mxu1 }
 0x604   : > { %v8268_v49 = vpop.f32.mrb[21].mxu1 }
 0x605   : > { %v9885_v50 = vpop.f32.mrb[22].mxu1  ;;  %v8906_v49 = vld [vmem:[%s11489_s3 + $0x2b0] sm:$0xff]  }
 0x606   : > { %v8269_v51 = vpop.f32.mrb[23].mxu1 }
 0x607   : > { %v8907_v51 = vld [vmem:[%s11489_s3 + $0x2b8] sm:$0xff]  }
 0x623   : > { %v1957_v53 = vpop.f32.mrb[24].mxu1 }
 0x624   : > { %v8308_v54 = vpop.f32.mrb[25].mxu1  ;;  %v1958_v57 = vadd.f32 %v6991_v52, %v1957_v53  ;;  %v8909_v53 = vld [vmem:[%s11489_s3 + $0x1c8] sm:$0xff]  }
 0x625   : > { %v1543_v55 = vpop.f32.mrb[12].mxu0  ;;  %v1960_v56 = vpop.f32.mrb[26].mxu1  ;;  %v8910_v54 = vld [vmem:[%s11489_s3 + $0x1d0] sm:$0xff]  }
 0x626   : > { %v1544_v58 = vadd.f32 %v9746_v31, %v1543_v55  ;;  %v1961_v59 = vadd.f32 %v6991_v52, %v1960_v56  ;;  %v8246_v60 = vpop.f32.mrb[13].mxu0  ;;  %v8309_v61 = vpop.f32.mrb[27].mxu1  ;;  %v8908_v52 = vld [vmem:[%s11489_s3 + $0x1c0] sm:$0xff]   ;;  %v8911_v55 = vld [vmem:[%s11489_s3 + $0x1d8] sm:$0xff]  }
 0x627   : > { %v1546_v62 = vpop.f32.mrb[14].mxu0  ;;  %v8912_v56 = vld [vmem:[%s11489_s3 + $0x1e0] sm:$0xff]  }
 0x628   : > { %v2079_v63 = vpack.c.bf16 %v1961_v59, %v1958_v57  ;;  %v1547_v0 = vadd.f32 %v9746_v31, %v1546_v62  ;;  %v8247_v1 = vpop.f32.mrb[15].mxu0  ;;  %v1550_v2 = vsel %vm1085_vm2, %v1544_v58, -inf  ;;  %v8913_v57 = vld [vmem:[%s11489_s3 + $0x1e8] sm:$0xff]   ;;  %v8915_v59 = vld [vmem:[%s11489_s3 + $0x1f8] sm:$0xff]  }
 0x629   : > { %1551 = vmax.xlane.f32.xlu0 %v1550_v2  ;;  %v6965_v2 = vld [vmem:[%s11447_s5 + $0x2] ss:$0 sm:$0xff] }
 0x62a   : > { %v2084_v3 = vsel %vm1037_vm1, %v2079_v63, 0  ;;  %v1553_v5 = vsel %vm1085_vm2, %v1547_v0, -inf }
 0x62b   : > { %8331 = vmatpush3.bf16.xpose.msra.mxu1 %v2084_v3  ;;  %1554 = vmax.xlane.f32.xlu1 %v1553_v5 }
 0x62c   : > { %8336 = vmatprep.subr.bf16.mxu1 %v9397_v4 }
 0x6b6   : > { %v1552_v6 = vpop.xlane.xlu0 %1551 }
 0x6b7   : > { %v1556_v7 = vsub.f32 %v1544_v58, %v1552_v6  ;;  %v8914_v58 = vld [vmem:[%s11489_s3 + $0x1f0] sm:$0xff]  }
 0x6b8   : > { %v1555_v8 = vpop.xlane.xlu1 %1554 }
 0x6b9   : > { %v1558_v9 = vmul.f32 1.442695, %v1556_v7  ;;  %v1557_v10 = vsub.f32 %v1547_v0, %v1555_v8 }
 0x6bb   : > { %9228 = vpow2.f32 %v1558_v9  ;;  %v1560_v11 = vmul.f32 1.442695, %v1557_v10 }
 0x6bd   : > { %9230 = vpow2.f32 %v1560_v11 }
 0x6c5   : > { %v9229_v12 = vpop.eup %9228 }
 0x6c6   : > { %v1562_v13 = vsel %vm1085_vm2, %v9229_v12, 0.0 }
 0x6c7   : > { %v9231_v14 = vpop.eup %9230  ;;  %1563 = vadd.xlane.f32.xlu0 %v1562_v13 }
 0x6c8   : > { %v1565_v15 = vsel %vm1085_vm2, %v9231_v14, 0.0 }
 0x6c9   : > { %1566 = vadd.xlane.f32.xlu1 %v1565_v15 }
 0x754   : > { %v1564_v16 = vpop.xlane.xlu0 %1563 }
 0x755   : > { %9232 = vrcp.f32 %v1564_v16 }
 0x756   : > { %v1567_v17 = vpop.xlane.xlu1 %1566 }
 0x757   : > { %9234 = vrcp.f32 %v1567_v17  ;;  %v7078_v17 = vld [vmem:[%s11447_s5 + $0x7] ss:$0 sm:$0xff] }
 0x75f   : > { %v9233_v18 = vpop.eup %9232 }
 0x760   : > { %v1570_v20 = vmul.f32 %v9233_v18, %v9229_v12 }
 0x761   : > { %v9235_v19 = vpop.eup %9234 }
 0x762   : > { %v1571_v21 = vmul.f32 %v9235_v19, %v9231_v14 }
 0x764   : > { %v1572_v23 = vpack.c.bf16 %v1571_v21, %v1570_v20 }
 0x766   : > { %8251 = vmatmul.mubr.msk.bf16.vlgmr.msra.gmra.mrb[16].mxu0 %vm1085_vm2, %v1572_v23 }
 0x767   : > { %8255 = vmatpush3.bf16.msra.mxu0 %v8890_v22  ;;  %8258 = vmatprep.mubr.msk.bf16.mxu0 %vm9398_vm0, %v9397_v4 }
 0x768   : > { %8256 = vmatprep.subr.bf16.mxu0 %v9397_v4 }
 0x76b   : > { %8257 = vmatpush3.bf16.msra.mxu0 %v8891_v24 }
 0x76c   : > { %8270 = vmatprep.subr.bf16.mxu0 %v9397_v4 }
 0x839   : > { %v1611_v25 = vpop.f32.mrb[16].mxu0 }
 0x83a   : > { %v8252_v26 = vpop.f32.mrb[17].mxu0 }
 0x83b   : > { %v1614_v27 = vpop.f32.mrb[18].mxu0 }
 0x83c   : > { %v1618_v29 = vpack.c.bf16 %v1614_v27, %v1611_v25  ;;  %v8253_v30 = vpop.f32.mrb[19].mxu0 }
 0x83e   : > { %8259 = vmatmul.mubr.msk.bf16.vlgmr.msra.gmra.mrb[20].mxu0 %vm1037_vm1, %v1618_v29 }
 0x83f   : > { %8271 = vmatpush3.bf16.msra.mxu0 %v8892_v28  ;;  %8286 = vmatprep.mubr.msk.bf16.mxu0 %vm9398_vm0, %v9397_v4 }
 0x840   : > { %8272 = vmatprep.subr.bf16.mxu0 %v9397_v4 }
 0x843   : > { %8273 = vmatpush3.bf16.msra.mxu0 %v8893_v32 }
 0x844   : > { %8274 = vmatprep.subr.bf16.mxu0 %v9397_v4 }
 0x847   : > { %8275 = vmatpush3.bf16.msra.mxu0 %v8894_v33 }
 0x848   : > { %8276 = vmatprep.subr.bf16.mxu0 %v9397_v4 }
 0x84b   : > { %8277 = vmatpush3.bf16.msra.mxu0 %v8895_v34 }
 0x84c   : > { %8278 = vmatprep.subr.bf16.mxu0 %v9397_v4 }
 0x84f   : > { %8279 = vmatpush3.bf16.msra.mxu0 %v8896_v35 }
 0x850   : > { %8280 = vmatprep.subr.bf16.mxu0 %v9397_v4 }
 0x853   : > { %8281 = vmatpush3.bf16.msra.mxu0 %v8897_v36 }
 0x854   : > { %8282 = vmatprep.subr.bf16.mxu0 %v9397_v4 }
 0x857   : > { %8283 = vmatpush3.bf16.msra.mxu0 %v8898_v37 }
 0x858   : > { %8284 = vmatprep.subr.bf16.mxu0 %v9397_v4 }
 0x85b   : > { %8285 = vmatpush3.bf16.msra.mxu0 %v8899_v38 }
 0x85c   : > { %8310 = vmatprep.subr.bf16.mxu0 %v9397_v4 }
 0x85e   : > { %8287 = vmatmul.mubr.bf16.vlgmr.msra.gmra.mrb[24].mxu0 %v9643_v44 }
 0x85f   : > { %8311 = vmatpush3.bf16.msra.mxu0 %v8900_v39  ;;  %8326 = vmatprep.mubr.msk.bf16.mxu0 %vm9398_vm0, %v9397_v4 }
 0x860   : > { %8312 = vmatprep.subr.bf16.mxu0 %v9397_v4 }
 0x863   : > { %8313 = vmatpush3.bf16.msra.mxu0 %v8901_v40 }
 0x864   : > { %8314 = vmatprep.subr.bf16.mxu0 %v9397_v4 }
 0x867   : > { %8315 = vmatpush3.bf16.msra.mxu0 %v8902_v43 }
 0x868   : > { %8316 = vmatprep.subr.bf16.mxu0 %v9397_v4 }
 0x86b   : > { %8317 = vmatpush3.bf16.msra.mxu0 %v8903_v45 }
 0x86c   : > { %8318 = vmatprep.subr.bf16.mxu0 %v9397_v4 }
 0x86f   : > { %8319 = vmatpush3.bf16.msra.mxu0 %v8904_v46 }
 0x870   : > { %8320 = vmatprep.subr.bf16.mxu0 %v9397_v4 }
 0x873   : > { %8321 = vmatpush3.bf16.msra.mxu0 %v8905_v47 }
 0x874   : > { %8322 = vmatprep.subr.bf16.mxu0 %v9397_v4 }
 0x877   : > { %8323 = vmatpush3.bf16.msra.mxu0 %v8906_v49 }
 0x878   : > { %8324 = vmatprep.subr.bf16.mxu0 %v9397_v4 }
 0x87b   : > { %8325 = vmatpush3.bf16.msra.mxu0 %v8907_v51 }
 0x87c   : > { %8370 = vmatprep.subr.bf16.mxu0 %v9397_v4 }
 0x87e   : > { %8327 = vmatmul.mubr.bf16.vlgmr.msra.gmra.mrb[28].mxu0 %v9643_v44 }
 0x87f   : > { %8371 = vmatpush3.bf16.msra.mxu0 %v8908_v52  ;;  %8386 = vmatprep.mubr.msk.bf16.mxu0 %vm9398_vm0, %v9397_v4 }
 0x880   : > { %8372 = vmatprep.subr.bf16.mxu0 %v9397_v4 }
 0x883   : > { %8373 = vmatpush3.bf16.msra.mxu0 %v8909_v53 }
 0x884   : > { %8374 = vmatprep.subr.bf16.mxu0 %v9397_v4 }
 0x887   : > { %8375 = vmatpush3.bf16.msra.mxu0 %v8910_v54 }
 0x888   : > { %8376 = vmatprep.subr.bf16.mxu0 %v9397_v4 }
 0x88b   : > { %8377 = vmatpush3.bf16.msra.mxu0 %v8911_v55 }
 0x88c   : > { %8378 = vmatprep.subr.bf16.mxu0 %v9397_v4 }
 0x88f   : > { %8379 = vmatpush3.bf16.msra.mxu0 %v8912_v56  ;;  %v8916_v56 = vld [vmem:[%s11448_s6 + $0x20] sm:$0xff]  }
 0x890   : > { %8380 = vmatprep.subr.bf16.mxu0 %v9397_v4 }
 0x893   : > { %8381 = vmatpush3.bf16.msra.mxu0 %v8913_v57 }
 0x894   : > { %8382 = vmatprep.subr.bf16.mxu0 %v9397_v4 }
 0x897   : > { %8383 = vmatpush3.bf16.msra.mxu0 %v8914_v58  ;;  %v8917_v58 = vld [vmem:[%s11448_s6 + $0x28] sm:$0xff]  }
 0x898   : > { %8384 = vmatprep.subr.bf16.mxu0 %v9397_v4 }
 0x89b   : > { %8385 = vmatpush3.bf16.msra.mxu0 %v8915_v59 }
 0x89c   : > { %8410 = vmatprep.subr.bf16.mxu0 %v9397_v4 }
 0x89e   : > { %8387 = vmatmul.mubr.bf16.vlgmr.msra.gmra.mrb[32].mxu0 %v9643_v44 }
 0x89f   : > { %8412 = vmatprep.mubr.msk.bf16.mxu0 %vm9398_vm0, %v9397_v4 }
 0x911   : > { %v1673_v60 = vpop.f32.mrb[20].mxu0 }
 0x912   : > { %v10018_v61 = vadd.f32 %v9883_v48, %v1673_v60  ;;  %v8260_v62 = vpop.f32.mrb[21].mxu0  ;;  %v7017_v48 = vld [vmem:[%s11447_s5 + $0xa] ss:$0 sm:$0xff] }
 0x913   : > { %v1676_v63 = vpop.f32.mrb[22].mxu0 }
 0x914   : > { %v10021_v0 = vadd.f32 %v9885_v50, %v1676_v63  ;;  %v8261_v1 = vpop.f32.mrb[23].mxu0  ;;  %v8918_v63 = vld [vmem:[%s11489_s3 + $0xc0] sm:$0xff]  }
 0x931   : > { %v1843_v3 = vpop.f32.mrb[24].mxu0 }
 0x932   : > { %v8288_v5 = vpop.f32.mrb[25].mxu0  ;;  %v1844_v7 = vadd.f32 %v6965_v2, %v1843_v3  ;;  %v8919_v3 = vld [vmem:[%s11489_s3 + $0xc8] sm:$0xff]  }
 0x933   : > { %v1846_v6 = vpop.f32.mrb[26].mxu0  ;;  %v8920_v5 = vld [vmem:[%s11489_s3 + $0xd0] sm:$0xff]  }
 0x934   : > { %v1847_v8 = vadd.f32 %v6965_v2, %v1846_v6  ;;  %v8289_v9 = vpop.f32.mrb[27].mxu0  ;;  %v8921_v6 = vld [vmem:[%s11489_s3 + $0xd8] sm:$0xff]  }
 0x935   : > { %v8924_v9 = vld [vmem:[%s11489_s3 + $0xf0] sm:$0xff]  }
 0x936   : > { %v2078_v10 = vpack.c.bf16 %v1847_v8, %v1844_v7  ;;  %v8922_v7 = vld [vmem:[%s11489_s3 + $0xe0] sm:$0xff]   ;;  %v8923_v8 = vld [vmem:[%s11489_s3 + $0xe8] sm:$0xff]  }
 0x938   : > { %8333 = vmatmul.mubr.msk.bf16.vlgmr.msra.gmra.mrb[28].mxu1 %vm1037_vm1, %v2078_v10  ;;  %v8925_v10 = vld [vmem:[%s11489_s3 + $0xf8] sm:$0xff]  }
 0x939   : > { %8338 = vmatprep.mubr.msk.bf16.mxu1 %vm9398_vm0, %v9397_v4 }
 0x951   : > { %v2071_v50 = vpop.f32.mrb[28].mxu0 }
 0x952   : > { %v8328_v11 = vpop.f32.mrb[29].mxu0  ;;  %v2072_v13 = vadd.f32 %v7017_v48, %v2071_v50  ;;  %v8927_v50 = vld [vmem:[%s11489_s3 + $0x2c8] sm:$0xff]  }
 0x953   : > { %v2074_v12 = vpop.f32.mrb[30].mxu0  ;;  %v8928_v11 = vld [vmem:[%s11489_s3 + $0x2d0] sm:$0xff]  }
 0x954   : > { %v2075_v14 = vadd.f32 %v7017_v48, %v2074_v12  ;;  %v8329_v15 = vpop.f32.mrb[31].mxu0  ;;  %v8926_v48 = vld [vmem:[%s11489_s3 + $0x2c0] sm:$0xff]   ;;  %v8929_v12 = vld [vmem:[%s11489_s3 + $0x2d8] sm:$0xff]  }
 0x955   : > { %v8932_v15 = vld [vmem:[%s11489_s3 + $0x2f0] sm:$0xff]  }
 0x956   : > { %v2150_v16 = vpack.c.bf16 %v2075_v14, %v2072_v13  ;;  %v8930_v13 = vld [vmem:[%s11489_s3 + $0x2e0] sm:$0xff]   ;;  %v8931_v14 = vld [vmem:[%s11489_s3 + $0x2e8] sm:$0xff]  }
 0x958   : > { %8337 = vmatpush3.bf16.msra.mxu1 %v2150_v16  ;;  %v8933_v16 = vld [vmem:[%s11489_s3 + $0x2f8] sm:$0xff]  }
 0x959   : > { %8342 = vmatprep.subr.bf16.mxu1 %v9397_v4 }
 0x971   : > { %v2480_v18 = vpop.f32.mrb[32].mxu0 }
 0x972   : > { %v8388_v19 = vpop.f32.mrb[33].mxu0  ;;  %v2481_v21 = vadd.f32 %v7078_v17, %v2480_v18 }
 0x973   : > { %v2483_v20 = vpop.f32.mrb[34].mxu0 }
 0x974   : > { %v2484_v22 = vadd.f32 %v7078_v17, %v2483_v20  ;;  %v8389_v23 = vpop.f32.mrb[35].mxu0 }
 0x975   : > { %v7052_v23 = vld [vmem:[%s11447_s5 + $0x3] ss:$0 sm:$0xff] }
 0x976   : > { %v2602_v24 = vpack.c.bf16 %v2484_v22, %v2481_v21 }
 0x978   : > { %v2607_v25 = vsel %vm1037_vm1, %v2602_v24, 0 }
 0x979   : > { %8411 = vmatpush3.bf16.xpose.msra.mxu0 %v2607_v25 }
 0x97a   : > { %8416 = vmatprep.subr.bf16.mxu0 %v9397_v4 }
 0xa0b   : > { %v2120_v26 = vpop.f32.mrb[28].mxu1 }
 0xa0c   : > { %v2121_v27 = vadd.f32 %v9746_v31, %v2120_v26  ;;  %v8334_v28 = vpop.f32.mrb[29].mxu1 }
 0xa0d   : > { %v2123_v29 = vpop.f32.mrb[30].mxu1 }
 0xa0e   : > { %v2124_v30 = vadd.f32 %v9746_v31, %v2123_v29  ;;  %v8335_v32 = vpop.f32.mrb[31].mxu1  ;;  %v2127_v33 = vsel %vm1085_vm2, %v2121_v27, -inf }
 0xa0f   : > { %2128 = vmax.xlane.f32.xlu0 %v2127_v33 }
 0xa10   : > { %v2130_v34 = vsel %vm1085_vm2, %v2124_v30, -inf }
 0xa11   : > { %2131 = vmax.xlane.f32.xlu1 %v2130_v34 }
 0xa9c   : > { %v2129_v35 = vpop.xlane.xlu0 %2128 }
 0xa9d   : > { %v2133_v36 = vsub.f32 %v2121_v27, %v2129_v35 }
 0xa9e   : > { %v2132_v37 = vpop.xlane.xlu1 %2131 }
 0xa9f   : > { %v2135_v38 = vmul.f32 1.442695, %v2133_v36  ;;  %v2134_v39 = vsub.f32 %v2124_v30, %v2132_v37 }
 0xaa1   : > { %9236 = vpow2.f32 %v2135_v38  ;;  %v2137_v40 = vmul.f32 1.442695, %v2134_v39 }
 0xaa3   : > { %9238 = vpow2.f32 %v2137_v40 }
 0xaab   : > { %v9237_v43 = vpop.eup %9236 }
 0xaac   : > { %v2139_v45 = vsel %vm1085_vm2, %v9237_v43, 0.0 }
 0xaad   : > { %v9239_v46 = vpop.eup %9238  ;;  %2140 = vadd.xlane.f32.xlu0 %v2139_v45 }
 0xaae   : > { %v2142_v47 = vsel %vm1085_vm2, %v9239_v46, 0.0 }
 0xaaf   : > { %2143 = vadd.xlane.f32.xlu1 %v2142_v47 }
 0xb3a   : > { %v2141_v49 = vpop.xlane.xlu0 %2140 }
 0xb3b   : > { %9240 = vrcp.f32 %v2141_v49 }
 0xb3c   : > { %v2144_v51 = vpop.xlane.xlu1 %2143 }
 0xb3d   : > { %9242 = vrcp.f32 %v2144_v51 }
 0xb45   : > { %v9241_v52 = vpop.eup %9240 }
 0xb46   : > { %v2147_v54 = vmul.f32 %v9241_v52, %v9237_v43 }
 0xb47   : > { %v9243_v53 = vpop.eup %9242 }
 0xb48   : > { %v2148_v55 = vmul.f32 %v9243_v53, %v9239_v46 }
 0xb4a   : > { %v2149_v57 = vpack.c.bf16 %v2148_v55, %v2147_v54 }
 0xb4c   : > { %8339 = vmatmul.mubr.msk.bf16.vlgmr.msra.gmra.mrb[32].mxu1 %vm1085_vm2, %v2149_v57 }
 0xb4d   : > { %8343 = vmatpush3.bf16.msra.mxu1 %v8916_v56  ;;  %8346 = vmatprep.mubr.msk.bf16.mxu1 %vm9398_vm0, %v9397_v4 }
 0xb4e   : > { %8344 = vmatprep.subr.bf16.mxu1 %v9397_v4 }
 0xb51   : > { %8345 = vmatpush3.bf16.msra.mxu1 %v8917_v58 }
 0xb52   : > { %8350 = vmatprep.subr.bf16.mxu1 %v9397_v4 }
 0xc1f   : > { %v2188_v59 = vpop.f32.mrb[32].mxu1 }
 0xc20   : > { %v8340_v60 = vpop.f32.mrb[33].mxu1 }
 0xc21   : > { %v2191_v62 = vpop.f32.mrb[34].mxu1 }
 0xc22   : > { %v2195_v1 = vpack.c.bf16 %v2191_v62, %v2188_v59  ;;  %v8341_v2 = vpop.f32.mrb[35].mxu1 }
 0xc24   : > { %8347 = vmatmul.mubr.msk.bf16.vlgmr.msra.gmra.mrb[36].mxu1 %vm1037_vm1, %v2195_v1 }
 0xc25   : > { %8351 = vmatpush3.bf16.msra.mxu1 %v8918_v63  ;;  %8366 = vmatprep.mubr.msk.bf16.mxu1 %vm9398_vm0, %v9397_v4 }
 0xc26   : > { %8352 = vmatprep.subr.bf16.mxu1 %v9397_v4 }
 0xc29   : > { %8353 = vmatpush3.bf16.msra.mxu1 %v8919_v3  ;;  %v8934_v3 = vld [vmem:[%s11448_s6 + $0x30] sm:$0xff]  }
 0xc2a   : > { %8354 = vmatprep.subr.bf16.mxu1 %v9397_v4 }
 0xc2d   : > { %8355 = vmatpush3.bf16.msra.mxu1 %v8920_v5 }
 0xc2e   : > { %8356 = vmatprep.subr.bf16.mxu1 %v9397_v4 }
 0xc31   : > { %8357 = vmatpush3.bf16.msra.mxu1 %v8921_v6  ;;  %v8935_v6 = vld [vmem:[%s11448_s6 + $0x38] sm:$0xff]  }
 0xc32   : > { %8358 = vmatprep.subr.bf16.mxu1 %v9397_v4 }
 0xc35   : > { %8359 = vmatpush3.bf16.msra.mxu1 %v8922_v7 }
 0xc36   : > { %8360 = vmatprep.subr.bf16.mxu1 %v9397_v4 }
 0xc39   : > { %8361 = vmatpush3.bf16.msra.mxu1 %v8923_v8 }
 0xc3a   : > { %8362 = vmatprep.subr.bf16.mxu1 %v9397_v4 }
 0xc3d   : > { %8363 = vmatpush3.bf16.msra.mxu1 %v8924_v9 }
 0xc3e   : > { %8364 = vmatprep.subr.bf16.mxu1 %v9397_v4 }
 0xc41   : > { %8365 = vmatpush3.bf16.msra.mxu1 %v8925_v10 }
 0xc42   : > { %8390 = vmatprep.subr.bf16.mxu1 %v9397_v4 }
 0xc44   : > { %8367 = vmatmul.mubr.bf16.vlgmr.msra.gmra.mrb[40].mxu1 %v9643_v44 }
 0xc45   : > { %8391 = vmatpush3.bf16.msra.mxu1 %v8926_v48  ;;  %8406 = vmatprep.mubr.msk.bf16.mxu1 %vm9398_vm0, %v9397_v4 }
 0xc46   : > { %8392 = vmatprep.subr.bf16.mxu1 %v9397_v4 }
 0xc49   : > { %8393 = vmatpush3.bf16.msra.mxu1 %v8927_v50 }
 0xc4a   : > { %8394 = vmatprep.subr.bf16.mxu1 %v9397_v4 }
 0xc4d   : > { %8395 = vmatpush3.bf16.msra.mxu1 %v8928_v11  ;;  %v7122_v11 = vld [vmem:[%s11449_s7] ss:$0 sm:$0xff] }
 0xc4e   : > { %8396 = vmatprep.subr.bf16.mxu1 %v9397_v4 }
 0xc51   : > { %8397 = vmatpush3.bf16.msra.mxu1 %v8929_v12 }
 0xc52   : > { %8398 = vmatprep.subr.bf16.mxu1 %v9397_v4 }
 0xc55   : > { %8399 = vmatpush3.bf16.msra.mxu1 %v8930_v13 }
 0xc56   : > { %8400 = vmatprep.subr.bf16.mxu1 %v9397_v4 }
 0xc59   : > { %8401 = vmatpush3.bf16.msra.mxu1 %v8931_v14 }
 0xc5a   : > { %8402 = vmatprep.subr.bf16.mxu1 %v9397_v4 }
 0xc5d   : > { %8403 = vmatpush3.bf16.msra.mxu1 %v8932_v15 }
 0xc5e   : > { %8404 = vmatprep.subr.bf16.mxu1 %v9397_v4 }
 0xc61   : > { %8405 = vmatpush3.bf16.msra.mxu1 %v8933_v16 }
 0xc64   : > { %8407 = vmatmul.mubr.bf16.vlgmr.msra.gmra.mrb[44].mxu1 %v9643_v44 }
 0xcf7   : > { %v2250_v17 = vpop.f32.mrb[36].mxu1 }
 0xcf8   : > { %v10126_v18 = vadd.f32 %v2250_v17, %v10018_v61  ;;  %v8348_v19 = vpop.f32.mrb[37].mxu1  ;;  %v7104_v61 = vld [vmem:[%s11447_s5 + $0xb] ss:$0 sm:$0xff] }
 0xcf9   : > { %v2253_v20 = vpop.f32.mrb[38].mxu1 }
 0xcfa   : > { %v10129_v21 = vadd.f32 %v2253_v20, %v10021_v0  ;;  %v8349_v22 = vpop.f32.mrb[39].mxu1 }
 0xd17   : > { %v2366_v24 = vpop.f32.mrb[40].mxu1 }
 0xd18   : > { %v8368_v25 = vpop.f32.mrb[41].mxu1  ;;  %v2367_v27 = vadd.f32 %v7052_v23, %v2366_v24  ;;  %v8947_v24 = vld [vmem:[%s11452_s10 + $0x2c] ss:$16 sps:$4 sm:$0xff]  }
 0xd19   : > { %v2369_v26 = vpop.f32.mrb[42].mxu1  ;;  %v8942_v25 = vld [vmem:[%s11452_s10 + $0x20] ss:$16 sps:$4 sm:$0xff]  }
 0xd1a   : > { %v2370_v28 = vadd.f32 %v7052_v23, %v2369_v26  ;;  %v8369_v44 = vpop.f32.mrb[43].mxu1  ;;  %v8936_v23 = vld [vmem:[%s11452_s10] ss:$16 sps:$4 sm:$0xff]   ;;  %v8945_v26 = vld [vmem:[%s11452_s10 + $0x28] ss:$16 sps:$4 sm:$0xff]  }
 0xd1c   : > { %v2601_v29 = vpack.c.bf16 %v2370_v28, %v2367_v27 }
 0xd1e   : > { %8413 = vmatmul.mubr.msk.bf16.vlgmr.msra.gmra.mrb[36].mxu0 %vm1037_vm1, %v2601_v29 }
 0xd1f   : > { %8418 = vmatprep.mubr.msk.bf16.mxu0 %vm9398_vm0, %v9397_v4 }
 0xd37   : > { %v2594_v0 = vpop.f32.mrb[44].mxu1 }
 0xd38   : > { %v8408_v30 = vpop.f32.mrb[45].mxu1  ;;  %v2595_v33 = vadd.f32 %v7104_v61, %v2594_v0 }
 0xd39   : > { %v2597_v32 = vpop.f32.mrb[46].mxu1 }
 0xd3a   : > { %v2598_v34 = vadd.f32 %v7104_v61, %v2597_v32  ;;  %v8409_v35 = vpop.f32.mrb[47].mxu1 }
 0xd3b   : > { %v8948_v35 = vld [vmem:[%s11452_s10 + $0x40] ss:$16 sps:$4 sm:$0xff]  }
 0xd3c   : > { %v2673_v36 = vpack.c.bf16 %v2598_v34, %v2595_v33  ;;  %v8950_v33 = vld [vmem:[%s11452_s10 + $0x44] ss:$16 sps:$4 sm:$0xff]   ;;  %v8953_v34 = vld [vmem:[%s11452_s10 + $0x4c] ss:$16 sps:$4 sm:$0xff]  }
 0xd3e   : > { %8417 = vmatpush3.bf16.msra.mxu0 %v2673_v36  ;;  %v8951_v36 = vld [vmem:[%s11452_s10 + $0x48] ss:$16 sps:$4 sm:$0xff]  }
 0xd3f   : > { %8422 = vmatprep.subr.bf16.mxu0 %v9397_v4 }
 0xdf1   : > { %v2643_v37 = vpop.f32.mrb[36].mxu0 }
 0xdf2   : > { %v2644_v38 = vadd.f32 %v9746_v31, %v2643_v37  ;;  %v8414_v39 = vpop.f32.mrb[37].mxu0  ;;  %v8956_v37 = vld [vmem:[%s11452_s10 + $0x64] ss:$16 sps:$4 sm:$0xff]  }
 0xdf3   : > { %v2646_v40 = vpop.f32.mrb[38].mxu0  ;;  %v8954_v39 = vld [vmem:[%s11452_s10 + $0x60] ss:$16 sps:$4 sm:$0xff]  }
 0xdf4   : > { %v2647_v43 = vadd.f32 %v9746_v31, %v2646_v40  ;;  %v8415_v45 = vpop.f32.mrb[39].mxu0  ;;  %v2650_v46 = vsel %vm1085_vm2, %v2644_v38, -inf  ;;  %v8957_v40 = vld [vmem:[%s11452_s10 + $0x68] ss:$16 sps:$4 sm:$0xff]  }
 0xdf5   : > { %2651 = vmax.xlane.f32.xlu0 %v2650_v46  ;;  %v8965_v45 = vld [vmem:[%s11452_s10 + $0x8c] ss:$16 sps:$4 sm:$0xff]   ;;  %v8960_v46 = vld [vmem:[%s11452_s10 + $0x80] ss:$16 sps:$4 sm:$0xff]  }
 0xdf6   : > { %v2653_v47 = vsel %vm1085_vm2, %v2647_v43, -inf }
 0xdf7   : > { %2654 = vmax.xlane.f32.xlu1 %v2653_v47  ;;  %v8963_v47 = vld [vmem:[%s11452_s10 + $0x88] ss:$16 sps:$4 sm:$0xff]  }
 0xe82   : > { %v2652_v49 = vpop.xlane.xlu0 %2651 }
 0xe83   : > { %v2656_v51 = vsub.f32 %v2644_v38, %v2652_v49  ;;  %v8959_v38 = vld [vmem:[%s11452_s10 + $0x6c] ss:$16 sps:$4 sm:$0xff]   ;;  %v8968_v49 = vld [vmem:[%s11452_s10 + $0xa4] ss:$16 sps:$4 sm:$0xff]  }
 0xe84   : > { %v2655_v52 = vpop.xlane.xlu1 %2654 }
 0xe85   : > { %v2658_v53 = vmul.f32 1.442695, %v2656_v51  ;;  %v2657_v54 = vsub.f32 %v2647_v43, %v2655_v52  ;;  %v8962_v43 = vld [vmem:[%s11452_s10 + $0x84] ss:$16 sps:$4 sm:$0xff]   ;;  %v8971_v51 = vld [vmem:[%s11452_s10 + $0xac] ss:$16 sps:$4 sm:$0xff]  }
 0xe86   : > { %v8966_v52 = vld [vmem:[%s11452_s10 + $0xa0] ss:$16 sps:$4 sm:$0xff]  }
 0xe87   : > { %9244 = vpow2.f32 %v2658_v53  ;;  %v2660_v55 = vmul.f32 1.442695, %v2657_v54  ;;  %v8969_v53 = vld [vmem:[%s11452_s10 + $0xa8] ss:$16 sps:$4 sm:$0xff]   ;;  %v8974_v54 = vld [vmem:[%s11452_s10 + $0xc4] ss:$16 sps:$4 sm:$0xff]  }
 0xe89   : > { %9246 = vpow2.f32 %v2660_v55  ;;  %v8977_v55 = vld [vmem:[%s11452_s10 + $0xcc] ss:$16 sps:$4 sm:$0xff]  }
 0xe91   : > { %v9245_v56 = vpop.eup %9244 }
 0xe92   : > { %v2662_v57 = vsel %vm1085_vm2, %v9245_v56, 0.0 }
 0xe93   : > { %v9247_v58 = vpop.eup %9246  ;;  %2663 = vadd.xlane.f32.xlu0 %v2662_v57  ;;  %v8975_v57 = vld [vmem:[%s11452_s10 + $0xc8] ss:$16 sps:$4 sm:$0xff]  }
 0xe94   : > { %v2665_v31 = vsel %vm1085_vm2, %v9247_v58, 0.0 }
 0xe95   : > { %2666 = vadd.xlane.f32.xlu1 %v2665_v31  ;;  %v8980_v31 = vld [vmem:[%s11452_s10 + $0xe4] ss:$16 sps:$4 sm:$0xff]  }
 0xf20   : > { %v2664_v59 = vpop.xlane.xlu0 %2663 }
 0xf21   : > { %9248 = vrcp.f32 %v2664_v59  ;;  %v8981_v59 = vld [vmem:[%s11452_s10 + $0xe8] ss:$16 sps:$4 sm:$0xff]  }
 0xf22   : > { %v2667_v60 = vpop.xlane.xlu1 %2666 }
 0xf23   : > { %9250 = vrcp.f32 %v2667_v60  ;;  %v8983_v60 = vld [vmem:[%s11452_s10 + $0xec] ss:$16 sps:$4 sm:$0xff]  }
 0xf2b   : > { %v9249_v62 = vpop.eup %9248 }
 0xf2c   : > { %v2670_v1 = vmul.f32 %v9249_v62, %v9245_v56  ;;  %v8972_v56 = vld [vmem:[%s11452_s10 + $0xc0] ss:$16 sps:$4 sm:$0xff]   ;;  %v9399_v62 = vmov 0  }
 0xf2d   : > { %v9251_v63 = vpop.eup %9250  ;;  %3123 = vmatprep.mubr.bf16.mxu1 %v9399_v62 }
 0xf2e   : > { %v2671_v2 = vmul.f32 %v9251_v63, %v9247_v58  ;;  %v8978_v58 = vld [vmem:[%s11452_s10 + $0xe0] ss:$16 sps:$4 sm:$0xff]  }
 0xf30   : > { %v2672_v5 = vpack.c.bf16 %v2671_v2, %v2670_v1 }
 0xf32   : > { %8419 = vmatmul.mubr.msk.bf16.vlgmr.msra.gmra.mrb[40].mxu0 %vm1085_vm2, %v2672_v5 }
 0xf33   : > { %8423 = vmatpush3.bf16.msra.mxu0 %v8934_v3  ;;  %8426 = vmatprep.mubr.msk.bf16.mxu0 %vm9398_vm0, %v9397_v4 }
 0xf34   : > { %8424 = vmatprep.subr.bf16.mxu0 %v9397_v4 }
 0xf37   : > { %8425 = vmatpush3.bf16.msra.mxu0 %v8935_v6 }
0x1005   : > { %v2711_v7 = vpop.f32.mrb[40].mxu0 }
0x1006   : > { %v8420_v8 = vpop.f32.mrb[41].mxu0 }
0x1007   : > { %v2714_v9 = vpop.f32.mrb[42].mxu0  ;;  %v7123_v8 = vld [vmem:[%s11450_s8] ss:$0 sm:$0xff] }
0x1008   : > { %v2718_v10 = vpack.c.bf16 %v2714_v9, %v2711_v7  ;;  %v8421_v48 = vpop.f32.mrb[43].mxu0 }
0x100a   : > { %8427 = vmatmul.mubr.msk.bf16.vlgmr.msra.gmra.mrb[44].mxu0 %vm1037_vm1, %v2718_v10 }
0x100b   : > { %3080 = vmatprep.mubr.bf16.mxu0 %v9399_v62 }
0x10dd   : > { %v2773_v50 = vpop.f32.mrb[44].mxu0 }
0x10de   : > { %v2780_v12 = vadd.f32 %v2773_v50, %v10126_v18  ;;  %v8428_v13 = vpop.f32.mrb[45].mxu0  ;;  %v8938_v18 = vld [vmem:[%s11452_s10 + $0x4] ss:$16 sps:$4 sm:$0xff]  }
0x10df   : > { %v2776_v14 = vpop.f32.mrb[46].mxu0  ;;  %3048 = vmatprep.subr.bf16.mxu0 %v8938_v18  ;;  %v8990_v18 = vld [vmem:[%s11454_s12 + $0x8] sm:$0xff]  }
0x10e0   : > { %v2789_v15 = vadd.f32 %v7122_v11, %v2780_v12  ;;  %v2781_v16 = vadd.f32 %v2776_v14, %v10129_v21  ;;  %v8429_v17 = vpop.f32.mrb[47].mxu0  ;;  %v8939_v21 = vld [vmem:[%s11452_s10 + $0x8] ss:$16 sps:$4 sm:$0xff]   ;;  %3049 = vmatpush1.bf16.msra.mxu0 %v8936_v23 }
0x10e1   : > { %v8985_v17 = vld [vmem:[%s11454_s12 + $0xc0] sm:$0xff]   ;;  %v8989_v23 = vld [vmem:[%s11454_s12 + $0xc8] sm:$0xff]  }
0x10e2   : > { %v2790_v19 = vadd.f32 %v7122_v11, %v2781_v16  ;;  %v2791_v20 = vadd.f32 %v2789_v15, %v9634_v41  ;;  %v8941_v41 = vld [vmem:[%s11452_s10 + $0xc] ss:$16 sps:$4 sm:$0xff]   ;;  %v7124_v11 = vld [vmem:[%s11451_s9] ss:$0 sm:$0xff] }
0x10e3   : > { %3091 = vmatprep.subr.bf16.mxu1 %v8941_v41  ;;  %v8984_v16 = vld [vmem:[%s11454_s12 + $0x40] sm:$0xff]   ;;  %v8992_v41 = vld [vmem:[%s11454_s12 + $0x50] sm:$0xff]  }
0x10e4   : > { %2795 = vadd.xlane.f32.xlu0 %v2791_v20  ;;  %v2792_v22 = vadd.f32 %v2790_v19, %v9636_v42  ;;  %v8944_v42 = vld [vmem:[%s11452_s10 + $0x24] ss:$16 sps:$4 sm:$0xff]   ;;  %3092 = vmatpush1.bf16.msra.mxu1 %v8939_v21  ;;  %v8991_v21 = vld [vmem:[%s11454_s12 + $0x88] sm:$0xff]  }
0x10e5   : > { %3050 = vmatprep.subr.bf16.mxu0 %v8944_v42  ;;  %3093 = vmatprep.subr.bf16.mxu1 %v8947_v24  ;;  %v8986_v19 = vld [vmem:[%s11454_s12] sm:$0xff]   ;;  %v8993_v42 = vld [vmem:[%s11454_s12 + $0xd0] sm:$0xff]  }
0x10e6   : > { %2797 = vadd.xlane.f32.xlu1 %v2792_v22  ;;  %3051 = vmatpush1.bf16.msra.mxu0 %v8942_v25  ;;  %v8994_v24 = vld [vmem:[%s11454_s12 + $0x10] sm:$0xff]  }
0x10e7   : > { %3052 = vmatprep.subr.bf16.mxu0 %v8950_v33  ;;  %v8995_v25 = vld [vmem:[%s11454_s12 + $0x90] sm:$0xff]   ;;  %v9005_v33 = vld [vmem:[%s11454_s12 + $0xe8] sm:$0xff]  }
0x10e8   : > { %3094 = vmatpush1.bf16.msra.mxu1 %v8945_v26  ;;  %v8996_v26 = vld [vmem:[%s11454_s12 + $0x58] sm:$0xff]  }
0x10e9   : > { %3095 = vmatprep.subr.bf16.mxu1 %v8953_v34  ;;  %v9006_v34 = vld [vmem:[%s11454_s12 + $0x28] sm:$0xff]  }
0x10ea   : > { %3053 = vmatpush1.bf16.msra.mxu0 %v8948_v35  ;;  %v9007_v35 = vld [vmem:[%s11454_s12 + $0xa8] sm:$0xff]  }
0x10eb   : > { %3054 = vmatprep.subr.bf16.mxu0 %v8956_v37  ;;  %v9009_v37 = vld [vmem:[%s11454_s12 + $0xf0] sm:$0xff]  }
0x10ec   : > { %3096 = vmatpush1.bf16.msra.mxu1 %v8951_v36  ;;  %v9008_v36 = vld [vmem:[%s11454_s12 + $0x70] sm:$0xff]  }
0x10ed   : > { %3097 = vmatprep.subr.bf16.mxu1 %v8959_v38  ;;  %v9010_v38 = vld [vmem:[%s11454_s12 + $0x30] sm:$0xff]  }
0x10ee   : > { %3055 = vmatpush1.bf16.msra.mxu0 %v8954_v39  ;;  %v9011_v39 = vld [vmem:[%s11454_s12 + $0xb0] sm:$0xff]  }
0x10ef   : > { %3056 = vmatprep.subr.bf16.mxu0 %v8962_v43  ;;  %v9013_v43 = vld [vmem:[%s11454_s12 + $0xf8] sm:$0xff]  }
0x10f0   : > { %3098 = vmatpush1.bf16.msra.mxu1 %v8957_v40  ;;  %v9012_v40 = vld [vmem:[%s11454_s12 + $0x78] sm:$0xff]  }
0x10f1   : > { %3099 = vmatprep.subr.bf16.mxu1 %v8965_v45  ;;  %v9014_v45 = vld [vmem:[%s11454_s12 + $0x38] sm:$0xff]  }
0x10f2   : > { %3057 = vmatpush1.bf16.msra.mxu0 %v8960_v46  ;;  %v9015_v46 = vld [vmem:[%s11454_s12 + $0xb8] sm:$0xff]  }
0x10f3   : > { %3058 = vmatprep.subr.bf16.mxu0 %v8968_v49 }
0x10f4   : > { %3100 = vmatpush1.bf16.msra.mxu1 %v8963_v47  ;;  %v2868_v47 = vlaneseq }
0x10f5   : > { %3101 = vmatprep.subr.bf16.mxu1 %v8971_v51 }
0x10f6   : > { %3059 = vmatpush1.bf16.msra.mxu0 %v8966_v52  ;;  %v10383_v49 = vshrl.u32 %v2868_v47, 7 }
0x10f7   : > { %3060 = vmatprep.subr.bf16.mxu0 %v8974_v54 }
0x10f8   : > { %3102 = vmatpush1.bf16.msra.mxu1 %v8969_v53  ;;  %v2870_v51 = vsub.s32 0, %v10383_v49  ;;  %v2878_v52 = vsub.s32 2, %v10383_v49  ;;  %v2866_v53 = vld [vmem:[%s11453_s11] sm:$0xf]  ;;  %v2874_v54 = vsub.s32 1, %v10383_v49 }
0x10f9   : > { %3103 = vmatprep.subr.bf16.mxu1 %v8977_v55  ;;  %v2882_v55 = vsub.s32 3, %v10383_v49 }
0x10fa   : > { %3061 = vmatpush1.bf16.msra.mxu0 %v8972_v56  ;;  %v2871_v56 = vrot.slane %v2866_v53, %v2870_v51 }
0x10fb   : > { %3062 = vmatprep.subr.bf16.mxu0 %v8980_v31  ;;  %v2883_v31 = vrot.slane %v2866_v53, %v2882_v55 }
0x10fc   : > { %3104 = vmatpush1.bf16.msra.mxu1 %v8975_v57  ;;  %v2879_v57 = vrot.slane %v2866_v53, %v2878_v52 }
0x10fd   : > { %3105 = vmatprep.subr.bf16.mxu1 %v8983_v60 }
0x10fe   : > { %3063 = vmatpush1.bf16.msra.mxu0 %v8978_v58  ;;  %v2875_v58 = vrot.slane %v2866_v53, %v2874_v54 }
0x10ff   : > { %7868 = vmatprep.subr.bf16.mxu0 %v8984_v16 }
0x1100   : > { %3106 = vmatpush1.bf16.msra.mxu1 %v8981_v59 }
0x1101   : > { %7890 = vmatprep.subr.bf16.mxu1 %v8985_v17 }
0x1171   : > { %v2796_v27 = vpop.xlane.xlu0 %2795 }
0x1172   : > { %v2799_v28 = vmul.f32 0.0078125, %v2796_v27  ;;  %v8997_v27 = vld [vmem:[%s11454_s12 + $0xd8] sm:$0xff]  }
0x1173   : > { %v2798_v44 = vpop.xlane.xlu1 %2797 }
0x1174   : > { %v10189_v29 = vsub.f32 %v2791_v20, %v2799_v28  ;;  %v2800_v61 = vmul.f32 0.0078125, %v2798_v44  ;;  %v8987_v20 = vld [vmem:[%s11454_s12 + $0x80] sm:$0xff]   ;;  %v8998_v28 = vld [vmem:[%s11454_s12 + $0x18] sm:$0xff]  }
0x1175   : > { %v8999_v44 = vld [vmem:[%s11454_s12 + $0x98] sm:$0xff]  }
0x1176   : > { %v10191_v0 = vsub.f32 %v2792_v22, %v2800_v61  ;;  %v2803_v30 = vmul.f32 %v10189_v29, %v10189_v29  ;;  %v8988_v22 = vld [vmem:[%s11454_s12 + $0x48] sm:$0xff]   ;;  %v9001_v61 = vld [vmem:[%s11454_s12 + $0xe0] sm:$0xff]  }
0x1178   : > { %2805 = vadd.xlane.f32.xlu0 %v2803_v30  ;;  %v2804_v32 = vmul.f32 %v10191_v0, %v10191_v0  ;;  %v9003_v30 = vld [vmem:[%s11454_s12 + $0xa0] sm:$0xff]  }
0x117a   : > { %2807 = vadd.xlane.f32.xlu1 %v2804_v32  ;;  %v9004_v32 = vld [vmem:[%s11454_s12 + $0x68] sm:$0xff]  }
0x1205   : > { %v2806_v63 = vpop.xlane.xlu0 %2805 }
0x1206   : > { %v2809_v1 = vmul.f32 0.0078125, %v2806_v63 }
0x1207   : > { %v2808_v2 = vpop.xlane.xlu1 %2807 }
0x1208   : > { %v2811_v3 = vadd.f32 1e-12, %v2809_v1  ;;  %v2810_v5 = vmul.f32 0.0078125, %v2808_v2 }
0x120a   : > { %9252 = vrsqrt.f32 %v2811_v3  ;;  %v2812_v6 = vadd.f32 1e-12, %v2810_v5 }
0x120c   : > { %9254 = vrsqrt.f32 %v2812_v6 }
0x1214   : > { %v9253_v7 = vpop.eup %9252 }
0x1215   : > { %v2815_v9 = vmul.f32 %v9253_v7, %v10189_v29  ;;  %v9000_v29 = vld [vmem:[%s11454_s12 + $0x60] sm:$0xff]  }
0x1216   : > { %v9255_v10 = vpop.eup %9254 }
0x1217   : > { %v2816_v48 = vmul.f32 %v9255_v10, %v10191_v0  ;;  %v2823_v50 = vmul.f32 %v7123_v8, %v2815_v9  ;;  %v9002_v0 = vld [vmem:[%s11454_s12 + $0x20] sm:$0xff]  }
0x1219   : > { %v2824_v12 = vmul.f32 %v7123_v8, %v2816_v48  ;;  %v10279_v13 = vadd.f32 %v7124_v11, %v2823_v50 }
0x121b   : > { %v10281_v14 = vadd.f32 %v7124_v11, %v2824_v12 }
0x121d   : > { %v2833_v15 = vpack.c.bf16 %v10281_v14, %v10279_v13 }
0x121f   : > { %3081 = vmatmul.mubr.bf16.vlgmr.msra.gmra.mrb[48].mxu0 %v2833_v15  ;;  %3124 = vmatmul.mubr.bf16.vlgmr.msra.gmra.mrb[48].mxu1 %v2833_v15 }
0x1220   : > { %7869 = vmatpush3.bf16.msra.mxu0 %v8986_v19  ;;  %7891 = vmatpush3.bf16.msra.mxu1 %v8987_v20 }
0x1221   : > { %7870 = vmatprep.subr.bf16.mxu0 %v8988_v22  ;;  %7892 = vmatprep.subr.bf16.mxu1 %v8989_v23 }
0x1224   : > { %7871 = vmatpush3.bf16.msra.mxu0 %v8990_v18  ;;  %7893 = vmatpush3.bf16.msra.mxu1 %v8991_v21 }
0x1225   : > { %7872 = vmatprep.subr.bf16.mxu0 %v8992_v41  ;;  %7894 = vmatprep.subr.bf16.mxu1 %v8993_v42 }
0x1228   : > { %7873 = vmatpush3.bf16.msra.mxu0 %v8994_v24  ;;  %7895 = vmatpush3.bf16.msra.mxu1 %v8995_v25 }
0x1229   : > { %7874 = vmatprep.subr.bf16.mxu0 %v8996_v26  ;;  %7896 = vmatprep.subr.bf16.mxu1 %v8997_v27 }
0x122c   : > { %7875 = vmatpush3.bf16.msra.mxu0 %v8998_v28  ;;  %7897 = vmatpush3.bf16.msra.mxu1 %v8999_v44 }
0x122d   : > { %7876 = vmatprep.subr.bf16.mxu0 %v9000_v29  ;;  %7898 = vmatprep.subr.bf16.mxu1 %v9001_v61 }
0x1230   : > { %7877 = vmatpush3.bf16.msra.mxu0 %v9002_v0  ;;  %7899 = vmatpush3.bf16.msra.mxu1 %v9003_v30 }
0x1231   : > { %7878 = vmatprep.subr.bf16.mxu0 %v9004_v32  ;;  %7900 = vmatprep.subr.bf16.mxu1 %v9005_v33 }
0x1234   : > { %7879 = vmatpush3.bf16.msra.mxu0 %v9006_v34  ;;  %7901 = vmatpush3.bf16.msra.mxu1 %v9007_v35 }
0x1235   : > { %7880 = vmatprep.subr.bf16.mxu0 %v9008_v36  ;;  %7902 = vmatprep.subr.bf16.mxu1 %v9009_v37 }
0x1238   : > { %7881 = vmatpush3.bf16.msra.mxu0 %v9010_v38  ;;  %7903 = vmatpush3.bf16.msra.mxu1 %v9011_v39 }
0x1239   : > { %7882 = vmatprep.subr.bf16.mxu0 %v9012_v40  ;;  %7904 = vmatprep.subr.bf16.mxu1 %v9013_v43 }
0x123c   : > { %7883 = vmatpush3.bf16.msra.mxu0 %v9014_v45  ;;  %7905 = vmatpush3.bf16.msra.mxu1 %v9015_v46 }
0x123d   : > { %8430 = vmatprep.subr.bf16.mxu0 %v9397_v4  ;;  %8450 = vmatprep.subr.bf16.mxu1 %v9397_v4 }
0x12f2   : > { %v3082_v59 = vpop.f32.mrb[48].mxu0  ;;  %v3125_v60 = vpop.f32.mrb[48].mxu1 }
0x12f3   : > { %v10400_v63 = vadd.f32 %v3082_v59, %v2871_v56  ;;  %v10402_v1 = vadd.f32 %v3125_v60, %v2879_v57  ;;  %v3084_v2 = vpop.f32.mrb[49].mxu0  ;;  %v3127_v3 = vpop.f32.mrb[49].mxu1 }
0x12f4   : > { %v10404_v5 = vadd.f32 %v3084_v2, %v2875_v58  ;;  %v10406_v6 = vadd.f32 %v3127_v3, %v2883_v31  ;;  %v3086_v7 = vpop.f32.mrb[50].mxu0  ;;  %v3129_v8 = vpop.f32.mrb[50].mxu1 }
0x12f5   : > { %v3142_v9 = vmul.f32 0.044715, %v10400_v63  ;;  %v3144_v10 = vmul.f32 0.044715, %v10402_v1  ;;  %v3087_v48 = vadd.f32 %v3086_v7, %v2871_v56  ;;  %v3130_v50 = vadd.f32 %v3129_v8, %v2879_v57  ;;  %v3088_v11 = vpop.f32.mrb[51].mxu0  ;;  %v3131_v12 = vpop.f32.mrb[51].mxu1 }
0x12f6   : > { %v3143_v15 = vmul.f32 0.044715, %v10404_v5  ;;  %v3145_v16 = vmul.f32 0.044715, %v10406_v6  ;;  %v10412_v17 = vadd.f32 %v3088_v11, %v2875_v58  ;;  %v10414_v19 = vadd.f32 %v3131_v12, %v2883_v31 }
0x12f7   : > { %v3150_v20 = vmul.f32 %v3142_v9, %v10400_v63  ;;  %v3152_v22 = vmul.f32 %v3144_v10, %v10402_v1  ;;  %v3146_v23 = vmul.f32 0.044715, %v3087_v48  ;;  %v3148_v18 = vmul.f32 0.044715, %v3130_v50 }
0x12f8   : > { %v3151_v21 = vmul.f32 %v3143_v15, %v10404_v5  ;;  %v3153_v41 = vmul.f32 %v3145_v16, %v10406_v6  ;;  %v3147_v42 = vmul.f32 0.044715, %v10412_v17  ;;  %v3149_v24 = vmul.f32 0.044715, %v10414_v19 }
0x12f9   : > { %v3158_v25 = vmul.f32 %v3150_v20, %v10400_v63  ;;  %v3160_v26 = vmul.f32 %v3152_v22, %v10402_v1  ;;  %v3154_v27 = vmul.f32 %v3146_v23, %v3087_v48  ;;  %v3156_v28 = vmul.f32 %v3148_v18, %v3130_v50 }
0x12fa   : > { %v3159_v44 = vmul.f32 %v3151_v21, %v10404_v5  ;;  %v3161_v29 = vmul.f32 %v3153_v41, %v10406_v6  ;;  %v3155_v61 = vmul.f32 %v3147_v42, %v10412_v17  ;;  %v3157_v0 = vmul.f32 %v3149_v24, %v10414_v19 }
0x12fb   : > { %v3166_v30 = vadd.f32 %v3158_v25, %v10400_v63  ;;  %v3168_v32 = vadd.f32 %v3160_v26, %v10402_v1  ;;  %v3162_v33 = vmul.f32 %v3154_v27, %v3087_v48  ;;  %v3164_v34 = vmul.f32 %v3156_v28, %v3130_v50 }
0x12fc   : > { %v3163_v35 = vmul.f32 %v3155_v61, %v10412_v17  ;;  %v3165_v36 = vmul.f32 %v3157_v0, %v10414_v19  ;;  %v3167_v43 = vadd.f32 %v3159_v44, %v10404_v5  ;;  %v3169_v53 = vadd.f32 %v3161_v29, %v10406_v6 }
0x12fd   : > { %v3174_v37 = vmul.f32 0.7978846, %v3166_v30  ;;  %v3176_v38 = vmul.f32 0.7978846, %v3168_v32  ;;  %v3170_v39 = vadd.f32 %v3162_v33, %v3087_v48  ;;  %v3172_v40 = vadd.f32 %v3164_v34, %v3130_v50 }
0x12fe   : > { %v3171_v45 = vadd.f32 %v3163_v35, %v10412_v17  ;;  %v3175_v56 = vmul.f32 0.7978846, %v3167_v43  ;;  %v3173_v58 = vadd.f32 %v3165_v36, %v10414_v19  ;;  %v3177_v31 = vmul.f32 0.7978846, %v3169_v53 }
0x12ff   : > { %9256 = vtanh.f32 %v3174_v37  ;;  %v3178_v46 = vmul.f32 0.7978846, %v3170_v39  ;;  %v3180_v47 = vmul.f32 0.7978846, %v3172_v40  ;;  %v3134_v10 = vmul.f32 0.5, %v10400_v63 }
0x1300   : > { %9258 = vtanh.f32 %v3176_v38  ;;  %v3179_v57 = vmul.f32 0.7978846, %v3171_v45  ;;  %v3181_v59 = vmul.f32 0.7978846, %v3173_v58  ;;  %v3138_v11 = vmul.f32 0.5, %v3087_v48 }
0x1301   : > { %9260 = vtanh.f32 %v3178_v46  ;;  %v3136_v16 = vmul.f32 0.5, %v10402_v1  ;;  %v3140_v20 = vmul.f32 0.5, %v3130_v50  ;;  %v3135_v18 = vmul.f32 0.5, %v10404_v5 }
0x1302   : > { %9262 = vtanh.f32 %v3180_v47  ;;  %v3139_v25 = vmul.f32 0.5, %v10412_v17  ;;  %v3137_v48 = vmul.f32 0.5, %v10406_v6  ;;  %v3141_v44 = vmul.f32 0.5, %v10414_v19  ;;  %v7157_v17 = vld [vmem:[%s11455_s13] ss:$0 sm:$0xff] }
0x1303   : > { %9264 = vtanh.f32 %v3175_v56 }
0x1304   : > { %9266 = vtanh.f32 %v3179_v57 }
0x1305   : > { %9268 = vtanh.f32 %v3177_v31 }
0x1306   : > { %9270 = vtanh.f32 %v3181_v59 }
0x1309   : > { %v9257_v60 = vpop.eup %9256 }
0x130a   : > { %v9259_v2 = vpop.eup %9258  ;;  %v3190_v3 = vadd.f32 1.0, %v9257_v60  ;;  %v9016_v60 = vld [vmem:[%s11489_s3 + $0x300] sm:$0xff]  }
0x130b   : > { %v9261_v7 = vpop.eup %9260  ;;  %v3192_v8 = vadd.f32 1.0, %v9259_v2  ;;  %v9017_v2 = vld [vmem:[%s11489_s3 + $0x400] sm:$0xff]  }
0x130c   : > { %v9263_v9 = vpop.eup %9262  ;;  %v3194_v12 = vadd.f32 1.0, %v9261_v7  ;;  %v3198_v41 = vmul.f32 %v3190_v3, %v3134_v10  ;;  %v9018_v3 = vld [vmem:[%s11489_s3 + $0x308] sm:$0xff]  }
0x130d   : > { %v9265_v15 = vpop.eup %9264  ;;  %v3196_v22 = vadd.f32 1.0, %v9263_v9  ;;  %v3200_v27 = vmul.f32 %v3192_v8, %v3136_v16  ;;  %v9020_v16 = vld [vmem:[%s11489_s3 + $0x310] sm:$0xff]  }
0x130e   : > { %v9267_v23 = vpop.eup %9266  ;;  %v3191_v21 = vadd.f32 1.0, %v9265_v15  ;;  %v3202_v42 = vmul.f32 %v3194_v12, %v3138_v11 }
0x130f   : > { %v9269_v24 = vpop.eup %9268  ;;  %v3195_v26 = vadd.f32 1.0, %v9267_v23  ;;  %v3204_v28 = vmul.f32 %v3196_v22, %v3140_v20  ;;  %v9021_v20 = vld [vmem:[%s11489_s3 + $0x410] sm:$0xff]   ;;  %v9022_v22 = vld [vmem:[%s11489_s3 + $0x318] sm:$0xff]  }
0x1310   : > { %v9271_v63 = vpop.eup %9270  ;;  %v3193_v1 = vadd.f32 1.0, %v9269_v24  ;;  %v3206_v50 = vpack.c.bf16 %v3202_v42, %v3198_v41  ;;  %v3199_v29 = vmul.f32 %v3191_v21, %v3135_v18  ;;  %v9023_v23 = vld [vmem:[%s11489_s3 + $0x418] sm:$0xff]   ;;  %v9024_v18 = vld [vmem:[%s11489_s3 + $0x320] sm:$0xff]   ;;  %v9026_v41 = vld [vmem:[%s11489_s3 + $0x328] sm:$0xff]  }
0x1311   : > { %v3203_v61 = vmul.f32 %v3195_v26, %v3139_v25  ;;  %v3197_v0 = vadd.f32 1.0, %v9271_v63  ;;  %v3208_v5 = vpack.c.bf16 %v3204_v28, %v3200_v27  ;;  %v9025_v21 = vld [vmem:[%s11489_s3 + $0x420] sm:$0xff]   ;;  %v9027_v42 = vld [vmem:[%s11489_s3 + $0x428] sm:$0xff]   ;;  %v9028_v24 = vld [vmem:[%s11489_s3 + $0x330] sm:$0xff]  }
0x1312   : > { %v3201_v32 = vmul.f32 %v3193_v1, %v3137_v48  ;;  %v9029_v25 = vld [vmem:[%s11489_s3 + $0x430] sm:$0xff]   ;;  %v9030_v26 = vld [vmem:[%s11489_s3 + $0x338] sm:$0xff]  }
0x1313   : > { %v3207_v30 = vpack.c.bf16 %v3203_v61, %v3199_v29  ;;  %v3205_v33 = vmul.f32 %v3197_v0, %v3141_v44  ;;  %v9031_v27 = vld [vmem:[%s11489_s3 + $0x438] sm:$0xff]   ;;  %v7190_v61 = vld [vmem:[%s11456_s14] ss:$0 sm:$0xff] }
0x1315   : > { %3505 = vmatprep.mubr.bf16.mxu0 %v3207_v30  ;;  %v3209_v34 = vpack.c.bf16 %v3205_v33, %v3201_v32  ;;  %v7191_v33 = vld [vmem:[%s11457_s15] ss:$0 sm:$0xff] }
0x1316   : > { %3506 = vmatmul.mubr.bf16.vlgmr.msra.gmra.mrb[52].mxu0 %v3206_v50 }
0x1317   : > { %3546 = vmatprep.mubr.bf16.mxu1 %v3209_v34  ;;  %8446 = vmatprep.mubr.msk.bf16.mxu0 %vm9398_vm0, %v9397_v4 }
0x1318   : > { %3547 = vmatmul.mubr.bf16.vlgmr.msra.gmra.mrb[52].mxu1 %v3208_v5  ;;  %8431 = vmatpush3.bf16.msra.mxu0 %v9016_v60  ;;  %v7209_v60 = vld [vmem:[%s11447_s5 + $0xc] ss:$0 sm:$0xff] }
0x1319   : > { %8466 = vmatprep.mubr.msk.bf16.mxu1 %vm9398_vm0, %v9397_v4  ;;  %8451 = vmatpush3.bf16.msra.mxu1 %v9017_v2 }
0x131a   : > { %8432 = vmatprep.subr.bf16.mxu0 %v9397_v4  ;;  %8452 = vmatprep.subr.bf16.mxu1 %v9397_v4 }
0x131c   : > { %8433 = vmatpush3.bf16.msra.mxu0 %v9018_v3  ;;  %v7235_v3 = vld [vmem:[%s11447_s5 + $0x10] ss:$0 sm:$0xff] }
0x131d   : > { %8434 = vmatprep.subr.bf16.mxu0 %v9397_v4 }
0x1320   : > { %8435 = vmatpush3.bf16.msra.mxu0 %v9020_v16 }
0x1321   : > { %8436 = vmatprep.subr.bf16.mxu0 %v9397_v4 }
0x1324   : > { %8437 = vmatpush3.bf16.msra.mxu0 %v9022_v22 }
0x1325   : > { %8438 = vmatprep.subr.bf16.mxu0 %v9397_v4 }
0x1328   : > { %8439 = vmatpush3.bf16.msra.mxu0 %v9024_v18 }
0x1329   : > { %8440 = vmatprep.subr.bf16.mxu0 %v9397_v4 }
0x132c   : > { %8441 = vmatpush3.bf16.msra.mxu0 %v9026_v41 }
0x132d   : > { %8442 = vmatprep.subr.bf16.mxu0 %v9397_v4 }
0x1330   : > { %8443 = vmatpush3.bf16.msra.mxu0 %v9028_v24 }
0x1331   : > { %8444 = vmatprep.subr.bf16.mxu0 %v9397_v4 }
0x1334   : > { %8445 = vmatpush3.bf16.msra.mxu0 %v9030_v26 }
0x1335   : > { %8470 = vmatprep.subr.bf16.mxu0 %v9397_v4 }
0x13e9   : > { %v7884_v6 = vpop.f32.mrb[52].mxu0 }
0x13ea   : > { %v7885_v19 = vpop.f32.mrb[53].mxu0 }
0x13eb   : > { %v7906_v35 = vpop.f32.mrb[52].mxu1  ;;  %v7886_v36 = vadd.f32 %v7885_v19, %v7884_v6  ;;  %v7887_v37 = vpop.f32.mrb[54].mxu0  ;;  %v9032_v19 = vld [vmem:[%s11489_s3 + $0x500] sm:$0xff]  }
0x13ec   : > { %v7907_v38 = vpop.f32.mrb[53].mxu1  ;;  %v7888_v39 = vpop.f32.mrb[55].mxu0 }
0x13ed   : > { %v3508_v40 = vadd.f32 %v7886_v36, %v7157_v17  ;;  %v7908_v43 = vadd.f32 %v7907_v38, %v7906_v35  ;;  %v7909_v45 = vpop.f32.mrb[54].mxu1  ;;  %v7889_v46 = vadd.f32 %v7888_v39, %v7887_v37  ;;  %v9033_v36 = vld [vmem:[%s11489_s3 + $0x508] sm:$0xff]   ;;  %v9034_v37 = vld [vmem:[%s11489_s3 + $0x510] sm:$0xff]   ;;  %v9035_v38 = vld [vmem:[%s11489_s3 + $0x518] sm:$0xff]  }
0x13ee   : > { %v7910_v47 = vpop.f32.mrb[55].mxu1  ;;  %v9036_v39 = vld [vmem:[%s11489_s3 + $0x520] sm:$0xff]  }
0x13ef   : > { %v3549_v53 = vadd.f32 %v7908_v43, %v3508_v40  ;;  %v3511_v56 = vadd.f32 %v7889_v46, %v7157_v17  ;;  %v7911_v57 = vadd.f32 %v7910_v47, %v7909_v45  ;;  %v9037_v40 = vld [vmem:[%s11489_s3 + $0x528] sm:$0xff]   ;;  %v9038_v43 = vld [vmem:[%s11489_s3 + $0x530] sm:$0xff]   ;;  %v9039_v45 = vld [vmem:[%s11489_s3 + $0x538] sm:$0xff]  }
0x13f0   : > { %v9040_v46 = vld [vmem:[%s11489_s3 + $0x440] sm:$0xff]   ;;  %v9041_v47 = vld [vmem:[%s11489_s3 + $0x448] sm:$0xff]  }
0x13f1   : > { %v3552_v58 = vadd.f32 %v7911_v57, %v3511_v56  ;;  %v3555_v31 = vadd.f32 %v3549_v53, %v10279_v13  ;;  %v9019_v13 = vld [vmem:[%s11489_s3 + $0x408] sm:$0xff]   ;;  %v9042_v53 = vld [vmem:[%s11489_s3 + $0x450] sm:$0xff]   ;;  %v9043_v56 = vld [vmem:[%s11489_s3 + $0x458] sm:$0xff]  }
0x13f2   : > { %8453 = vmatpush3.bf16.msra.mxu1 %v9019_v13  ;;  %v9044_v57 = vld [vmem:[%s11489_s3 + $0x460] sm:$0xff]  }
0x13f3   : > { %3559 = vadd.xlane.f32.xlu0 %v3555_v31  ;;  %v3556_v59 = vadd.f32 %v3552_v58, %v10281_v14  ;;  %8454 = vmatprep.subr.bf16.mxu1 %v9397_v4  ;;  %v9045_v58 = vld [vmem:[%s11489_s3 + $0x468] sm:$0xff]  }
0x13f5   : > { %3561 = vadd.xlane.f32.xlu1 %v3556_v59 }
0x13f6   : > { %8455 = vmatpush3.bf16.msra.mxu1 %v9021_v20 }
0x13f7   : > { %8456 = vmatprep.subr.bf16.mxu1 %v9397_v4 }
0x13fa   : > { %8457 = vmatpush3.bf16.msra.mxu1 %v9023_v23 }
0x13fb   : > { %8458 = vmatprep.subr.bf16.mxu1 %v9397_v4 }
0x13fe   : > { %8459 = vmatpush3.bf16.msra.mxu1 %v9025_v21  ;;  %v7261_v21 = vld [vmem:[%s11447_s5 + $0x14] ss:$0 sm:$0xff] }
0x13ff   : > { %8460 = vmatprep.subr.bf16.mxu1 %v9397_v4 }
0x1402   : > { %8461 = vmatpush3.bf16.msra.mxu1 %v9027_v42 }
0x1403   : > { %8462 = vmatprep.subr.bf16.mxu1 %v9397_v4 }
0x1406   : > { %8463 = vmatpush3.bf16.msra.mxu1 %v9029_v25 }
0x1407   : > { %8464 = vmatprep.subr.bf16.mxu1 %v9397_v4 }
0x140a   : > { %8465 = vmatpush3.bf16.msra.mxu1 %v9031_v27 }
0x140b   : > { %8490 = vmatprep.subr.bf16.mxu1 %v9397_v4 }
0x1480   : > { %v3560_v14 = vpop.xlane.xlu0 %3559 }
0x1481   : > { %v3563_v7 = vmul.f32 0.0078125, %v3560_v14 }
0x1482   : > { %v3562_v8 = vpop.xlane.xlu1 %3561 }
0x1483   : > { %v3565_v9 = vsub.f32 %v3555_v31, %v3563_v7  ;;  %v3564_v10 = vmul.f32 0.0078125, %v3562_v8  ;;  %v9046_v31 = vld [vmem:[%s11489_s3 + $0x470] sm:$0xff]  }
0x1485   : > { %v3566_v11 = vsub.f32 %v3556_v59, %v3564_v10  ;;  %v3567_v12 = vmul.f32 %v3565_v9, %v3565_v9  ;;  %v9047_v59 = vld [vmem:[%s11489_s3 + $0x478] sm:$0xff]  }
0x1487   : > { %3569 = vadd.xlane.f32.xlu0 %v3567_v12  ;;  %v3568_v15 = vmul.f32 %v3566_v11, %v3566_v11 }
0x1489   : > { %3571 = vadd.xlane.f32.xlu1 %v3568_v15 }
0x1514   : > { %v3570_v28 = vpop.xlane.xlu0 %3569 }
0x1515   : > { %v3573_v63 = vmul.f32 0.0078125, %v3570_v28 }
0x1516   : > { %v3572_v48 = vpop.xlane.xlu1 %3571 }
0x1517   : > { %v3575_v44 = vadd.f32 1e-12, %v3573_v63  ;;  %v3574_v1 = vmul.f32 0.0078125, %v3572_v48  ;;  %v7319_v63 = vld [vmem:[%s11447_s5 + $0x11] ss:$0 sm:$0xff] }
0x1519   : > { %9272 = vrsqrt.f32 %v3575_v44  ;;  %v3576_v50 = vadd.f32 1e-12, %v3574_v1 }
0x151b   : > { %9274 = vrsqrt.f32 %v3576_v50 }
0x1523   : > { %v9273_v29 = vpop.eup %9272 }
0x1524   : > { %v3579_v0 = vmul.f32 %v9273_v29, %v3565_v9 }
0x1525   : > { %v9275_v5 = vpop.eup %9274 }
0x1526   : > { %v3587_v30 = vmul.f32 %v7190_v61, %v3579_v0  ;;  %v3580_v32 = vmul.f32 %v9275_v5, %v3566_v11 }
0x1528   : > { %v3588_v34 = vmul.f32 %v7190_v61, %v3580_v32  ;;  %v10521_v6 = vadd.f32 %v7191_v33, %v3587_v30  ;;  %v10626_v32 = vld [vmem:[%s9743_s26] ss:$0 sm:$0xff]  ;;  %s9339_s26 = scalar_lea.vmem %s9338_s23, 32 }
0x1529   : > { %p9341_p2 = scmp.lt.s32.totalorder %s9339_s26, %s9333_s30 }
0x152a   : > { %v10523_v17 = vadd.f32 %v7191_v33, %v3588_v34 }
0x152b   : > { %p9342_p3 = por %p9341_p2, %p9340_p1 }
0x152c   : > { %v10530_v35 = vpack.c.bf16 %v10523_v17, %v10521_v6 }
0x152d   : > { %p9343_p4 = pnand %p9342_p3, %p9336_p0 }
0x152e   : > { %8447 = vmatmul.mubr.bf16.vlgmr.msra.gmra.mrb[56].mxu0 %v10530_v35  ;;  %8467 = vmatmul.mubr.bf16.vlgmr.msra.gmra.mrb[56].mxu1 %v10530_v35 }
0x152f   : > { %8471 = vmatpush3.bf16.msra.mxu0 %v9032_v19  ;;  %8486 = vmatprep.mubr.msk.bf16.mxu0 %vm9398_vm0, %v9397_v4 }
0x1530   : > { %8472 = vmatprep.subr.bf16.mxu0 %v9397_v4  ;;  %8492 = vmatprep.mubr.msk.bf16.mxu1 %vm9398_vm0, %v9397_v4 }
0x1533   : > { %8473 = vmatpush3.bf16.msra.mxu0 %v9033_v36 }
0x1534   : > { %8474 = vmatprep.subr.bf16.mxu0 %v9397_v4 }
0x1537   : > { %8475 = vmatpush3.bf16.msra.mxu0 %v9034_v37 }
0x1538   : > { %8476 = vmatprep.subr.bf16.mxu0 %v9397_v4 }
0x153b   : > { %8477 = vmatpush3.bf16.msra.mxu0 %v9035_v38 }
0x153c   : > { %8478 = vmatprep.subr.bf16.mxu0 %v9397_v4 }
0x153f   : > { %8479 = vmatpush3.bf16.msra.mxu0 %v9036_v39 }
0x1540   : > { %8480 = vmatprep.subr.bf16.mxu0 %v9397_v4 }
0x1543   : > { %8481 = vmatpush3.bf16.msra.mxu0 %v9037_v40 }
0x1544   : > { %8482 = vmatprep.subr.bf16.mxu0 %v9397_v4 }
0x1547   : > { %8483 = vmatpush3.bf16.msra.mxu0 %v9038_v43 }
0x1548   : > { %8484 = vmatprep.subr.bf16.mxu0 %v9397_v4 }
0x154b   : > { %8485 = vmatpush3.bf16.msra.mxu0 %v9039_v45 }
0x154c   : > { %8522 = vmatprep.subr.bf16.mxu0 %v9397_v4 }
0x154e   : > { %8487 = vmatmul.mubr.bf16.vlgmr.msra.gmra.mrb[60].mxu0 %v10530_v35 }
0x154f   : > { %8523 = vmatpush3.bf16.msra.mxu0 %v9040_v46  ;;  %8538 = vmatprep.mubr.msk.bf16.mxu0 %vm9398_vm0, %v9397_v4 }
0x1550   : > { %8524 = vmatprep.subr.bf16.mxu0 %v9397_v4 }
0x1553   : > { %8525 = vmatpush3.bf16.msra.mxu0 %v9041_v47 }
0x1554   : > { %8526 = vmatprep.subr.bf16.mxu0 %v9397_v4 }
0x1557   : > { %8527 = vmatpush3.bf16.msra.mxu0 %v9042_v53 }
0x1558   : > { %8528 = vmatprep.subr.bf16.mxu0 %v9397_v4 }
0x155b   : > { %8529 = vmatpush3.bf16.msra.mxu0 %v9043_v56 }
0x155c   : > { %8530 = vmatprep.subr.bf16.mxu0 %v9397_v4 }
0x155f   : > { %8531 = vmatpush3.bf16.msra.mxu0 %v9044_v57 }
0x1560   : > { %8532 = vmatprep.subr.bf16.mxu0 %v9397_v4 }
0x1563   : > { %8533 = vmatpush3.bf16.msra.mxu0 %v9045_v58 }
0x1564   : > { %8534 = vmatprep.subr.bf16.mxu0 %v9397_v4 }
0x1567   : > { %8535 = vmatpush3.bf16.msra.mxu0 %v9046_v31 }
0x1568   : > { %8536 = vmatprep.subr.bf16.mxu0 %v9397_v4 }
0x156b   : > { %8537 = vmatpush3.bf16.msra.mxu0 %v9047_v59 }
0x156c   : > { %8562 = vmatprep.subr.bf16.mxu0 %v9397_v4 }
0x156e   : > { %8539 = vmatmul.mubr.bf16.vlgmr.msra.gmra.mrb[64].mxu0 %v10530_v35 }
0x156f   : > { %8564 = vmatprep.mubr.msk.bf16.mxu0 %vm9398_vm0, %v9397_v4 }
0x1601   : > { %v3705_v2 = vpop.f32.mrb[56].mxu0  ;;  %v3819_v13 = vpop.f32.mrb[56].mxu1 }
0x1602   : > { %v8448_v14 = vpop.f32.mrb[57].mxu0  ;;  %v8468_v7 = vpop.f32.mrb[57].mxu1  ;;  %v3706_v10 = vadd.f32 %v7209_v60, %v3705_v2  ;;  %v3820_v11 = vadd.f32 %v7235_v3, %v3819_v13 }
0x1603   : > { %v3708_v8 = vpop.f32.mrb[58].mxu0  ;;  %v3822_v9 = vpop.f32.mrb[58].mxu1  ;;  %v9048_v7 = vld [vmem:[%s11489_s3 + $0x340] sm:$0xff]  }
0x1604   : > { %v3709_v12 = vadd.f32 %v7209_v60, %v3708_v8  ;;  %v3823_v15 = vadd.f32 %v7235_v3, %v3822_v9  ;;  %v8449_v16 = vpop.f32.mrb[59].mxu0  ;;  %v8469_v20 = vpop.f32.mrb[59].mxu1  ;;  %v9049_v9 = vld [vmem:[%s11489_s3 + $0x348] sm:$0xff]  }
0x1605   : > { %v9054_v16 = vld [vmem:[%s11489_s3 + $0x370] sm:$0xff]   ;;  %v9055_v20 = vld [vmem:[%s11489_s3 + $0x378] sm:$0xff]  }
0x1606   : > { %v3940_v22 = vpack.c.bf16 %v3709_v12, %v3706_v10  ;;  %v3941_v23 = vpack.c.bf16 %v3823_v15, %v3820_v11  ;;  %v9050_v10 = vld [vmem:[%s11489_s3 + $0x350] sm:$0xff]   ;;  %v9051_v11 = vld [vmem:[%s11489_s3 + $0x358] sm:$0xff]   ;;  %v9052_v12 = vld [vmem:[%s11489_s3 + $0x360] sm:$0xff]  }
0x1607   : > { %v9053_v15 = vld [vmem:[%s11489_s3 + $0x368] sm:$0xff]  }
0x1608   : > { %v3946_v18 = vsel %vm1037_vm1, %v3941_v23, 0  ;;  %v9057_v23 = vld [vmem:[%s11489_s3 + $0x548] sm:$0xff]  }
0x1609   : > { %8491 = vmatpush3.bf16.xpose.msra.mxu1 %v3946_v18  ;;  %v9058_v18 = vld [vmem:[%s11489_s3 + $0x550] sm:$0xff]  }
0x160a   : > { %8496 = vmatprep.subr.bf16.mxu1 %v9397_v4 }
0x1610   : > { %8493 = vmatmul.mubr.msk.bf16.vlgmr.msra.gmra.mrb[60].mxu1 %vm1037_vm1, %v3940_v22  ;;  %v9056_v22 = vld [vmem:[%s11489_s3 + $0x540] sm:$0xff]  }
0x1611   : > { %8498 = vmatprep.mubr.msk.bf16.mxu1 %vm9398_vm0, %v9397_v4 }
0x1621   : > { %v3933_v41 = vpop.f32.mrb[60].mxu0 }
0x1622   : > { %v8488_v42 = vpop.f32.mrb[61].mxu0  ;;  %v3934_v25 = vadd.f32 %v7261_v21, %v3933_v41  ;;  %v9060_v41 = vld [vmem:[%s11489_s3 + $0x560] sm:$0xff]  }
0x1623   : > { %v3936_v24 = vpop.f32.mrb[62].mxu0  ;;  %v9061_v42 = vld [vmem:[%s11489_s3 + $0x568] sm:$0xff]  }
0x1624   : > { %v3937_v26 = vadd.f32 %v7261_v21, %v3936_v24  ;;  %v8489_v27 = vpop.f32.mrb[63].mxu0  ;;  %v9059_v21 = vld [vmem:[%s11489_s3 + $0x558] sm:$0xff]   ;;  %v9062_v24 = vld [vmem:[%s11489_s3 + $0x570] sm:$0xff]  }
0x1625   : > { %v9065_v27 = vld [vmem:[%s11448_s6 + $0x48] sm:$0xff]  }
0x1626   : > { %v4012_v28 = vpack.c.bf16 %v3937_v26, %v3934_v25  ;;  %v9063_v25 = vld [vmem:[%s11489_s3 + $0x578] sm:$0xff]   ;;  %v9064_v26 = vld [vmem:[%s11448_s6 + $0x40] sm:$0xff]  }
0x1628   : > { %8497 = vmatpush3.bf16.msra.mxu1 %v4012_v28 }
0x1629   : > { %8502 = vmatprep.subr.bf16.mxu1 %v9397_v4 }
0x1641   : > { %v4284_v48 = vpop.f32.mrb[64].mxu0 }
0x1642   : > { %v8540_v44 = vpop.f32.mrb[65].mxu0  ;;  %v4285_v50 = vadd.f32 %v7319_v63, %v4284_v48 }
0x1643   : > { %v4287_v1 = vpop.f32.mrb[66].mxu0  ;;  %v9066_v44 = vld [vmem:[%s11489_s3 + $0x480] sm:$0xff]  }
0x1644   : > { %v4288_v29 = vadd.f32 %v7319_v63, %v4287_v1  ;;  %v8541_v61 = vpop.f32.mrb[67].mxu0 }
0x1645   : > { %v9068_v61 = vld [vmem:[%s11489_s3 + $0x490] sm:$0xff]  }
0x1646   : > { %v4406_v0 = vpack.c.bf16 %v4288_v29, %v4285_v50  ;;  %v9067_v29 = vld [vmem:[%s11489_s3 + $0x488] sm:$0xff]  }
0x1648   : > { %v4411_v5 = vsel %vm1037_vm1, %v4406_v0, 0  ;;  %v9069_v0 = vld [vmem:[%s11489_s3 + $0x498] sm:$0xff]  }
0x1649   : > { %8563 = vmatpush3.bf16.xpose.msra.mxu0 %v4411_v5  ;;  %v9070_v5 = vld [vmem:[%s11489_s3 + $0x4a0] sm:$0xff]  }
0x164a   : > { %8568 = vmatprep.subr.bf16.mxu0 %v9397_v4 }
0x16e3   : > { %v3982_v30 = vpop.f32.mrb[60].mxu1 }
0x16e4   : > { %v3983_v33 = vadd.f32 %v10626_v32, %v3982_v30  ;;  %v8494_v34 = vpop.f32.mrb[61].mxu1  ;;  %v9071_v30 = vld [vmem:[%s11489_s3 + $0x4a8] sm:$0xff]  }
0x16e5   : > { %v3985_v19 = vpop.f32.mrb[62].mxu1  ;;  %v9073_v34 = vld [vmem:[%s11489_s3 + $0x4b8] sm:$0xff]  }
0x16e6   : > { %v3986_v36 = vadd.f32 %v10626_v32, %v3985_v19  ;;  %v8495_v37 = vpop.f32.mrb[63].mxu1  ;;  %v3989_v38 = vsel %vm1085_vm2, %v3983_v33, -inf  ;;  %v7293_v19 = vld [vmem:[%s11447_s5 + $0xd] ss:$0 sm:$0xff] }
0x16e7   : > { %3990 = vmax.xlane.f32.xlu0 %v3989_v38 }
0x16e8   : > { %v3992_v39 = vsel %vm1085_vm2, %v3986_v36, -inf }
0x16e9   : > { %3993 = vmax.xlane.f32.xlu1 %v3992_v39 }
0x1774   : > { %v3991_v40 = vpop.xlane.xlu0 %3990 }
0x1775   : > { %v3995_v43 = vsub.f32 %v3983_v33, %v3991_v40  ;;  %v9072_v33 = vld [vmem:[%s11489_s3 + $0x4b0] sm:$0xff]  }
0x1776   : > { %v3994_v45 = vpop.xlane.xlu1 %3993 }
0x1777   : > { %v3997_v46 = vmul.f32 1.442695, %v3995_v43  ;;  %v3996_v47 = vsub.f32 %v3986_v36, %v3994_v45 }
0x1779   : > { %9276 = vpow2.f32 %v3997_v46  ;;  %v3999_v53 = vmul.f32 1.442695, %v3996_v47  ;;  %v7345_v46 = vld [vmem:[%s11447_s5 + $0x15] ss:$0 sm:$0xff] }
0x177b   : > { %9278 = vpow2.f32 %v3999_v53 }
0x1783   : > { %v9277_v56 = vpop.eup %9276 }
0x1784   : > { %v4001_v57 = vsel %vm1085_vm2, %v9277_v56, 0.0 }
0x1785   : > { %v9279_v58 = vpop.eup %9278  ;;  %4002 = vadd.xlane.f32.xlu0 %v4001_v57 }
0x1786   : > { %v4004_v31 = vsel %vm1085_vm2, %v9279_v58, 0.0 }
0x1787   : > { %4005 = vadd.xlane.f32.xlu1 %v4004_v31 }
0x1812   : > { %v4003_v59 = vpop.xlane.xlu0 %4002 }
0x1813   : > { %9280 = vrcp.f32 %v4003_v59 }
0x1814   : > { %v4006_v60 = vpop.xlane.xlu1 %4005 }
0x1815   : > { %9282 = vrcp.f32 %v4006_v60 }
0x181d   : > { %v9281_v2 = vpop.eup %9280 }
0x181e   : > { %v4009_v13 = vmul.f32 %v9281_v2, %v9277_v56 }
0x181f   : > { %v9283_v3 = vpop.eup %9282 }
0x1820   : > { %v4010_v14 = vmul.f32 %v9283_v3, %v9279_v58 }
0x1822   : > { %v4011_v8 = vpack.c.bf16 %v4010_v14, %v4009_v13  ;;  %v7409_v14 = vld [vmem:[%s11447_s5 + $0x12] ss:$0 sm:$0xff] }
0x1824   : > { %8499 = vmatmul.mubr.msk.bf16.vlgmr.msra.gmra.mrb[64].mxu1 %vm1085_vm2, %v4011_v8 }
0x1825   : > { %8503 = vmatpush3.bf16.msra.mxu1 %v9048_v7  ;;  %8518 = vmatprep.mubr.msk.bf16.mxu1 %vm9398_vm0, %v9397_v4 }
0x1826   : > { %8504 = vmatprep.subr.bf16.mxu1 %v9397_v4 }
0x1829   : > { %8505 = vmatpush3.bf16.msra.mxu1 %v9049_v9 }
0x182a   : > { %8506 = vmatprep.subr.bf16.mxu1 %v9397_v4 }
0x182d   : > { %8507 = vmatpush3.bf16.msra.mxu1 %v9050_v10 }
0x182e   : > { %8508 = vmatprep.subr.bf16.mxu1 %v9397_v4 }
0x1831   : > { %8509 = vmatpush3.bf16.msra.mxu1 %v9051_v11 }
0x1832   : > { %8510 = vmatprep.subr.bf16.mxu1 %v9397_v4 }
0x1835   : > { %8511 = vmatpush3.bf16.msra.mxu1 %v9052_v12 }
0x1836   : > { %8512 = vmatprep.subr.bf16.mxu1 %v9397_v4 }
0x1839   : > { %8513 = vmatpush3.bf16.msra.mxu1 %v9053_v15 }
0x183a   : > { %8514 = vmatprep.subr.bf16.mxu1 %v9397_v4 }
0x183d   : > { %8515 = vmatpush3.bf16.msra.mxu1 %v9054_v16 }
0x183e   : > { %8516 = vmatprep.subr.bf16.mxu1 %v9397_v4 }
0x1841   : > { %8517 = vmatpush3.bf16.msra.mxu1 %v9055_v20 }
0x1842   : > { %8542 = vmatprep.subr.bf16.mxu1 %v9397_v4 }
0x1844   : > { %8519 = vmatmul.mubr.bf16.vlgmr.msra.gmra.mrb[68].mxu1 %v10530_v35 }
0x1845   : > { %8543 = vmatpush3.bf16.msra.mxu1 %v9056_v22  ;;  %8558 = vmatprep.mubr.msk.bf16.mxu1 %vm9398_vm0, %v9397_v4 }
0x1846   : > { %8544 = vmatprep.subr.bf16.mxu1 %v9397_v4 }
0x1849   : > { %8545 = vmatpush3.bf16.msra.mxu1 %v9057_v23 }
0x184a   : > { %8546 = vmatprep.subr.bf16.mxu1 %v9397_v4 }
0x184d   : > { %8547 = vmatpush3.bf16.msra.mxu1 %v9058_v18 }
0x184e   : > { %8548 = vmatprep.subr.bf16.mxu1 %v9397_v4 }
0x1851   : > { %8549 = vmatpush3.bf16.msra.mxu1 %v9059_v21 }
0x1852   : > { %8550 = vmatprep.subr.bf16.mxu1 %v9397_v4 }
0x1855   : > { %8551 = vmatpush3.bf16.msra.mxu1 %v9060_v41 }
0x1856   : > { %8552 = vmatprep.subr.bf16.mxu1 %v9397_v4 }
0x1859   : > { %8553 = vmatpush3.bf16.msra.mxu1 %v9061_v42 }
0x185a   : > { %8554 = vmatprep.subr.bf16.mxu1 %v9397_v4 }
0x185d   : > { %8555 = vmatpush3.bf16.msra.mxu1 %v9062_v24 }
0x185e   : > { %8556 = vmatprep.subr.bf16.mxu1 %v9397_v4 }
0x1861   : > { %8557 = vmatpush3.bf16.msra.mxu1 %v9063_v25 }
0x1862   : > { %8582 = vmatprep.subr.bf16.mxu1 %v9397_v4 }
0x1864   : > { %8559 = vmatmul.mubr.bf16.vlgmr.msra.gmra.mrb[72].mxu1 %v10530_v35 }
0x1865   : > { %8583 = vmatpush3.bf16.msra.mxu1 %v9064_v26  ;;  %8586 = vmatprep.mubr.msk.bf16.mxu1 %vm9398_vm0, %v9397_v4 }
0x1866   : > { %8584 = vmatprep.subr.bf16.mxu1 %v9397_v4 }
0x1869   : > { %8585 = vmatpush3.bf16.msra.mxu1 %v9065_v27 }
0x186a   : > { %8610 = vmatprep.subr.bf16.mxu1 %v9397_v4 }
0x18f7   : > { %v4050_v28 = vpop.f32.mrb[64].mxu1 }
0x18f8   : > { %v8500_v63 = vpop.f32.mrb[65].mxu1 }
0x18f9   : > { %v4053_v48 = vpop.f32.mrb[66].mxu1 }
0x18fa   : > { %v4057_v1 = vpack.c.bf16 %v4053_v48, %v4050_v28  ;;  %v8501_v50 = vpop.f32.mrb[67].mxu1 }
0x18fc   : > { %8587 = vmatmul.mubr.msk.bf16.vlgmr.msra.gmra.mrb[76].mxu1 %vm1037_vm1, %v4057_v1 }
0x18fd   : > { %8611 = vmatpush3.bf16.msra.mxu1 %v9066_v44  ;;  %8626 = vmatprep.mubr.msk.bf16.mxu1 %vm9398_vm0, %v9397_v4 }
0x18fe   : > { %8612 = vmatprep.subr.bf16.mxu1 %v9397_v4 }
0x1901   : > { %8613 = vmatpush3.bf16.msra.mxu1 %v9067_v29 }
0x1902   : > { %8614 = vmatprep.subr.bf16.mxu1 %v9397_v4 }
0x1905   : > { %8615 = vmatpush3.bf16.msra.mxu1 %v9068_v61 }
0x1906   : > { %8616 = vmatprep.subr.bf16.mxu1 %v9397_v4 }
0x1909   : > { %8617 = vmatpush3.bf16.msra.mxu1 %v9069_v0 }
0x190a   : > { %8618 = vmatprep.subr.bf16.mxu1 %v9397_v4 }
0x190d   : > { %8619 = vmatpush3.bf16.msra.mxu1 %v9070_v5 }
0x190e   : > { %8620 = vmatprep.subr.bf16.mxu1 %v9397_v4 }
0x1911   : > { %8621 = vmatpush3.bf16.msra.mxu1 %v9071_v30 }
0x1912   : > { %8622 = vmatprep.subr.bf16.mxu1 %v9397_v4 }
0x1915   : > { %8623 = vmatpush3.bf16.msra.mxu1 %v9072_v33 }
0x1916   : > { %8624 = vmatprep.subr.bf16.mxu1 %v9397_v4 }
0x1917   : > { %v4170_v36 = vpop.f32.mrb[68].mxu1 }
0x1918   : > { %v8520_v37 = vpop.f32.mrb[69].mxu1  ;;  %v4171_v39 = vadd.f32 %v7293_v19, %v4170_v36 }
0x1919   : > { %v4173_v38 = vpop.f32.mrb[70].mxu1  ;;  %8625 = vmatpush3.bf16.msra.mxu1 %v9073_v34  ;;  %v9075_v37 = vld [vmem:[%s11448_s6 + $0x58] sm:$0xff]  }
0x191a   : > { %v4174_v40 = vadd.f32 %v7293_v19, %v4173_v38  ;;  %v8521_v43 = vpop.f32.mrb[71].mxu1  ;;  %8650 = vmatprep.subr.bf16.mxu1 %v9397_v4  ;;  %v9074_v19 = vld [vmem:[%s11448_s6 + $0x50] sm:$0xff]  }
0x191b   : > { %v9076_v43 = vld [vmem:[%s11489_s3 + $0x380] sm:$0xff]  }
0x191c   : > { %v4405_v45 = vpack.c.bf16 %v4174_v40, %v4171_v39  ;;  %8627 = vmatmul.mubr.bf16.vlgmr.msra.gmra.mrb[80].mxu1 %v10530_v35 }
0x191d   : > { %8652 = vmatprep.mubr.msk.bf16.mxu1 %vm9398_vm0, %v9397_v4 }
0x191e   : > { %8565 = vmatmul.mubr.msk.bf16.vlgmr.msra.gmra.mrb[68].mxu0 %vm1037_vm1, %v4405_v45 }
0x191f   : > { %8570 = vmatprep.mubr.msk.bf16.mxu0 %vm9398_vm0, %v9397_v4 }
0x1937   : > { %v4398_v47 = vpop.f32.mrb[72].mxu1 }
0x1938   : > { %v8560_v53 = vpop.f32.mrb[73].mxu1  ;;  %v4399_v57 = vadd.f32 %v7345_v46, %v4398_v47  ;;  %v9077_v47 = vld [vmem:[%s11489_s3 + $0x388] sm:$0xff]  }
0x1939   : > { %v4401_v56 = vpop.f32.mrb[74].mxu1  ;;  %v9078_v53 = vld [vmem:[%s11489_s3 + $0x390] sm:$0xff]  }
0x193a   : > { %v4402_v58 = vadd.f32 %v7345_v46, %v4401_v56  ;;  %v8561_v31 = vpop.f32.mrb[75].mxu1  ;;  %v9079_v56 = vld [vmem:[%s11489_s3 + $0x398] sm:$0xff]  }
0x193b   : > { %v9082_v31 = vld [vmem:[%s11489_s3 + $0x3b0] sm:$0xff]  }
0x193c   : > { %v4477_v59 = vpack.c.bf16 %v4402_v58, %v4399_v57  ;;  %v9080_v57 = vld [vmem:[%s11489_s3 + $0x3a0] sm:$0xff]   ;;  %v9081_v58 = vld [vmem:[%s11489_s3 + $0x3a8] sm:$0xff]  }
0x193e   : > { %8569 = vmatpush3.bf16.msra.mxu0 %v4477_v59  ;;  %v9083_v59 = vld [vmem:[%s11489_s3 + $0x3b8] sm:$0xff]  }
0x193f   : > { %8574 = vmatprep.subr.bf16.mxu0 %v9397_v4 }
0x19cf   : > { %v10763_v60 = vpop.f32.mrb[76].mxu1 }
0x19d0   : > { %v8588_v2 = vpop.f32.mrb[77].mxu1 }
0x19d1   : > { %v10765_v3 = vpop.f32.mrb[78].mxu1  ;;  %v9084_v2 = vld [vmem:[%s11489_s3 + $0x580] sm:$0xff]  }
0x19d2   : > { %v8589_v13 = vpop.f32.mrb[79].mxu1 }
0x19d3   : > { %v9085_v13 = vld [vmem:[%s11489_s3 + $0x588] sm:$0xff]  }
0x19ef   : > { %v4861_v7 = vpop.f32.mrb[80].mxu1 }
0x19f0   : > { %v8628_v8 = vpop.f32.mrb[81].mxu1  ;;  %v4862_v11 = vadd.f32 %v7409_v14, %v4861_v7  ;;  %v9087_v7 = vld [vmem:[%s11489_s3 + $0x598] sm:$0xff]  }
0x19f1   : > { %v4447_v9 = vpop.f32.mrb[68].mxu0  ;;  %v4864_v10 = vpop.f32.mrb[82].mxu1  ;;  %v9088_v8 = vld [vmem:[%s11489_s3 + $0x5a0] sm:$0xff]  }
0x19f2   : > { %v4448_v12 = vadd.f32 %v10626_v32, %v4447_v9  ;;  %v4865_v15 = vadd.f32 %v7409_v14, %v4864_v10  ;;  %v8566_v16 = vpop.f32.mrb[69].mxu0  ;;  %v8629_v20 = vpop.f32.mrb[83].mxu1  ;;  %v9086_v14 = vld [vmem:[%s11489_s3 + $0x590] sm:$0xff]   ;;  %v9089_v9 = vld [vmem:[%s11489_s3 + $0x5a8] sm:$0xff]  }
0x19f3   : > { %v4450_v22 = vpop.f32.mrb[70].mxu0  ;;  %v9090_v10 = vld [vmem:[%s11489_s3 + $0x5b0] sm:$0xff]   ;;  %v9095_v20 = vld [vmem:[%s11489_s3 + $0x4d8] sm:$0xff]  }
0x19f4   : > { %v4983_v23 = vpack.c.bf16 %v4865_v15, %v4862_v11  ;;  %v4451_v18 = vadd.f32 %v10626_v32, %v4450_v22  ;;  %v8567_v21 = vpop.f32.mrb[71].mxu0  ;;  %v4454_v41 = vsel %vm1085_vm2, %v4448_v12, -inf  ;;  %v9091_v11 = vld [vmem:[%s11489_s3 + $0x5b8] sm:$0xff]   ;;  %v9093_v15 = vld [vmem:[%s11489_s3 + $0x4c8] sm:$0xff]   ;;  %v9094_v16 = vld [vmem:[%s11489_s3 + $0x4d0] sm:$0xff]  }
0x19f5   : > { %4455 = vmax.xlane.f32.xlu0 %v4454_v41  ;;  %v9096_v22 = vld [vmem:[%s11489_s3 + $0x4e0] sm:$0xff]   ;;  %v9099_v21 = vld [vmem:[%s11489_s3 + $0x4f8] sm:$0xff]  }
0x19f6   : > { %v4988_v42 = vsel %vm1037_vm1, %v4983_v23, 0  ;;  %v4457_v24 = vsel %vm1085_vm2, %v4451_v18, -inf  ;;  %v9097_v23 = vld [vmem:[%s11489_s3 + $0x4e8] sm:$0xff]  }
0x19f7   : > { %8651 = vmatpush3.bf16.xpose.msra.mxu1 %v4988_v42  ;;  %4458 = vmax.xlane.f32.xlu1 %v4457_v24 }
0x19f8   : > { %8656 = vmatprep.subr.bf16.mxu1 %v9397_v4 }
0x1a82   : > { %v4456_v25 = vpop.xlane.xlu0 %4455 }
0x1a83   : > { %v4460_v26 = vsub.f32 %v4448_v12, %v4456_v25  ;;  %v9092_v12 = vld [vmem:[%s11489_s3 + $0x4c0] sm:$0xff]  }
0x1a84   : > { %v4459_v27 = vpop.xlane.xlu1 %4458 }
0x1a85   : > { %v4462_v28 = vmul.f32 1.442695, %v4460_v26  ;;  %v4461_v63 = vsub.f32 %v4451_v18, %v4459_v27  ;;  %v9098_v18 = vld [vmem:[%s11489_s3 + $0x4f0] sm:$0xff]  }
0x1a87   : > { %9284 = vpow2.f32 %v4462_v28  ;;  %v4464_v48 = vmul.f32 1.442695, %v4461_v63  ;;  %v7383_v28 = vld [vmem:[%s11447_s5 + $0xe] ss:$0 sm:$0xff] }
0x1a89   : > { %9286 = vpow2.f32 %v4464_v48 }
0x1a91   : > { %v9285_v44 = vpop.eup %9284 }
0x1a92   : > { %v4466_v1 = vsel %vm1085_vm2, %v9285_v44, 0.0 }
0x1a93   : > { %v9287_v50 = vpop.eup %9286  ;;  %4467 = vadd.xlane.f32.xlu0 %v4466_v1 }
0x1a94   : > { %v4469_v29 = vsel %vm1085_vm2, %v9287_v50, 0.0 }
0x1a95   : > { %4470 = vadd.xlane.f32.xlu1 %v4469_v29 }
0x1b20   : > { %v4468_v61 = vpop.xlane.xlu0 %4467 }
0x1b21   : > { %9288 = vrcp.f32 %v4468_v61 }
0x1b22   : > { %v4471_v0 = vpop.xlane.xlu1 %4470 }
0x1b23   : > { %9290 = vrcp.f32 %v4471_v0 }
0x1b2b   : > { %v9289_v5 = vpop.eup %9288 }
0x1b2c   : > { %v4474_v33 = vmul.f32 %v9289_v5, %v9285_v44 }
0x1b2d   : > { %v9291_v30 = vpop.eup %9290 }
0x1b2e   : > { %v4475_v34 = vmul.f32 %v9291_v30, %v9287_v50 }
0x1b30   : > { %v4476_v36 = vpack.c.bf16 %v4475_v34, %v4474_v33 }
0x1b32   : > { %8571 = vmatmul.mubr.msk.bf16.vlgmr.msra.gmra.mrb[72].mxu0 %vm1085_vm2, %v4476_v36  ;;  %v7496_v36 = vld [vmem:[%s11447_s5 + $0x13] ss:$0 sm:$0xff] }
0x1b33   : > { %8575 = vmatpush3.bf16.msra.mxu0 %v9074_v19  ;;  %8578 = vmatprep.mubr.msk.bf16.mxu0 %vm9398_vm0, %v9397_v4 }
0x1b34   : > { %8576 = vmatprep.subr.bf16.mxu0 %v9397_v4 }
0x1b37   : > { %8577 = vmatpush3.bf16.msra.mxu0 %v9075_v37 }
0x1b38   : > { %8590 = vmatprep.subr.bf16.mxu0 %v9397_v4 }
0x1c05   : > { %v4515_v38 = vpop.f32.mrb[72].mxu0 }
0x1c06   : > { %v8572_v39 = vpop.f32.mrb[73].mxu0 }
0x1c07   : > { %v4518_v40 = vpop.f32.mrb[74].mxu0 }
0x1c08   : > { %v4522_v45 = vpack.c.bf16 %v4518_v40, %v4515_v38  ;;  %v8573_v46 = vpop.f32.mrb[75].mxu0 }
0x1c0a   : > { %8579 = vmatmul.mubr.msk.bf16.vlgmr.msra.gmra.mrb[76].mxu0 %vm1037_vm1, %v4522_v45 }
0x1c0b   : > { %8591 = vmatpush3.bf16.msra.mxu0 %v9076_v43  ;;  %8606 = vmatprep.mubr.msk.bf16.mxu0 %vm9398_vm0, %v9397_v4 }
0x1c0c   : > { %8592 = vmatprep.subr.bf16.mxu0 %v9397_v4 }
0x1c0f   : > { %8593 = vmatpush3.bf16.msra.mxu0 %v9077_v47 }
0x1c10   : > { %8594 = vmatprep.subr.bf16.mxu0 %v9397_v4 }
0x1c13   : > { %8595 = vmatpush3.bf16.msra.mxu0 %v9078_v53 }
0x1c14   : > { %8596 = vmatprep.subr.bf16.mxu0 %v9397_v4 }
0x1c17   : > { %8597 = vmatpush3.bf16.msra.mxu0 %v9079_v56 }
0x1c18   : > { %8598 = vmatprep.subr.bf16.mxu0 %v9397_v4 }
0x1c1b   : > { %8599 = vmatpush3.bf16.msra.mxu0 %v9080_v57 }
0x1c1c   : > { %8600 = vmatprep.subr.bf16.mxu0 %v9397_v4 }
0x1c1f   : > { %8601 = vmatpush3.bf16.msra.mxu0 %v9081_v58 }
0x1c20   : > { %8602 = vmatprep.subr.bf16.mxu0 %v9397_v4 }
0x1c23   : > { %8603 = vmatpush3.bf16.msra.mxu0 %v9082_v31 }
0x1c24   : > { %8604 = vmatprep.subr.bf16.mxu0 %v9397_v4 }
0x1c27   : > { %8605 = vmatpush3.bf16.msra.mxu0 %v9083_v59 }
0x1c28   : > { %8630 = vmatprep.subr.bf16.mxu0 %v9397_v4 }
0x1c2a   : > { %8607 = vmatmul.mubr.bf16.vlgmr.msra.gmra.mrb[80].mxu0 %v10530_v35 }
0x1c2b   : > { %8631 = vmatpush3.bf16.msra.mxu0 %v9084_v2  ;;  %8646 = vmatprep.mubr.msk.bf16.mxu0 %vm9398_vm0, %v9397_v4 }
0x1c2c   : > { %8632 = vmatprep.subr.bf16.mxu0 %v9397_v4 }
0x1c2f   : > { %8633 = vmatpush3.bf16.msra.mxu0 %v9085_v13 }
0x1c30   : > { %8634 = vmatprep.subr.bf16.mxu0 %v9397_v4 }
0x1c33   : > { %8635 = vmatpush3.bf16.msra.mxu0 %v9086_v14 }
0x1c34   : > { %8636 = vmatprep.subr.bf16.mxu0 %v9397_v4 }
0x1c37   : > { %8637 = vmatpush3.bf16.msra.mxu0 %v9087_v7 }
0x1c38   : > { %8638 = vmatprep.subr.bf16.mxu0 %v9397_v4 }
0x1c3b   : > { %8639 = vmatpush3.bf16.msra.mxu0 %v9088_v8 }
0x1c3c   : > { %8640 = vmatprep.subr.bf16.mxu0 %v9397_v4 }
0x1c3f   : > { %8641 = vmatpush3.bf16.msra.mxu0 %v9089_v9 }
0x1c40   : > { %8642 = vmatprep.subr.bf16.mxu0 %v9397_v4 }
0x1c43   : > { %8643 = vmatpush3.bf16.msra.mxu0 %v9090_v10 }
0x1c44   : > { %8644 = vmatprep.subr.bf16.mxu0 %v9397_v4 }
0x1c47   : > { %8645 = vmatpush3.bf16.msra.mxu0 %v9091_v11 }
0x1c48   : > { %8690 = vmatprep.subr.bf16.mxu0 %v9397_v4 }
0x1c4a   : > { %8647 = vmatmul.mubr.bf16.vlgmr.msra.gmra.mrb[84].mxu0 %v10530_v35 }
0x1c4b   : > { %8691 = vmatpush3.bf16.msra.mxu0 %v9092_v12  ;;  %8706 = vmatprep.mubr.msk.bf16.mxu0 %vm9398_vm0, %v9397_v4 }
0x1c4c   : > { %8692 = vmatprep.subr.bf16.mxu0 %v9397_v4 }
0x1c4f   : > { %8693 = vmatpush3.bf16.msra.mxu0 %v9093_v15 }
0x1c50   : > { %8694 = vmatprep.subr.bf16.mxu0 %v9397_v4 }
0x1c53   : > { %8695 = vmatpush3.bf16.msra.mxu0 %v9094_v16 }
0x1c54   : > { %8696 = vmatprep.subr.bf16.mxu0 %v9397_v4 }
0x1c57   : > { %8697 = vmatpush3.bf16.msra.mxu0 %v9095_v20 }
0x1c58   : > { %8698 = vmatprep.subr.bf16.mxu0 %v9397_v4 }
0x1c5b   : > { %8699 = vmatpush3.bf16.msra.mxu0 %v9096_v22 }
0x1c5c   : > { %8700 = vmatprep.subr.bf16.mxu0 %v9397_v4 }
0x1c5f   : > { %8701 = vmatpush3.bf16.msra.mxu0 %v9097_v23 }
0x1c60   : > { %8702 = vmatprep.subr.bf16.mxu0 %v9397_v4 }
0x1c63   : > { %8703 = vmatpush3.bf16.msra.mxu0 %v9098_v18 }
0x1c64   : > { %8704 = vmatprep.subr.bf16.mxu0 %v9397_v4 }
0x1c67   : > { %8705 = vmatpush3.bf16.msra.mxu0 %v9099_v21 }
0x1c68   : > { %8730 = vmatprep.subr.bf16.mxu0 %v9397_v4 }
0x1c6a   : > { %8707 = vmatmul.mubr.bf16.vlgmr.msra.gmra.mrb[88].mxu0 %v10530_v35 }
0x1c6b   : > { %8732 = vmatprep.mubr.msk.bf16.mxu0 %vm9398_vm0, %v9397_v4 }
0x1cdd   : > { %v4577_v41 = vpop.f32.mrb[76].mxu0 }
0x1cde   : > { %v10898_v42 = vadd.f32 %v10763_v60, %v4577_v41  ;;  %v8580_v24 = vpop.f32.mrb[77].mxu0  ;;  %v7435_v60 = vld [vmem:[%s11447_s5 + $0x16] ss:$0 sm:$0xff] }
0x1cdf   : > { %v4580_v25 = vpop.f32.mrb[78].mxu0 }
0x1ce0   : > { %v10901_v26 = vadd.f32 %v10765_v3, %v4580_v25  ;;  %v8581_v27 = vpop.f32.mrb[79].mxu0  ;;  %v9100_v25 = vld [vmem:[%s11448_s6 + $0x60] sm:$0xff]  }
0x1cfd   : > { %v4747_v63 = vpop.f32.mrb[80].mxu0 }
0x1cfe   : > { %v8608_v48 = vpop.f32.mrb[81].mxu0  ;;  %v4748_v1 = vadd.f32 %v7383_v28, %v4747_v63 }
0x1cff   : > { %v4750_v44 = vpop.f32.mrb[82].mxu0 }
0x1d00   : > { %v4751_v50 = vadd.f32 %v7383_v28, %v4750_v44  ;;  %v8609_v29 = vpop.f32.mrb[83].mxu0  ;;  %v9101_v28 = vld [vmem:[%s11448_s6 + $0x68] sm:$0xff]  }
0x1d02   : > { %v4982_v61 = vpack.c.bf16 %v4751_v50, %v4748_v1  ;;  %v9102_v1 = vld [vmem:[%s11489_s3 + $0x3c0] sm:$0xff]  }
0x1d04   : > { %8653 = vmatmul.mubr.msk.bf16.vlgmr.msra.gmra.mrb[84].mxu1 %vm1037_vm1, %v4982_v61  ;;  %v9103_v61 = vld [vmem:[%s11489_s3 + $0x3c8] sm:$0xff]  }
0x1d05   : > { %8658 = vmatprep.mubr.msk.bf16.mxu1 %vm9398_vm0, %v9397_v4 }
0x1d1d   : > { %v4975_v3 = vpop.f32.mrb[84].mxu0 }
0x1d1e   : > { %v8648_v0 = vpop.f32.mrb[85].mxu0  ;;  %v4976_v30 = vadd.f32 %v7435_v60, %v4975_v3  ;;  %v9105_v3 = vld [vmem:[%s11489_s3 + $0x3d8] sm:$0xff]  }
0x1d1f   : > { %v4978_v5 = vpop.f32.mrb[86].mxu0  ;;  %v9106_v0 = vld [vmem:[%s11489_s3 + $0x3e0] sm:$0xff]  }
0x1d20   : > { %v4979_v33 = vadd.f32 %v7435_v60, %v4978_v5  ;;  %v8649_v34 = vpop.f32.mrb[87].mxu0  ;;  %v9104_v60 = vld [vmem:[%s11489_s3 + $0x3d0] sm:$0xff]   ;;  %v9107_v5 = vld [vmem:[%s11489_s3 + $0x3e8] sm:$0xff]  }
0x1d21   : > { %v9110_v34 = vld [vmem:[%s11489_s3 + $0x5c0] sm:$0xff]  }
0x1d22   : > { %v5054_v19 = vpack.c.bf16 %v4979_v33, %v4976_v30  ;;  %v9108_v30 = vld [vmem:[%s11489_s3 + $0x3f0] sm:$0xff]   ;;  %v9109_v33 = vld [vmem:[%s11489_s3 + $0x3f8] sm:$0xff]  }
0x1d24   : > { %8657 = vmatpush3.bf16.msra.mxu1 %v5054_v19  ;;  %v9111_v19 = vld [vmem:[%s11489_s3 + $0x5c8] sm:$0xff]  }
0x1d25   : > { %8662 = vmatprep.subr.bf16.mxu1 %v9397_v4 }
0x1d3d   : > { %v5384_v37 = vpop.f32.mrb[88].mxu0 }
0x1d3e   : > { %v8708_v38 = vpop.f32.mrb[89].mxu0  ;;  %v5385_v40 = vadd.f32 %v7496_v36, %v5384_v37  ;;  %v9113_v37 = vld [vmem:[%s11489_s3 + $0x5d8] sm:$0xff]  }
0x1d3f   : > { %v5387_v39 = vpop.f32.mrb[90].mxu0  ;;  %v9114_v38 = vld [vmem:[%s11489_s3 + $0x5e0] sm:$0xff]  }
0x1d40   : > { %v5388_v43 = vadd.f32 %v7496_v36, %v5387_v39  ;;  %v8709_v45 = vpop.f32.mrb[91].mxu0  ;;  %v9112_v36 = vld [vmem:[%s11489_s3 + $0x5d0] sm:$0xff]   ;;  %v9115_v39 = vld [vmem:[%s11489_s3 + $0x5e8] sm:$0xff]  }
0x1d42   : > { %v5506_v46 = vpack.c.bf16 %v5388_v43, %v5385_v40  ;;  %v9116_v40 = vld [vmem:[%s11489_s3 + $0x5f0] sm:$0xff]   ;;  %v9117_v43 = vld [vmem:[%s11489_s3 + $0x5f8] sm:$0xff]  }
0x1d44   : > { %v5511_v47 = vsel %vm1037_vm1, %v5506_v46, 0 }
0x1d45   : > { %8731 = vmatpush3.bf16.xpose.msra.mxu0 %v5511_v47 }
0x1d46   : > { %8736 = vmatprep.subr.bf16.mxu0 %v9397_v4 }
0x1dd7   : > { %v5024_v53 = vpop.f32.mrb[84].mxu1 }
0x1dd8   : > { %v5025_v56 = vadd.f32 %v10626_v32, %v5024_v53  ;;  %v8654_v57 = vpop.f32.mrb[85].mxu1 }
0x1dd9   : > { %v5027_v58 = vpop.f32.mrb[86].mxu1 }
0x1dda   : > { %v5028_v31 = vadd.f32 %v10626_v32, %v5027_v58  ;;  %v8655_v59 = vpop.f32.mrb[87].mxu1  ;;  %v5031_v2 = vsel %vm1085_vm2, %v5025_v56, -inf  ;;  %v7470_v58 = vld [vmem:[%s11447_s5 + $0xf] ss:$0 sm:$0xff] }
0x1ddb   : > { %5032 = vmax.xlane.f32.xlu0 %v5031_v2 }
0x1ddc   : > { %v5034_v13 = vsel %vm1085_vm2, %v5028_v31, -inf }
0x1ddd   : > { %5035 = vmax.xlane.f32.xlu1 %v5034_v13 }
0x1e68   : > { %v5033_v14 = vpop.xlane.xlu0 %5032 }
0x1e69   : > { %v5037_v7 = vsub.f32 %v5025_v56, %v5033_v14 }
0x1e6a   : > { %v5036_v8 = vpop.xlane.xlu1 %5035 }
0x1e6b   : > { %v5039_v9 = vmul.f32 1.442695, %v5037_v7  ;;  %v5038_v10 = vsub.f32 %v5028_v31, %v5036_v8 }
0x1e6d   : > { %9292 = vpow2.f32 %v5039_v9  ;;  %v5041_v11 = vmul.f32 1.442695, %v5038_v10 }
0x1e6f   : > { %9294 = vpow2.f32 %v5041_v11 }
0x1e77   : > { %v9293_v12 = vpop.eup %9292 }
0x1e78   : > { %v5043_v15 = vsel %vm1085_vm2, %v9293_v12, 0.0 }
0x1e79   : > { %v9295_v16 = vpop.eup %9294  ;;  %5044 = vadd.xlane.f32.xlu0 %v5043_v15 }
0x1e7a   : > { %v5046_v20 = vsel %vm1085_vm2, %v9295_v16, 0.0 }
0x1e7b   : > { %5047 = vadd.xlane.f32.xlu1 %v5046_v20 }
0x1f06   : > { %v5045_v22 = vpop.xlane.xlu0 %5044 }
0x1f07   : > { %9296 = vrcp.f32 %v5045_v22 }
0x1f08   : > { %v5048_v23 = vpop.xlane.xlu1 %5047 }
0x1f09   : > { %9298 = vrcp.f32 %v5048_v23 }
0x1f11   : > { %v9297_v18 = vpop.eup %9296 }
0x1f12   : > { %v5051_v41 = vmul.f32 %v9297_v18, %v9293_v12 }
0x1f13   : > { %v9299_v21 = vpop.eup %9298 }
0x1f14   : > { %v5052_v24 = vmul.f32 %v9299_v21, %v9295_v16 }
0x1f16   : > { %v5053_v27 = vpack.c.bf16 %v5052_v24, %v5051_v41 }
0x1f18   : > { %8659 = vmatmul.mubr.msk.bf16.vlgmr.msra.gmra.mrb[88].mxu1 %vm1085_vm2, %v5053_v27 }
0x1f19   : > { %8663 = vmatpush3.bf16.msra.mxu1 %v9100_v25  ;;  %8666 = vmatprep.mubr.msk.bf16.mxu1 %vm9398_vm0, %v9397_v4 }
0x1f1a   : > { %8664 = vmatprep.subr.bf16.mxu1 %v9397_v4 }
0x1f1d   : > { %8665 = vmatpush3.bf16.msra.mxu1 %v9101_v28 }
0x1f1e   : > { %8670 = vmatprep.subr.bf16.mxu1 %v9397_v4 }
0x1feb   : > { %v5092_v63 = vpop.f32.mrb[88].mxu1 }
0x1fec   : > { %v8660_v48 = vpop.f32.mrb[89].mxu1 }
0x1fed   : > { %v5095_v44 = vpop.f32.mrb[90].mxu1 }
0x1fee   : > { %v5099_v50 = vpack.c.bf16 %v5095_v44, %v5092_v63  ;;  %v8661_v29 = vpop.f32.mrb[91].mxu1 }
0x1ff0   : > { %8667 = vmatmul.mubr.msk.bf16.vlgmr.msra.gmra.mrb[92].mxu1 %vm1037_vm1, %v5099_v50 }
0x1ff1   : > { %8671 = vmatpush3.bf16.msra.mxu1 %v9102_v1  ;;  %8686 = vmatprep.mubr.msk.bf16.mxu1 %vm9398_vm0, %v9397_v4 }
0x1ff2   : > { %8672 = vmatprep.subr.bf16.mxu1 %v9397_v4 }
0x1ff5   : > { %8673 = vmatpush3.bf16.msra.mxu1 %v9103_v61 }
0x1ff6   : > { %8674 = vmatprep.subr.bf16.mxu1 %v9397_v4 }
0x1ff9   : > { %8675 = vmatpush3.bf16.msra.mxu1 %v9104_v60 }
0x1ffa   : > { %8676 = vmatprep.subr.bf16.mxu1 %v9397_v4 }
0x1ffd   : > { %8677 = vmatpush3.bf16.msra.mxu1 %v9105_v3 }
0x1ffe   : > { %8678 = vmatprep.subr.bf16.mxu1 %v9397_v4 }
0x2001   : > { %8679 = vmatpush3.bf16.msra.mxu1 %v9106_v0 }
0x2002   : > { %8680 = vmatprep.subr.bf16.mxu1 %v9397_v4 }
0x2005   : > { %8681 = vmatpush3.bf16.msra.mxu1 %v9107_v5 }
0x2006   : > { %8682 = vmatprep.subr.bf16.mxu1 %v9397_v4 }
0x2009   : > { %8683 = vmatpush3.bf16.msra.mxu1 %v9108_v30 }
0x200a   : > { %8684 = vmatprep.subr.bf16.mxu1 %v9397_v4 }
0x200d   : > { %8685 = vmatpush3.bf16.msra.mxu1 %v9109_v33  ;;  %v9118_v33 = vld [vmem:[%s11448_s6 + $0x70] sm:$0xff]  }
0x200e   : > { %8710 = vmatprep.subr.bf16.mxu1 %v9397_v4 }
0x2010   : > { %8687 = vmatmul.mubr.bf16.vlgmr.msra.gmra.mrb[96].mxu1 %v10530_v35 }
0x2011   : > { %8711 = vmatpush3.bf16.msra.mxu1 %v9110_v34  ;;  %8726 = vmatprep.mubr.msk.bf16.mxu1 %vm9398_vm0, %v9397_v4 }
0x2012   : > { %8712 = vmatprep.subr.bf16.mxu1 %v9397_v4 }
0x2015   : > { %8713 = vmatpush3.bf16.msra.mxu1 %v9111_v19  ;;  %v9119_v19 = vld [vmem:[%s11448_s6 + $0x78] sm:$0xff]  }
0x2016   : > { %8714 = vmatprep.subr.bf16.mxu1 %v9397_v4 }
0x2019   : > { %8715 = vmatpush3.bf16.msra.mxu1 %v9112_v36 }
0x201a   : > { %8716 = vmatprep.subr.bf16.mxu1 %v9397_v4 }
0x201d   : > { %8717 = vmatpush3.bf16.msra.mxu1 %v9113_v37 }
0x201e   : > { %8718 = vmatprep.subr.bf16.mxu1 %v9397_v4 }
0x2021   : > { %8719 = vmatpush3.bf16.msra.mxu1 %v9114_v38 }
0x2022   : > { %8720 = vmatprep.subr.bf16.mxu1 %v9397_v4 }
0x2025   : > { %8721 = vmatpush3.bf16.msra.mxu1 %v9115_v39 }
0x2026   : > { %8722 = vmatprep.subr.bf16.mxu1 %v9397_v4 }
0x2029   : > { %8723 = vmatpush3.bf16.msra.mxu1 %v9116_v40 }
0x202a   : > { %8724 = vmatprep.subr.bf16.mxu1 %v9397_v4 }
0x202d   : > { %8725 = vmatpush3.bf16.msra.mxu1 %v9117_v43 }
0x2030   : > { %8727 = vmatmul.mubr.bf16.vlgmr.msra.gmra.mrb[100].mxu1 %v10530_v35 }
0x2031   : > { %6032 = vmatprep.mubr.bf16.mxu1 %v9399_v62 }
0x20c3   : > { %v5154_v45 = vpop.f32.mrb[92].mxu1 }
0x20c4   : > { %v11007_v46 = vadd.f32 %v5154_v45, %v10898_v42  ;;  %v8668_v47 = vpop.f32.mrb[93].mxu1  ;;  %v7522_v42 = vld [vmem:[%s11447_s5 + $0x17] ss:$0 sm:$0xff]  ;;  %v7541_v45 = vld [vmem:[%s11449_s7 + $0x1] ss:$0 sm:$0xff] }
0x20c5   : > { %v5157_v53 = vpop.f32.mrb[94].mxu1 }
0x20c6   : > { %v11010_v56 = vadd.f32 %v5157_v53, %v10901_v26  ;;  %v8669_v57 = vpop.f32.mrb[95].mxu1 }
0x20e3   : > { %v5270_v31 = vpop.f32.mrb[96].mxu1 }
0x20e4   : > { %v8688_v59 = vpop.f32.mrb[97].mxu1  ;;  %v5271_v35 = vadd.f32 %v7470_v58, %v5270_v31 }
0x20e5   : > { %v5273_v2 = vpop.f32.mrb[98].mxu1 }
0x20e6   : > { %v5274_v13 = vadd.f32 %v7470_v58, %v5273_v2  ;;  %v8689_v14 = vpop.f32.mrb[99].mxu1 }
0x20e7   : > { %v9131_v14 = vld [vmem:[%s11452_s10 + $0x12c] ss:$16 sps:$4 sm:$0xff]  }
0x20e8   : > { %v5505_v7 = vpack.c.bf16 %v5274_v13, %v5271_v35 }
0x20ea   : > { %8733 = vmatmul.mubr.msk.bf16.vlgmr.msra.gmra.mrb[92].mxu0 %vm1037_vm1, %v5505_v7  ;;  %v9126_v7 = vld [vmem:[%s11452_s10 + $0x120] ss:$16 sps:$4 sm:$0xff]  }
0x20eb   : > { %8738 = vmatprep.mubr.msk.bf16.mxu0 %vm9398_vm0, %v9397_v4 }
0x2103   : > { %v5498_v26 = vpop.f32.mrb[100].mxu1 }
0x2104   : > { %v8728_v8 = vpop.f32.mrb[101].mxu1  ;;  %v5499_v10 = vadd.f32 %v7522_v42, %v5498_v26 }
0x2105   : > { %v5501_v9 = vpop.f32.mrb[102].mxu1 }
0x2106   : > { %v5502_v11 = vadd.f32 %v7522_v42, %v5501_v9  ;;  %v8729_v12 = vpop.f32.mrb[103].mxu1  ;;  %v9129_v42 = vld [vmem:[%s11452_s10 + $0x128] ss:$16 sps:$4 sm:$0xff]  }
0x2108   : > { %v5577_v15 = vpack.c.bf16 %v5502_v11, %v5499_v10 }
0x210a   : > { %8737 = vmatpush3.bf16.msra.mxu0 %v5577_v15 }
0x210b   : > { %8742 = vmatprep.subr.bf16.mxu0 %v9397_v4 }
0x21bd   : > { %v5547_v16 = vpop.f32.mrb[92].mxu0 }
0x21be   : > { %v5548_v20 = vadd.f32 %v10626_v32, %v5547_v16  ;;  %v8734_v22 = vpop.f32.mrb[93].mxu0 }
0x21bf   : > { %v5550_v23 = vpop.f32.mrb[94].mxu0  ;;  %v9137_v22 = vld [vmem:[%s11452_s10 + $0x14c] ss:$16 sps:$4 sm:$0xff]  }
0x21c0   : > { %v5551_v18 = vadd.f32 %v10626_v32, %v5550_v23  ;;  %v8735_v21 = vpop.f32.mrb[95].mxu0  ;;  %v5554_v41 = vsel %vm1085_vm2, %v5548_v20, -inf  ;;  %v9132_v23 = vld [vmem:[%s11452_s10 + $0x140] ss:$16 sps:$4 sm:$0xff]  }
0x21c1   : > { %5555 = vmax.xlane.f32.xlu0 %v5554_v41  ;;  %v9140_v21 = vld [vmem:[%s11452_s10 + $0x164] ss:$16 sps:$4 sm:$0xff]   ;;  %v9143_v41 = vld [vmem:[%s11452_s10 + $0x16c] ss:$16 sps:$4 sm:$0xff]  }
0x21c2   : > { %v5557_v24 = vsel %vm1085_vm2, %v5551_v18, -inf }
0x21c3   : > { %5558 = vmax.xlane.f32.xlu1 %v5557_v24  ;;  %v9138_v24 = vld [vmem:[%s11452_s10 + $0x160] ss:$16 sps:$4 sm:$0xff]  }
0x224e   : > { %v5556_v25 = vpop.xlane.xlu0 %5555 }
0x224f   : > { %v5560_v27 = vsub.f32 %v5548_v20, %v5556_v25  ;;  %v9134_v20 = vld [vmem:[%s11452_s10 + $0x144] ss:$16 sps:$4 sm:$0xff]   ;;  %v9141_v25 = vld [vmem:[%s11452_s10 + $0x168] ss:$16 sps:$4 sm:$0xff]  }
0x2250   : > { %v5559_v28 = vpop.xlane.xlu1 %5558 }
0x2251   : > { %v5562_v63 = vmul.f32 1.442695, %v5560_v27  ;;  %v5561_v48 = vsub.f32 %v5551_v18, %v5559_v28  ;;  %v9135_v18 = vld [vmem:[%s11452_s10 + $0x148] ss:$16 sps:$4 sm:$0xff]   ;;  %v9146_v27 = vld [vmem:[%s11452_s10 + $0x184] ss:$16 sps:$4 sm:$0xff]  }
0x2252   : > { %v9149_v28 = vld [vmem:[%s11452_s10 + $0x18c] ss:$16 sps:$4 sm:$0xff]  }
0x2253   : > { %9300 = vpow2.f32 %v5562_v63  ;;  %v5564_v44 = vmul.f32 1.442695, %v5561_v48  ;;  %v9144_v63 = vld [vmem:[%s11452_s10 + $0x180] ss:$16 sps:$4 sm:$0xff]   ;;  %v9147_v48 = vld [vmem:[%s11452_s10 + $0x188] ss:$16 sps:$4 sm:$0xff]  }
0x2255   : > { %9302 = vpow2.f32 %v5564_v44  ;;  %v9152_v44 = vld [vmem:[%s11452_s10 + $0x1a4] ss:$16 sps:$4 sm:$0xff]  }
0x225d   : > { %v9301_v1 = vpop.eup %9300 }
0x225e   : > { %v5566_v50 = vsel %vm1085_vm2, %v9301_v1, 0.0 }
0x225f   : > { %v9303_v29 = vpop.eup %9302  ;;  %5567 = vadd.xlane.f32.xlu0 %v5566_v50  ;;  %v9153_v50 = vld [vmem:[%s11452_s10 + $0x1a8] ss:$16 sps:$4 sm:$0xff]  }
0x2260   : > { %v5569_v32 = vsel %vm1085_vm2, %v9303_v29, 0.0 }
0x2261   : > { %5570 = vadd.xlane.f32.xlu1 %v5569_v32  ;;  %v9158_v32 = vld [vmem:[%s11452_s10 + $0x1c4] ss:$16 sps:$4 sm:$0xff]  }
0x22ec   : > { %v5568_v61 = vpop.xlane.xlu0 %5567 }
0x22ed   : > { %9304 = vrcp.f32 %v5568_v61  ;;  %v9161_v61 = vld [vmem:[%s11452_s10 + $0x1cc] ss:$16 sps:$4 sm:$0xff]  }
0x22ee   : > { %v5571_v60 = vpop.xlane.xlu1 %5570 }
0x22ef   : > { %9306 = vrcp.f32 %v5571_v60  ;;  %v9156_v60 = vld [vmem:[%s11452_s10 + $0x1c0] ss:$16 sps:$4 sm:$0xff]  }
0x22f7   : > { %v9305_v3 = vpop.eup %9304 }
0x22f8   : > { %v5574_v5 = vmul.f32 %v9305_v3, %v9301_v1  ;;  %v9150_v1 = vld [vmem:[%s11452_s10 + $0x1a0] ss:$16 sps:$4 sm:$0xff]   ;;  %v9159_v3 = vld [vmem:[%s11452_s10 + $0x1c8] ss:$16 sps:$4 sm:$0xff]  }
0x22f9   : > { %v9307_v0 = vpop.eup %9306 }
0x22fa   : > { %v5575_v30 = vmul.f32 %v9307_v0, %v9303_v29  ;;  %v9155_v29 = vld [vmem:[%s11452_s10 + $0x1ac] ss:$16 sps:$4 sm:$0xff]   ;;  %v9164_v0 = vld [vmem:[%s11452_s10 + $0x1e4] ss:$16 sps:$4 sm:$0xff]  }
0x22fc   : > { %v5576_v34 = vpack.c.bf16 %v5575_v30, %v5574_v5  ;;  %v9167_v5 = vld [vmem:[%s11452_s10 + $0x1ec] ss:$16 sps:$4 sm:$0xff]   ;;  %v9162_v30 = vld [vmem:[%s11452_s10 + $0x1e0] ss:$16 sps:$4 sm:$0xff]  }
0x22fe   : > { %8739 = vmatmul.mubr.msk.bf16.vlgmr.msra.gmra.mrb[96].mxu0 %vm1085_vm2, %v5576_v34 }
0x22ff   : > { %8743 = vmatpush3.bf16.msra.mxu0 %v9118_v33  ;;  %8746 = vmatprep.mubr.msk.bf16.mxu0 %vm9398_vm0, %v9397_v4  ;;  %v9165_v33 = vld [vmem:[%s11452_s10 + $0x1e8] ss:$16 sps:$4 sm:$0xff]  }
0x2300   : > { %8744 = vmatprep.subr.bf16.mxu0 %v9397_v4 }
0x2303   : > { %8745 = vmatpush3.bf16.msra.mxu0 %v9119_v19 }
0x23d1   : > { %v5615_v36 = vpop.f32.mrb[96].mxu0 }
0x23d2   : > { %v8740_v37 = vpop.f32.mrb[97].mxu0 }
0x23d3   : > { %v5618_v38 = vpop.f32.mrb[98].mxu0 }
0x23d4   : > { %v5622_v39 = vpack.c.bf16 %v5618_v38, %v5615_v36  ;;  %v8741_v40 = vpop.f32.mrb[99].mxu0 }
0x23d6   : > { %8747 = vmatmul.mubr.msk.bf16.vlgmr.msra.gmra.mrb[100].mxu0 %vm1037_vm1, %v5622_v39 }
0x23d7   : > { %5989 = vmatprep.mubr.bf16.mxu0 %v9399_v62  ;;  %v9120_v62 = vld [vmem:[%s11452_s10 + $0x100] ss:$16 sps:$4 sm:$0xff]  }
0x24a9   : > { %v5677_v43 = vpop.f32.mrb[100].mxu0 }
0x24aa   : > { %v5684_v47 = vadd.f32 %v5677_v43, %v11007_v46  ;;  %v8748_v53 = vpop.f32.mrb[101].mxu0  ;;  %v9122_v46 = vld [vmem:[%s11452_s10 + $0x104] ss:$16 sps:$4 sm:$0xff]   ;;  %v7544_v43 = vld [vmem:[%s11450_s8 + $0x1] ss:$0 sm:$0xff] }
0x24ab   : > { %v5680_v57 = vpop.f32.mrb[102].mxu0  ;;  %5957 = vmatprep.subr.bf16.mxu0 %v9122_v46  ;;  %v9170_v46 = vld [vmem:[%s11454_s12 + $0x100] sm:$0xff]  }
0x24ac   : > { %v5694_v58 = vadd.f32 %v7541_v45, %v5684_v47  ;;  %v5685_v31 = vadd.f32 %v5680_v57, %v11010_v56  ;;  %v8749_v59 = vpop.f32.mrb[103].mxu0  ;;  %v9123_v56 = vld [vmem:[%s11452_s10 + $0x108] ss:$16 sps:$4 sm:$0xff]   ;;  %5958 = vmatpush1.bf16.msra.mxu0 %v9120_v62  ;;  %v9169_v62 = vld [vmem:[%s11454_s12 + $0x1c0] sm:$0xff]  }
0x24ae   : > { %v5695_v2 = vadd.f32 %v7541_v45, %v5685_v31  ;;  %v5696_v35 = vadd.f32 %v5694_v58, %v10521_v6  ;;  %v9125_v6 = vld [vmem:[%s11452_s10 + $0x10c] ss:$16 sps:$4 sm:$0xff]   ;;  %v7545_v58 = vld [vmem:[%s11451_s9 + $0x1] ss:$0 sm:$0xff] }
0x24af   : > { %6000 = vmatprep.subr.bf16.mxu1 %v9125_v6  ;;  %v9172_v6 = vld [vmem:[%s11454_s12 + $0x148] sm:$0xff]  }
0x24b0   : > { %5702 = vadd.xlane.f32.xlu0 %v5696_v35  ;;  %v5697_v13 = vadd.f32 %v5695_v2, %v10523_v17  ;;  %v9128_v17 = vld [vmem:[%s11452_s10 + $0x124] ss:$16 sps:$4 sm:$0xff]   ;;  %6001 = vmatpush1.bf16.msra.mxu1 %v9123_v56 }
0x24b1   : > { %5959 = vmatprep.subr.bf16.mxu0 %v9128_v17  ;;  %6002 = vmatprep.subr.bf16.mxu1 %v9131_v14  ;;  %v9171_v56 = vld [vmem:[%s11454_s12 + $0x180] sm:$0xff]   ;;  %v9173_v17 = vld [vmem:[%s11454_s12 + $0x1c8] sm:$0xff]  }
0x24b2   : > { %5704 = vadd.xlane.f32.xlu1 %v5697_v13  ;;  %5960 = vmatpush1.bf16.msra.mxu0 %v9126_v7  ;;  %v9174_v14 = vld [vmem:[%s11454_s12 + $0x108] sm:$0xff]  }
0x24b3   : > { %5961 = vmatprep.subr.bf16.mxu0 %v9134_v20  ;;  %v9175_v7 = vld [vmem:[%s11454_s12 + $0x188] sm:$0xff]   ;;  %v9185_v20 = vld [vmem:[%s11454_s12 + $0x1e0] sm:$0xff]  }
0x24b4   : > { %6003 = vmatpush1.bf16.msra.mxu1 %v9129_v42  ;;  %v9176_v42 = vld [vmem:[%s11454_s12 + $0x150] sm:$0xff]  }
0x24b5   : > { %6004 = vmatprep.subr.bf16.mxu1 %v9137_v22  ;;  %v9186_v22 = vld [vmem:[%s11454_s12 + $0x120] sm:$0xff]  }
0x24b6   : > { %5962 = vmatpush1.bf16.msra.mxu0 %v9132_v23  ;;  %v9187_v23 = vld [vmem:[%s11454_s12 + $0x1a0] sm:$0xff]  }
0x24b7   : > { %5963 = vmatprep.subr.bf16.mxu0 %v9140_v21  ;;  %v9189_v21 = vld [vmem:[%s11454_s12 + $0x1e8] sm:$0xff]  }
0x24b8   : > { %6005 = vmatpush1.bf16.msra.mxu1 %v9135_v18  ;;  %v9188_v18 = vld [vmem:[%s11454_s12 + $0x168] sm:$0xff]  }
0x24b9   : > { %6006 = vmatprep.subr.bf16.mxu1 %v9143_v41  ;;  %v9190_v41 = vld [vmem:[%s11454_s12 + $0x128] sm:$0xff]  }
0x24ba   : > { %5964 = vmatpush1.bf16.msra.mxu0 %v9138_v24  ;;  %v9191_v24 = vld [vmem:[%s11454_s12 + $0x1a8] sm:$0xff]  }
0x24bb   : > { %5965 = vmatprep.subr.bf16.mxu0 %v9146_v27  ;;  %v9193_v27 = vld [vmem:[%s11454_s12 + $0x1f0] sm:$0xff]  }
0x24bc   : > { %6007 = vmatpush1.bf16.msra.mxu1 %v9141_v25  ;;  %v9192_v25 = vld [vmem:[%s11454_s12 + $0x170] sm:$0xff]  }
0x24bd   : > { %6008 = vmatprep.subr.bf16.mxu1 %v9149_v28  ;;  %v9194_v28 = vld [vmem:[%s11454_s12 + $0x130] sm:$0xff]  }
0x24be   : > { %5966 = vmatpush1.bf16.msra.mxu0 %v9144_v63  ;;  %v9195_v63 = vld [vmem:[%s11454_s12 + $0x1b0] sm:$0xff]  }
0x24bf   : > { %5967 = vmatprep.subr.bf16.mxu0 %v9152_v44  ;;  %v9197_v44 = vld [vmem:[%s11454_s12 + $0x1f8] sm:$0xff]  }
0x24c0   : > { %6009 = vmatpush1.bf16.msra.mxu1 %v9147_v48  ;;  %v9196_v48 = vld [vmem:[%s11454_s12 + $0x178] sm:$0xff]  }
0x24c1   : > { %6010 = vmatprep.subr.bf16.mxu1 %v9155_v29  ;;  %v7578_v29 = vld [vmem:[%s11453_s11 + $0x4] sm:$0xf] }
0x24c2   : > { %5968 = vmatpush1.bf16.msra.mxu0 %v9150_v1  ;;  %v9198_v1 = vld [vmem:[%s11454_s12 + $0x138] sm:$0xff]  }
0x24c3   : > { %5969 = vmatprep.subr.bf16.mxu0 %v9158_v32  ;;  %v5780_v32 = vrot.slane %v7578_v29, %v2870_v51 }
0x24c4   : > { %6011 = vmatpush1.bf16.msra.mxu1 %v9153_v50  ;;  %v9199_v50 = vld [vmem:[%s11454_s12 + $0x1b8] sm:$0xff]  }
0x24c5   : > { %6012 = vmatprep.subr.bf16.mxu1 %v9161_v61  ;;  %v5788_v61 = vrot.slane %v7578_v29, %v2878_v52 }
0x24c6   : > { %5970 = vmatpush1.bf16.msra.mxu0 %v9156_v60  ;;  %v5784_v60 = vrot.slane %v7578_v29, %v2874_v54 }
0x24c7   : > { %5971 = vmatprep.subr.bf16.mxu0 %v9164_v0 }
0x24c8   : > { %6013 = vmatpush1.bf16.msra.mxu1 %v9159_v3  ;;  %v5792_v3 = vrot.slane %v7578_v29, %v2882_v55 }
0x24c9   : > { %6014 = vmatprep.subr.bf16.mxu1 %v9167_v5 }
0x24ca   : > { %5972 = vmatpush1.bf16.msra.mxu0 %v9162_v30 }
0x24cc   : > { %6015 = vmatpush1.bf16.msra.mxu1 %v9165_v33 }
0x24cd   : > { %8070 = vmatprep.subr.bf16.mxu1 %v9169_v62 }
0x253d   : > { %v5703_v26 = vpop.xlane.xlu0 %5702 }
0x253e   : > { %v5706_v8 = vmul.f32 0.0078125, %v5703_v26  ;;  %v9177_v26 = vld [vmem:[%s11454_s12 + $0x1d0] sm:$0xff]  }
0x253f   : > { %v5705_v9 = vpop.xlane.xlu1 %5704 }
0x2540   : > { %v11071_v10 = vsub.f32 %v5696_v35, %v5706_v8  ;;  %v5707_v11 = vmul.f32 0.0078125, %v5705_v9  ;;  %v9178_v8 = vld [vmem:[%s11454_s12 + $0x110] sm:$0xff]  }
0x2541   : > { %v9179_v9 = vld [vmem:[%s11454_s12 + $0x190] sm:$0xff]  }
0x2542   : > { %v11073_v12 = vsub.f32 %v5697_v13, %v5707_v11  ;;  %v5710_v15 = vmul.f32 %v11071_v10, %v11071_v10  ;;  %v9168_v13 = vld [vmem:[%s11454_s12 + $0x140] sm:$0xff]   ;;  %v9181_v11 = vld [vmem:[%s11454_s12 + $0x1d8] sm:$0xff]  }
0x2543   : > { %8048 = vmatprep.subr.bf16.mxu0 %v9168_v13 }
0x2544   : > { %5712 = vadd.xlane.f32.xlu0 %v5710_v15  ;;  %v5711_v16 = vmul.f32 %v11073_v12, %v11073_v12  ;;  %v9183_v15 = vld [vmem:[%s11454_s12 + $0x198] sm:$0xff]  }
0x2546   : > { %5714 = vadd.xlane.f32.xlu1 %v5711_v16  ;;  %v9184_v16 = vld [vmem:[%s11454_s12 + $0x160] sm:$0xff]  }
0x25d1   : > { %v5713_v34 = vpop.xlane.xlu0 %5712 }
0x25d2   : > { %v5716_v19 = vmul.f32 0.0078125, %v5713_v34 }
0x25d3   : > { %v5715_v36 = vpop.xlane.xlu1 %5714 }
0x25d4   : > { %v5718_v37 = vadd.f32 1e-12, %v5716_v19  ;;  %v5717_v38 = vmul.f32 0.0078125, %v5715_v36 }
0x25d6   : > { %9308 = vrsqrt.f32 %v5718_v37  ;;  %v5719_v39 = vadd.f32 1e-12, %v5717_v38 }
0x25d8   : > { %9310 = vrsqrt.f32 %v5719_v39 }
0x25e0   : > { %v9309_v40 = vpop.eup %9308 }
0x25e1   : > { %v5722_v45 = vmul.f32 %v9309_v40, %v11071_v10  ;;  %v9180_v10 = vld [vmem:[%s11454_s12 + $0x158] sm:$0xff]  }
0x25e2   : > { %v9311_v47 = vpop.eup %9310 }
0x25e3   : > { %v5723_v53 = vmul.f32 %v9311_v47, %v11073_v12  ;;  %v5730_v57 = vmul.f32 %v7544_v43, %v5722_v45  ;;  %v9182_v12 = vld [vmem:[%s11454_s12 + $0x118] sm:$0xff]  }
0x25e5   : > { %v5731_v31 = vmul.f32 %v7544_v43, %v5723_v53  ;;  %v11159_v59 = vadd.f32 %v7545_v58, %v5730_v57 }
0x25e7   : > { %v5739_v2 = vadd.f32 %v7545_v58, %v5731_v31 }
0x25e9   : > { %v5740_v35 = vpack.c.bf16 %v5739_v2, %v11159_v59 }
0x25eb   : > { %5990 = vmatmul.mubr.bf16.vlgmr.msra.gmra.mrb[104].mxu0 %v5740_v35  ;;  %6033 = vmatmul.mubr.bf16.vlgmr.msra.gmra.mrb[104].mxu1 %v5740_v35 }
0x25ec   : > { %8049 = vmatpush3.bf16.msra.mxu0 %v9170_v46  ;;  %8071 = vmatpush3.bf16.msra.mxu1 %v9171_v56 }
0x25ed   : > { %8050 = vmatprep.subr.bf16.mxu0 %v9172_v6  ;;  %8072 = vmatprep.subr.bf16.mxu1 %v9173_v17 }
0x25f0   : > { %8051 = vmatpush3.bf16.msra.mxu0 %v9174_v14  ;;  %8073 = vmatpush3.bf16.msra.mxu1 %v9175_v7 }
0x25f1   : > { %8052 = vmatprep.subr.bf16.mxu0 %v9176_v42  ;;  %8074 = vmatprep.subr.bf16.mxu1 %v9177_v26 }
0x25f4   : > { %8053 = vmatpush3.bf16.msra.mxu0 %v9178_v8  ;;  %8075 = vmatpush3.bf16.msra.mxu1 %v9179_v9 }
0x25f5   : > { %8054 = vmatprep.subr.bf16.mxu0 %v9180_v10  ;;  %8076 = vmatprep.subr.bf16.mxu1 %v9181_v11 }
0x25f8   : > { %8055 = vmatpush3.bf16.msra.mxu0 %v9182_v12  ;;  %8077 = vmatpush3.bf16.msra.mxu1 %v9183_v15 }
0x25f9   : > { %8056 = vmatprep.subr.bf16.mxu0 %v9184_v16  ;;  %8078 = vmatprep.subr.bf16.mxu1 %v9185_v20 }
0x25fc   : > { %8057 = vmatpush3.bf16.msra.mxu0 %v9186_v22  ;;  %8079 = vmatpush3.bf16.msra.mxu1 %v9187_v23 }
0x25fd   : > { %8058 = vmatprep.subr.bf16.mxu0 %v9188_v18  ;;  %8080 = vmatprep.subr.bf16.mxu1 %v9189_v21 }
0x2600   : > { %8059 = vmatpush3.bf16.msra.mxu0 %v9190_v41  ;;  %8081 = vmatpush3.bf16.msra.mxu1 %v9191_v24 }
0x2601   : > { %8060 = vmatprep.subr.bf16.mxu0 %v9192_v25  ;;  %8082 = vmatprep.subr.bf16.mxu1 %v9193_v27 }
0x2604   : > { %8061 = vmatpush3.bf16.msra.mxu0 %v9194_v28  ;;  %8083 = vmatpush3.bf16.msra.mxu1 %v9195_v63 }
0x2605   : > { %8062 = vmatprep.subr.bf16.mxu0 %v9196_v48  ;;  %8084 = vmatprep.subr.bf16.mxu1 %v9197_v44 }
0x2608   : > { %8063 = vmatpush3.bf16.msra.mxu0 %v9198_v1  ;;  %8085 = vmatpush3.bf16.msra.mxu1 %v9199_v50 }
0x2609   : > { %8750 = vmatprep.subr.bf16.mxu0 %v9397_v4  ;;  %8770 = vmatprep.subr.bf16.mxu1 %v9397_v4 }
0x26be   : > { %v5991_v0 = vpop.f32.mrb[104].mxu0  ;;  %v6034_v5 = vpop.f32.mrb[104].mxu1 }
0x26bf   : > { %v11271_v30 = vadd.f32 %v5991_v0, %v5780_v32  ;;  %v11273_v33 = vadd.f32 %v6034_v5, %v5788_v61  ;;  %v5993_v34 = vpop.f32.mrb[105].mxu0  ;;  %v6036_v19 = vpop.f32.mrb[105].mxu1 }
0x26c0   : > { %v11275_v36 = vadd.f32 %v5993_v34, %v5784_v60  ;;  %v11277_v51 = vadd.f32 %v6036_v19, %v5792_v3  ;;  %v5995_v37 = vpop.f32.mrb[106].mxu0  ;;  %v6038_v52 = vpop.f32.mrb[106].mxu1 }
0x26c1   : > { %v6051_v38 = vmul.f32 0.044715, %v11271_v30  ;;  %v6053_v54 = vmul.f32 0.044715, %v11273_v33  ;;  %v5996_v49 = vadd.f32 %v5995_v37, %v5780_v32  ;;  %v6039_v55 = vadd.f32 %v6038_v52, %v5788_v61  ;;  %v5997_v39 = vpop.f32.mrb[107].mxu0  ;;  %v6040_v40 = vpop.f32.mrb[107].mxu1 }
0x26c2   : > { %v6052_v43 = vmul.f32 0.044715, %v11275_v36  ;;  %v6054_v45 = vmul.f32 0.044715, %v11277_v51  ;;  %v11283_v47 = vadd.f32 %v5997_v39, %v5784_v60  ;;  %v11285_v53 = vadd.f32 %v6040_v40, %v5792_v3 }
0x26c3   : > { %v6059_v57 = vmul.f32 %v6051_v38, %v11271_v30  ;;  %v6061_v58 = vmul.f32 %v6053_v54, %v11273_v33  ;;  %v6055_v31 = vmul.f32 0.044715, %v5996_v49  ;;  %v6057_v2 = vmul.f32 0.044715, %v6039_v55 }
0x26c4   : > { %v6060_v35 = vmul.f32 %v6052_v43, %v11275_v36  ;;  %v6062_v13 = vmul.f32 %v6054_v45, %v11277_v51  ;;  %v6056_v62 = vmul.f32 0.044715, %v11283_v47  ;;  %v6058_v46 = vmul.f32 0.044715, %v11285_v53 }
0x26c5   : > { %v6067_v56 = vmul.f32 %v6059_v57, %v11271_v30  ;;  %v6069_v6 = vmul.f32 %v6061_v58, %v11273_v33  ;;  %v6063_v17 = vmul.f32 %v6055_v31, %v5996_v49  ;;  %v6065_v14 = vmul.f32 %v6057_v2, %v6039_v55 }
0x26c6   : > { %v6068_v7 = vmul.f32 %v6060_v35, %v11275_v36  ;;  %v6070_v42 = vmul.f32 %v6062_v13, %v11277_v51  ;;  %v6064_v26 = vmul.f32 %v6056_v62, %v11283_v47  ;;  %v6066_v8 = vmul.f32 %v6058_v46, %v11285_v53 }
0x26c7   : > { %v6075_v9 = vadd.f32 %v6067_v56, %v11271_v30  ;;  %v6077_v10 = vadd.f32 %v6069_v6, %v11273_v33  ;;  %v6071_v11 = vmul.f32 %v6063_v17, %v5996_v49  ;;  %v6073_v12 = vmul.f32 %v6065_v14, %v6039_v55 }
0x26c8   : > { %v6072_v15 = vmul.f32 %v6064_v26, %v11283_v47  ;;  %v6074_v16 = vmul.f32 %v6066_v8, %v11285_v53  ;;  %v6076_v21 = vadd.f32 %v6068_v7, %v11275_v36  ;;  %v6078_v27 = vadd.f32 %v6070_v42, %v11277_v51 }
0x26c9   : > { %v6083_v20 = vmul.f32 0.7978846, %v6075_v9  ;;  %v6085_v22 = vmul.f32 0.7978846, %v6077_v10  ;;  %v6079_v23 = vadd.f32 %v6071_v11, %v5996_v49  ;;  %v6081_v18 = vadd.f32 %v6073_v12, %v6039_v55 }
0x26ca   : > { %v6080_v41 = vadd.f32 %v6072_v15, %v11283_v47  ;;  %v6084_v28 = vmul.f32 0.7978846, %v6076_v21  ;;  %v6082_v48 = vadd.f32 %v6074_v16, %v11285_v53  ;;  %v6086_v44 = vmul.f32 0.7978846, %v6078_v27  ;;  %v9203_v27 = vld [vmem:[%s11458_s16 + $0x18] sm:$0xff]  }
0x26cb   : > { %9312 = vtanh.f32 %v6083_v20  ;;  %v6087_v24 = vmul.f32 0.7978846, %v6079_v23  ;;  %v6089_v25 = vmul.f32 0.7978846, %v6081_v18  ;;  %v6043_v0 = vmul.f32 0.5, %v11271_v30  ;;  %v9200_v23 = vld [vmem:[%s11458_s16] sm:$0xff]  }
0x26cc   : > { %9314 = vtanh.f32 %v6085_v22  ;;  %v6088_v63 = vmul.f32 0.7978846, %v6080_v41  ;;  %v6090_v1 = vmul.f32 0.7978846, %v6082_v48  ;;  %v6047_v5 = vmul.f32 0.5, %v5996_v49  ;;  %v9201_v18 = vld [vmem:[%s11458_s16 + $0x8] sm:$0xff]  }
0x26cd   : > { %9316 = vtanh.f32 %v6087_v24  ;;  %v6045_v37 = vmul.f32 0.5, %v11273_v33  ;;  %v6049_v52 = vmul.f32 0.5, %v6039_v55  ;;  %v6044_v39 = vmul.f32 0.5, %v11275_v36  ;;  %v9206_v48 = vld [vmem:[%s11458_s16 + $0x30] sm:$0xff]  }
0x26ce   : > { %9318 = vtanh.f32 %v6089_v25  ;;  %v6048_v58 = vmul.f32 0.5, %v11283_v47  ;;  %v6046_v49 = vmul.f32 0.5, %v11277_v51  ;;  %v6050_v13 = vmul.f32 0.5, %v11285_v53  ;;  %v7676_v47 = vld [vmem:[%s11455_s13 + $0x1] ss:$0 sm:$0xff] }
0x26cf   : > { %9320 = vtanh.f32 %v6084_v28  ;;  %v9204_v28 = vld [vmem:[%s11458_s16 + $0x20] sm:$0xff]  }
0x26d0   : > { %9322 = vtanh.f32 %v6088_v63  ;;  %v9205_v63 = vld [vmem:[%s11458_s16 + $0x28] sm:$0xff]  }
0x26d1   : > { %9324 = vtanh.f32 %v6086_v44  ;;  %v9208_v44 = vld [vmem:[%s11460_s18] sm:$0xff]  }
0x26d2   : > { %9326 = vtanh.f32 %v6090_v1  ;;  %v9209_v1 = vld [vmem:[%s11460_s18 + $0x8] sm:$0xff]  }
0x26d5   : > { %v9313_v50 = vpop.eup %9312 }
0x26d6   : > { %v9315_v29 = vpop.eup %9314  ;;  %v6099_v32 = vadd.f32 1.0, %v9313_v50  ;;  %v9207_v50 = vld [vmem:[%s11458_s16 + $0x38] sm:$0xff]  }
0x26d7   : > { %v9317_v61 = vpop.eup %9316  ;;  %v6101_v60 = vadd.f32 1.0, %v9315_v29  ;;  %v9210_v29 = vld [vmem:[%s11460_s18 + $0x10] sm:$0xff]  }
0x26d8   : > { %v9319_v3 = vpop.eup %9318  ;;  %v6103_v34 = vadd.f32 1.0, %v9317_v61  ;;  %v6107_v43 = vmul.f32 %v6099_v32, %v6043_v0  ;;  %v9211_v32 = vld [vmem:[%s11460_s18 + $0x18] sm:$0xff]  }
0x26d9   : > { %v9321_v19 = vpop.eup %9320  ;;  %v6105_v38 = vadd.f32 1.0, %v9319_v3  ;;  %v6109_v2 = vmul.f32 %v6101_v60, %v6045_v37 }
0x26da   : > { %v9323_v54 = vpop.eup %9322  ;;  %v6100_v40 = vadd.f32 1.0, %v9321_v19  ;;  %v6111_v45 = vmul.f32 %v6103_v34, %v6047_v5  ;;  %v7711_v5 = vld [vmem:[%s11456_s14 + $0x1] ss:$0 sm:$0xff] }
0x26db   : > { %v9325_v57 = vpop.eup %9324  ;;  %v6104_v31 = vadd.f32 1.0, %v9323_v54  ;;  %v6113_v35 = vmul.f32 %v6105_v38, %v6049_v52  ;;  %v7712_v19 = vld [vmem:[%s11457_s15 + $0x1] ss:$0 sm:$0xff] }
0x26dc   : > { %v9327_v30 = vpop.eup %9326  ;;  %v6102_v33 = vadd.f32 1.0, %v9325_v57  ;;  %v6115_v55 = vpack.c.bf16 %v6111_v45, %v6107_v43  ;;  %v6108_v62 = vmul.f32 %v6100_v40, %v6044_v39  ;;  %v9212_v54 = vld [vmem:[%s11460_s18 + $0x20] sm:$0xff]   ;;  %v9213_v39 = vld [vmem:[%s11460_s18 + $0x28] sm:$0xff]   ;;  %v9214_v40 = vld [vmem:[%s11460_s18 + $0x30] sm:$0xff]  }
0x26dd   : > { %v6112_v46 = vmul.f32 %v6104_v31, %v6048_v58  ;;  %v6106_v56 = vadd.f32 1.0, %v9327_v30  ;;  %v6117_v36 = vpack.c.bf16 %v6113_v35, %v6109_v2  ;;  %v9215_v43 = vld [vmem:[%s11460_s18 + $0x38] sm:$0xff]   ;;  %v6511_v45 = vld [vmem:[%s11459_s17] sm:$0x1] }
0x26de   : > { %v6110_v17 = vmul.f32 %v6102_v33, %v6046_v49 }
0x26df   : > { %v6116_v6 = vpack.c.bf16 %v6112_v46, %v6108_v62  ;;  %v6114_v14 = vmul.f32 %v6106_v56, %v6050_v13  ;;  %v6618_v13 = vld [vmem:[%s11461_s19] sm:$0x1] }
0x26e1   : > { %6416 = vmatprep.mubr.bf16.mxu0 %v6116_v6  ;;  %v6118_v7 = vpack.c.bf16 %v6114_v14, %v6110_v17 }
0x26e2   : > { %6417 = vmatmul.mubr.bf16.vlgmr.msra.gmra.mrb[108].mxu0 %v6115_v55 }
0x26e3   : > { %6456 = vmatprep.mubr.bf16.mxu1 %v6118_v7  ;;  %8766 = vmatprep.mubr.msk.bf16.mxu0 %vm9398_vm0, %v9397_v4 }
0x26e4   : > { %6457 = vmatmul.mubr.bf16.vlgmr.msra.gmra.mrb[108].mxu1 %v6117_v36  ;;  %8751 = vmatpush3.bf16.msra.mxu0 %v9200_v23 }
0x26e5   : > { %8786 = vmatprep.mubr.msk.bf16.mxu1 %vm9398_vm0, %v9397_v4  ;;  %8752 = vmatprep.subr.bf16.mxu0 %v9397_v4 }
0x26e6   : > { %8771 = vmatpush3.bf16.msra.mxu1 %v9208_v44 }
0x26e7   : > { %8772 = vmatprep.subr.bf16.mxu1 %v9397_v4 }
0x26e8   : > { %8753 = vmatpush3.bf16.msra.mxu0 %v9201_v18 }
0x26e9   : > { %8754 = vmatprep.subr.bf16.mxu0 %v9397_v4 }
0x26ea   : > { %8773 = vmatpush3.bf16.msra.mxu1 %v9209_v1 }
0x26eb   : > { %8774 = vmatprep.subr.bf16.mxu1 %v9397_v4 }
0x26ee   : > { %8775 = vmatpush3.bf16.msra.mxu1 %v9210_v29 }
0x26ef   : > { %8776 = vmatprep.subr.bf16.mxu1 %v9397_v4 }
0x26f2   : > { %8777 = vmatpush3.bf16.msra.mxu1 %v9211_v32 }
0x26f3   : > { %8778 = vmatprep.subr.bf16.mxu1 %v9397_v4 }
0x26f6   : > { %8779 = vmatpush3.bf16.msra.mxu1 %v9212_v54 }
0x26f7   : > { %8780 = vmatprep.subr.bf16.mxu1 %v9397_v4 }
0x26fa   : > { %8781 = vmatpush3.bf16.msra.mxu1 %v9213_v39 }
0x26fb   : > { %8782 = vmatprep.subr.bf16.mxu1 %v9397_v4 }
0x26fe   : > { %8783 = vmatpush3.bf16.msra.mxu1 %v9214_v40 }
0x26ff   : > { %8784 = vmatprep.subr.bf16.mxu1 %v9397_v4 }
0x2702   : > { %8785 = vmatpush3.bf16.msra.mxu1 %v9215_v43 }
0x27b5   : > { %v8064_v51 = vpop.f32.mrb[108].mxu0 }
0x27b6   : > { %v8065_v53 = vpop.f32.mrb[109].mxu0 }
0x27b7   : > { %v8086_v42 = vpop.f32.mrb[108].mxu1  ;;  %v8066_v26 = vadd.f32 %v8065_v53, %v8064_v51  ;;  %v8067_v8 = vpop.f32.mrb[110].mxu0 }
0x27b8   : > { %v8087_v9 = vpop.f32.mrb[109].mxu1  ;;  %v8068_v10 = vpop.f32.mrb[111].mxu0 }
0x27b9   : > { %v6419_v11 = vadd.f32 %v8066_v26, %v7676_v47  ;;  %v8088_v12 = vadd.f32 %v8087_v9, %v8086_v42  ;;  %v8089_v15 = vpop.f32.mrb[110].mxu1 }
0x27ba   : > { %v8090_v16 = vpop.f32.mrb[111].mxu1 }
0x27bb   : > { %v6459_v20 = vadd.f32 %v8088_v12, %v6419_v11 }
0x27bd   : > { %v6464_v22 = vadd.f32 %v6459_v20, %v11159_v59  ;;  %v9202_v59 = vld [vmem:[%s11458_s16 + $0x10] sm:$0xff]  }
0x27be   : > { %8755 = vmatpush3.bf16.msra.mxu0 %v9202_v59 }
0x27bf   : > { %6469 = vadd.xlane.f32.xlu0 %v6464_v22  ;;  %8756 = vmatprep.subr.bf16.mxu0 %v9397_v4 }
0x27c2   : > { %8757 = vmatpush3.bf16.msra.mxu0 %v9203_v27 }
0x27c3   : > { %8758 = vmatprep.subr.bf16.mxu0 %v9397_v4 }
0x27c6   : > { %8759 = vmatpush3.bf16.msra.mxu0 %v9204_v28 }
0x27c7   : > { %8760 = vmatprep.subr.bf16.mxu0 %v9397_v4 }
0x27ca   : > { %8761 = vmatpush3.bf16.msra.mxu0 %v9205_v63 }
0x27cb   : > { %8762 = vmatprep.subr.bf16.mxu0 %v9397_v4 }
0x27ce   : > { %8763 = vmatpush3.bf16.msra.mxu0 %v9206_v48 }
0x27cf   : > { %8764 = vmatprep.subr.bf16.mxu0 %v9397_v4 }
0x27d2   : > { %8765 = vmatpush3.bf16.msra.mxu0 %v9207_v50 }
0x284c   : > { %v6470_v21 = vpop.xlane.xlu0 %6469 }
0x284d   : > { %v6471_v41 = vmul.f32 0.0078125, %v6470_v21 }
0x284f   : > { %v6472_v24 = vsub.f32 %v6464_v22, %v6471_v41 }
0x2851   : > { %v6473_v25 = vmul.f32 %v6472_v24, %v6472_v24 }
0x2853   : > { %6474 = vadd.xlane.f32.xlu1 %v6473_v25 }
0x28e0   : > { %v6475_v61 = vpop.xlane.xlu1 %6474 }
0x28e1   : > { %v6476_v60 = vmul.f32 0.0078125, %v6475_v61 }
0x28e3   : > { %v6477_v3 = vadd.f32 1e-12, %v6476_v60 }
0x28e5   : > { %9328 = vrsqrt.f32 %v6477_v3 }
0x28ef   : > { %v9329_v0 = vpop.eup %9328 }
0x28f0   : > { %v6479_v34 = vmul.f32 %v9329_v0, %v6472_v24 }
0x28f2   : > { %v6486_v37 = vmul.f32 %v7711_v5, %v6479_v34 }
0x28f4   : > { %v6493_v52 = vadd.f32 %v7712_v19, %v6486_v37 }
0x28f6   : > { %v6494_v38 = vpack.c.bf16 %v6493_v52, %v6493_v52 }
0x28f8   : > { %8767 = vmatmul.mubr.bf16.vlgmr.msra.gmra.mrb[112].mxu0 %v6494_v38 }
0x29cb   : > { %v6594_v57 = vpop.f32.mrb[112].mxu0 }
0x29cc   : > { %v6595_v58 = vadd.f32 %v6594_v57, %v6511_v45  ;;  %v8768_v31 = vpop.f32.mrb[113].mxu0 }
0x29cd   : > { %v6597_v2 = vpop.f32.mrb[114].mxu0 }
0x29ce   : > { %9330 = vtanh.f32 %v6595_v58  ;;  %v8769_v35 = vpop.f32.mrb[115].mxu0 }
0x29d8   : > { %v9331_v30 = vpop.eup %9330 }
0x29d9   : > { %v6601_v49 = vpack.c.bf16 %v9331_v30, %v9331_v30 }
0x29db   : > { %8787 = vmatmul.mubr.bf16.vlgmr.msra.gmra.mrb[112].mxu1 %v6601_v49 }
0x2aae   : > { %v6701_v4 = vpop.f32.mrb[112].mxu1 }
0x2aaf   : > { %v6702_v33 = vadd.f32 %v6701_v4, %v6618_v13  ;;  %v8788_v55 = vpop.f32.mrb[113].mxu1 }
0x2ab0   : > { %v6704_v62 = vpop.f32.mrb[114].mxu1 }
0x2ab1   : > { %v8789_v46 = vpop.f32.mrb[115].mxu1  ;;  %6708 = vst.msk [vmem:[%s633_s4] sm:$0x1] %vm6707_vm3, %v6702_v33 }
0x2ab2   : > { %9346 = shalt.err (!%p9343_p4)
}
0x2ab3   : > { %s9347_s1 = scalar_lea.hbm %s11400_s27, 16  ;;  %s9351_s29 = scalar_lea.hbm %s11494_s25, 32 }
0x2ab4   : > { %p9348_p7 = scmp.ne.s32.totalorder %s11400_s27, %s9347_s1  ;;  %p9352_p10 = scmp.lt.u32.totalorder %s11400_s27, %s11494_s25 }
0x2ab5   : > { %p9353_p11 = scmp.lt.u32.totalorder %s9351_s29, %s9347_s1  ;;  %p9355_p13 = scmp.lt.u32.totalorder %s9347_s1, %s11400_s27 }
0x2ab6   : > { %p9349_p8 = pnand %p9348_p7, %p9544_p5 }
0x2ab7   : > { %p9354_p12 = por %p9353_p11, %p9352_p10 }
0x2ab8   : > { %p9350_p9 = pneg %p9349_p8 }
0x2ab9   : > { %p9356_p0 = por %p9355_p13, %p9354_p12 }
0x2abb   : > { %p9357_p1 = pnand %p9356_p0, %p9350_p9 }
0x2abd   : > { %9360 = shalt.err (!%p9357_p1)
}
0x2abe   : > { %8790 = dma.vmem_to_hbm [thread:$0]  (%p9544_p5), %s11402_s28, 16, %s11400_s27, %s6710_s2  }
0x2abf PF: > { %s11495_s30 = sld [smem:[#allocation7_spill]]  ;;  %s11496_s23 = sld [smem:[#allocation5_spill]] }
0x2ac5   : > { %p8796_p2 = scmp.ge.s32.totalorder %s11495_s30, 2  ;;  %s6734_s24 = sand.u32 1, %s11496_s23  }
0x2ac6   : > { %s6735_s4 = scalar_lea.sflag [#allocation3], %s6734_s24 }
0x2ac7   : > { %p8793_p3 = pnand %p8796_p2, %p9548_p6 }
0x2ac9   : > { %9378 = dma.done.wait (!%p8793_p3), %s6735_s4, 16  }
0x2aca   : > { %9380 = vsyncadd (!%p8793_p3), %s6735_s4, 4294967280  ;;  %s11498_s24 = sld [smem:[#allocation8_spill]]  ;;  %s11499_s29 = sld [smem:[#allocation6_spill]] }
0x2acb   : > { %s11500_s23 = sld [smem:[#allocation9_spill]]  ;;  %s11501_s1 = smov %s9387_s22 }
0x2ad0   : > { %p30_p4 = scmp.ge.s32.totalorder %s11498_s24, 4   ;;  %s11502_s22 = smov %s11499_s29 }
0x2ad2   :  { %32 = sbr.rel (!%p30_p4) target bundleno = 10 (0xa), region = 200 }
0x2ad9   :  { %6739 = vsyncpa [#allocation3], 1 }
0x2ada   :  { %6741 = vsyncpa [#allocation3 + $0x1], 1 }

</bundles_post_ra>
